<compile_context>
chip_gen: v6e
topology: v6e:2x2x1
jax: 0.10.0
libtpu: 0.0.40
codegen_flags: <defaults>
</compile_context>

<pallas_src>
import numpy as np
import jax
import jax.numpy as jnp
from jax.experimental import pallas as pl
from jax.experimental.pallas import tpu as pltpu


def _round_up(x, m):
    return ((x + m - 1) // m) * m


# ------------------------------- Pallas kernel -------------------------------

def _make_basicblock_kernel(H, W, Cp):
    HW = H * W
    WP = W + 16           # 8-column zero halo each side -> aligned (8,128) stores/loads
    f32 = jnp.float32
    bf16 = jnp.bfloat16

    def kernel(x_ref, s1_ref, b1_ref, w1_ref, s2_ref, b2_ref, w2_ref,
               relu_ref, out_ref, ypad_ref):
        # x_ref   : (H+2, WP, Cp) f32  spatially pre-padded, channel-padded input (one image)
        # sN/bN   : (1, Cp)       f32  folded BatchNorm scale / bias
        # wN_ref  : (9, Cp, Cp)   bf16 3x3 conv weights, tap-major, lane-dense
        # relu/out: (H, W, Cp)    f32  the two module outputs
        # ypad_ref: (H+2, WP, Cp) f32  zero-halo padded intermediate (VMEM scratch)

        def conv3x3(tap, w_ref):
            # 9 lane-dense K=Cp MXU matmuls accumulated in f32 (shifted-tap im2col).
            acc = jnp.zeros((HW, Cp), f32)
            for dy in range(3):
                for dx in range(3):
                    a = tap(dy, dx).astype(bf16).reshape(HW, Cp)
                    acc = acc + jnp.dot(a, w_ref[dy * 3 + dx],
                                        preferred_element_type=f32)
            return acc

        # ---- conv1 -> BN1 -> ReLU (BN folded to per-channel scale/bias) ----
        y = conv3x3(lambda dy, dx: x_ref[dy:dy + H, 7 + dx:7 + dx + W, :], w1_ref)
        y = jnp.maximum(y * s1_ref[...] + b1_ref[...], 0.0)

        # ---- stash intermediate in the aligned, zero-halo padded scratch ----
        # Halo is rewritten every grid step (scratch persists across iterations).
        ypad_ref[0:1, :, :] = jnp.zeros((1, WP, Cp), f32)
        ypad_ref[H + 1:H + 2, :, :] = jnp.zeros((1, WP, Cp), f32)
        ypad_ref[:, 0:8, :] = jnp.zeros((H + 2, 8, Cp), f32)
        ypad_ref[:, W + 8:WP, :] = jnp.zeros((H + 2, 8, Cp), f32)
        ypad_ref[1:H + 1, 8:8 + W, :] = y.reshape(H, W, Cp)

        # ---- conv2 -> BN2 ----
        z = conv3x3(lambda dy, dx: ypad_ref[dy:dy + H, 7 + dx:7 + dx + W, :], w2_ref)
        z = z * s2_ref[...] + b2_ref[...]

        # ---- identity residual add + ReLU; two outputs like the PyTorch module ----
        pre = z + x_ref[1:H + 1, 8:8 + W, :].reshape(HW, Cp)
        out_ref[...] = pre.reshape(H, W, Cp)
        relu_ref[...] = jnp.maximum(pre, 0.0).reshape(H, W, Cp)

    return kernel


# ------------------------------- module forward ------------------------------

def basicblock_forward(x_nchw, params, eps=1e-5):
    N, Cin, H, W = x_nchw.shape
    planes = params["w1"].shape[0]
    assert params["w2"].shape[0] == planes and Cin == params["w1"].shape[1]
    assert Cin == planes, "identity residual requires inplanes == planes (no downsample)"
    assert W % 8 == 0, "W must be a multiple of 8 for the aligned layout"

    Cp = _round_up(max(Cin, planes), 128)     # lane-dense channel padding
    WP = W + 16

    # NCHW -> NHWC, pad channels to Cp and spatial dims for the 3x3 halo
    # (W gets an 8-wide halo per side so all interior stores are 8-sublane aligned).
    x = jnp.transpose(x_nchw, (0, 2, 3, 1)).astype(jnp.float32)
    x_p = jnp.pad(x, ((0, 0), (1, 1), (8, 8), (0, Cp - Cin)))

    def fold_bn(prefix, cout):
        g = params[prefix + "_g"]; b = params[prefix + "_b"]
        m = params[prefix + "_m"]; v = params[prefix + "_v"]
        s = g / jnp.sqrt(v + eps)
        bias = b - m * s
        s = jnp.pad(s, (0, Cp - cout), constant_values=1.0).reshape(1, Cp)
        bias = jnp.pad(bias, (0, Cp - cout)).reshape(1, Cp)
        return s.astype(jnp.float32), bias.astype(jnp.float32)

    s1, b1 = fold_bn("bn1", planes)
    s2, b2 = fold_bn("bn2", planes)

    def prep_w(w):
        co, ci = w.shape[:2]
        wt = jnp.transpose(w, (2, 3, 1, 0))                       # (kh, kw, Cin, Cout)
        wt = jnp.pad(wt, ((0, 0), (0, 0), (0, Cp - ci), (0, Cp - co)))
        return wt.reshape(9, Cp, Cp).astype(jnp.bfloat16)         # tap-major, lane-dense

    w1 = prep_w(params["w1"])
    w2 = prep_w(params["w2"])

    HW = H * W
    flops = 2 * 2 * N * HW * (9 * Cp) * Cp                        # two 3x3 convs
    bytes_accessed = (N * (H + 2) * WP * Cp * 4                   # padded input
                      + 2 * N * HW * Cp * 4                       # two outputs
                      + 2 * 9 * Cp * Cp * 2                       # bf16 weights
                      + 4 * Cp * 4)                               # BN scale/bias

    kernel = _make_basicblock_kernel(H, W, Cp)
    grid_spec = pltpu.PrefetchScalarGridSpec(
        num_scalar_prefetch=0,
        grid=(N,),
        in_specs=[
            pl.BlockSpec((None, H + 2, WP, Cp), lambda n: (n, 0, 0, 0)),
            pl.BlockSpec((1, Cp), lambda n: (0, 0)),
            pl.BlockSpec((1, Cp), lambda n: (0, 0)),
            pl.BlockSpec((9, Cp, Cp), lambda n: (0, 0, 0)),
            pl.BlockSpec((1, Cp), lambda n: (0, 0)),
            pl.BlockSpec((1, Cp), lambda n: (0, 0)),
            pl.BlockSpec((9, Cp, Cp), lambda n: (0, 0, 0)),
        ],
        out_specs=(
            pl.BlockSpec((None, H, W, Cp), lambda n: (n, 0, 0, 0)),
            pl.BlockSpec((None, H, W, Cp), lambda n: (n, 0, 0, 0)),
        ),
        scratch_shapes=[pltpu.VMEM((H + 2, WP, Cp), jnp.float32)],
    )

    relu_p, out_p = pl.pallas_call(
        kernel,
        out_shape=(jax.ShapeDtypeStruct((N, H, W, Cp), jnp.float32),
                   jax.ShapeDtypeStruct((N, H, W, Cp), jnp.float32)),
        grid_spec=grid_spec,
        compiler_params=pltpu.CompilerParams(
            dimension_semantics=("parallel",),          # 2x on v7x (2 TensorCores)
            vmem_limit_bytes=48 * 1024 * 1024),         # headroom under v7x's 64 MiB
        cost_estimate=pl.CostEstimate(flops=int(flops), transcendentals=0,
                                      bytes_accessed=int(bytes_accessed)),
    )(x_p, s1, b1, w1, s2, b2, w2)

    # strip channel padding, NHWC -> NCHW
    relu_nchw = jnp.transpose(relu_p[..., :planes], (0, 3, 1, 2))
    out_nchw = jnp.transpose(out_p[..., :planes], (0, 3, 1, 2))
    return relu_nchw, out_nchw


# --------------------------- pure-JAX reference ------------------------------

def reference_forward(x_nchw, params, eps=1e-5):
    def conv(x, w):
        return jax.lax.conv_general_dilated(
            x, w, window_strides=(1, 1), padding=((1, 1), (1, 1)),
            dimension_numbers=("NCHW", "OIHW", "NCHW"))

    def bn(x, g, b, m, v):
        s = g / jnp.sqrt(v + eps)
        return x * s[None, :, None, None] + (b - m * s)[None, :, None, None]

    out = conv(x_nchw, params["w1"])
    out = jnp.maximum(bn(out, params["bn1_g"], params["bn1_b"],
                         params["bn1_m"], params["bn1_v"]), 0.0)
    out = conv(out, params["w2"])
    out = bn(out, params["bn2_g"], params["bn2_b"], params["bn2_m"], params["bn2_v"])
    out = out + x_nchw
    return jnp.maximum(out, 0.0), out


# ------------------------------- parameter init ------------------------------

def init_params(key, inplanes, planes):
    ks = jax.random.split(key, 10)
    p = {}
    p["w1"] = 0.1 * jax.random.normal(ks[0], (planes, inplanes, 3, 3), jnp.float32)
    p["bn1_g"] = 1.0 + 0.1 * jax.random.normal(ks[1], (planes,), jnp.float32)
    p["bn1_b"] = 0.1 * jax.random.normal(ks[2], (planes,), jnp.float32)
    p["bn1_m"] = 0.1 * jax.random.normal(ks[3], (planes,), jnp.float32)
    p["bn1_v"] = jnp.abs(1.0 + 0.1 * jax.random.normal(ks[4], (planes,), jnp.float32))
    p["w2"] = 0.1 * jax.random.normal(ks[5], (planes, planes, 3, 3), jnp.float32)
    p["bn2_g"] = 1.0 + 0.1 * jax.random.normal(ks[6], (planes,), jnp.float32)
    p["bn2_b"] = 0.1 * jax.random.normal(ks[7], (planes,), jnp.float32)
    p["bn2_m"] = 0.1 * jax.random.normal(ks[8], (planes,), jnp.float32)
    p["bn2_v"] = jnp.abs(1.0 + 0.1 * jax.random.normal(ks[9], (planes,), jnp.float32))
    return p


# ------------------------------------ main ------------------------------------

if __name__ == "__main__":
    inplanes = planes = 8
    N, H, W = 2, 16, 16

    key = jax.random.PRNGKey(0)
    kx, kp = jax.random.split(key)
    x = jax.random.normal(kx, (N, inplanes, H, W), jnp.float32)
    params = init_params(kp, inplanes, planes)

    fwd = jax.jit(basicblock_forward)
    relu_out, pre_out = fwd(x, params)
    relu_out = jax.block_until_ready(relu_out)
    pre_out = jax.block_until_ready(pre_out)

    assert relu_out.shape == (N, planes, H, W), relu_out.shape
    assert pre_out.shape == (N, planes, H, W), pre_out.shape
    assert relu_out.dtype == jnp.float32

    ref_relu, ref_pre = reference_forward(x, params)
    np.testing.assert_allclose(np.asarray(relu_out), np.asarray(ref_relu),
                               rtol=5e-2, atol=5e-2)
    np.testing.assert_allclose(np.asarray(pre_out), np.asarray(ref_pre),
                               rtol=5e-2, atol=5e-2)
    print("KERNEL_OK")
</pallas_src>

<mosaic_0001>
module attributes {stable_mosaic.version = 11 : i64} {
  func.func @kernel(%arg0: i32, %arg1: memref<1x18x32x128xf32, #tpu.memory_space<vmem>>, %arg2: memref<1x128xf32, #tpu.memory_space<vmem>>, %arg3: memref<1x128xf32, #tpu.memory_space<vmem>>, %arg4: memref<9x128x128xbf16, #tpu.memory_space<vmem>>, %arg5: memref<1x128xf32, #tpu.memory_space<vmem>>, %arg6: memref<1x128xf32, #tpu.memory_space<vmem>>, %arg7: memref<9x128x128xbf16, #tpu.memory_space<vmem>>, %arg8: memref<1x16x16x128xf32, #tpu.memory_space<vmem>>, %arg9: memref<1x16x16x128xf32, #tpu.memory_space<vmem>>, %arg10: memref<18x32x128xf32, #tpu.memory_space<vmem>>) attributes {dimension_semantics = [#tpu.dimension_semantics<parallel>], iteration_bounds = array<i64: 2>, scalar_prefetch = 0 : i64, scratch_operands = 1 : i64, tpu.core_type = #tpu.core_type<tc>, window_params = [{transform_indices = @transform_0, window_bounds = array<i64: 1, 18, 32, 128>}, {pipeline_mode = #tpu.pipeline_mode<synchronous>, transform_indices = @transform_1, window_bounds = array<i64: 1, 128>}, {pipeline_mode = #tpu.pipeline_mode<synchronous>, transform_indices = @transform_2, window_bounds = array<i64: 1, 128>}, {pipeline_mode = #tpu.pipeline_mode<synchronous>, transform_indices = @transform_3, window_bounds = array<i64: 9, 128, 128>}, {pipeline_mode = #tpu.pipeline_mode<synchronous>, transform_indices = @transform_4, window_bounds = array<i64: 1, 128>}, {pipeline_mode = #tpu.pipeline_mode<synchronous>, transform_indices = @transform_5, window_bounds = array<i64: 1, 128>}, {pipeline_mode = #tpu.pipeline_mode<synchronous>, transform_indices = @transform_6, window_bounds = array<i64: 9, 128, 128>}, {transform_indices = @transform_7, window_bounds = array<i64: 1, 16, 16, 128>}, {transform_indices = @transform_8, window_bounds = array<i64: 1, 16, 16, 128>}]} {
    %cst = arith.constant 0.000000e+00 : f32
    %0 = vector.broadcast %cst : f32 to vector<256x128xf32>
    %c0 = arith.constant 0 : index
    %c0_0 = arith.constant 0 : index
    %c7 = arith.constant 7 : index
    %c0_1 = arith.constant 0 : index
    %1 = vector.load %arg1[%c0, %c0_0, %c7, %c0_1] : memref<1x18x32x128xf32, #tpu.memory_space<vmem>>, vector<1x16x16x128xf32>
    %2 = vector.shape_cast %1 : vector<1x16x16x128xf32> to vector<16x16x128xf32>
    %3 = arith.truncf %2 : vector<16x16x128xf32> to vector<16x16x128xbf16>
    %4 = vector.shape_cast %3 : vector<16x16x128xbf16> to vector<256x128xbf16>
    %c0_2 = arith.constant 0 : index
    %c0_3 = arith.constant 0 : index
    %c0_4 = arith.constant 0 : index
    %5 = vector.load %arg4[%c0_2, %c0_3, %c0_4] : memref<9x128x128xbf16, #tpu.memory_space<vmem>>, vector<1x128x128xbf16>
    %6 = vector.shape_cast %5 : vector<1x128x128xbf16> to vector<128x128xbf16>
    %cst_5 = arith.constant dense<0.000000e+00> : vector<256x128xf32>
    %7 = tpu.matmul %4, %6, %cst_5 {dimension_numbers = #tpu.dot_dimension_numbers<[1], [0], [0], [1], [0, 0, 1, 1], [], []>} : vector<256x128xbf16>, vector<128x128xbf16>, vector<256x128xf32> -> vector<256x128xf32>
    %8 = arith.addf %0, %7 : vector<256x128xf32>
    %c0_6 = arith.constant 0 : index
    %c0_7 = arith.constant 0 : index
    %c8 = arith.constant 8 : index
    %c0_8 = arith.constant 0 : index
    %9 = vector.load %arg1[%c0_6, %c0_7, %c8, %c0_8] : memref<1x18x32x128xf32, #tpu.memory_space<vmem>>, vector<1x16x16x128xf32>
    %10 = vector.shape_cast %9 : vector<1x16x16x128xf32> to vector<16x16x128xf32>
    %11 = arith.truncf %10 : vector<16x16x128xf32> to vector<16x16x128xbf16>
    %12 = vector.shape_cast %11 : vector<16x16x128xbf16> to vector<256x128xbf16>
    %c1 = arith.constant 1 : index
    %c0_9 = arith.constant 0 : index
    %c0_10 = arith.constant 0 : index
    %13 = vector.load %arg4[%c1, %c0_9, %c0_10] : memref<9x128x128xbf16, #tpu.memory_space<vmem>>, vector<1x128x128xbf16>
    %14 = vector.shape_cast %13 : vector<1x128x128xbf16> to vector<128x128xbf16>
    %cst_11 = arith.constant dense<0.000000e+00> : vector<256x128xf32>
    %15 = tpu.matmul %12, %14, %cst_11 {dimension_numbers = #tpu.dot_dimension_numbers<[1], [0], [0], [1], [0, 0, 1, 1], [], []>} : vector<256x128xbf16>, vector<128x128xbf16>, vector<256x128xf32> -> vector<256x128xf32>
    %16 = arith.addf %8, %15 : vector<256x128xf32>
    %c0_12 = arith.constant 0 : index
    %c0_13 = arith.constant 0 : index
    %c9 = arith.constant 9 : index
    %c0_14 = arith.constant 0 : index
    %17 = vector.load %arg1[%c0_12, %c0_13, %c9, %c0_14] : memref<1x18x32x128xf32, #tpu.memory_space<vmem>>, vector<1x16x16x128xf32>
    %18 = vector.shape_cast %17 : vector<1x16x16x128xf32> to vector<16x16x128xf32>
    %19 = arith.truncf %18 : vector<16x16x128xf32> to vector<16x16x128xbf16>
    %20 = vector.shape_cast %19 : vector<16x16x128xbf16> to vector<256x128xbf16>
    %c2 = arith.constant 2 : index
    %c0_15 = arith.constant 0 : index
    %c0_16 = arith.constant 0 : index
    %21 = vector.load %arg4[%c2, %c0_15, %c0_16] : memref<9x128x128xbf16, #tpu.memory_space<vmem>>, vector<1x128x128xbf16>
    %22 = vector.shape_cast %21 : vector<1x128x128xbf16> to vector<128x128xbf16>
    %cst_17 = arith.constant dense<0.000000e+00> : vector<256x128xf32>
    %23 = tpu.matmul %20, %22, %cst_17 {dimension_numbers = #tpu.dot_dimension_numbers<[1], [0], [0], [1], [0, 0, 1, 1], [], []>} : vector<256x128xbf16>, vector<128x128xbf16>, vector<256x128xf32> -> vector<256x128xf32>
    %24 = arith.addf %16, %23 : vector<256x128xf32>
    %c0_18 = arith.constant 0 : index
    %c1_19 = arith.constant 1 : index
    %c7_20 = arith.constant 7 : index
    %c0_21 = arith.constant 0 : index
    %25 = vector.load %arg1[%c0_18, %c1_19, %c7_20, %c0_21] : memref<1x18x32x128xf32, #tpu.memory_space<vmem>>, vector<1x16x16x128xf32>
    %26 = vector.shape_cast %25 : vector<1x16x16x128xf32> to vector<16x16x128xf32>
    %27 = arith.truncf %26 : vector<16x16x128xf32> to vector<16x16x128xbf16>
    %28 = vector.shape_cast %27 : vector<16x16x128xbf16> to vector<256x128xbf16>
    %c3 = arith.constant 3 : index
    %c0_22 = arith.constant 0 : index
    %c0_23 = arith.constant 0 : index
    %29 = vector.load %arg4[%c3, %c0_22, %c0_23] : memref<9x128x128xbf16, #tpu.memory_space<vmem>>, vector<1x128x128xbf16>
    %30 = vector.shape_cast %29 : vector<1x128x128xbf16> to vector<128x128xbf16>
    %cst_24 = arith.constant dense<0.000000e+00> : vector<256x128xf32>
    %31 = tpu.matmul %28, %30, %cst_24 {dimension_numbers = #tpu.dot_dimension_numbers<[1], [0], [0], [1], [0, 0, 1, 1], [], []>} : vector<256x128xbf16>, vector<128x128xbf16>, vector<256x128xf32> -> vector<256x128xf32>
    %32 = arith.addf %24, %31 : vector<256x128xf32>
    %c0_25 = arith.constant 0 : index
    %c1_26 = arith.constant 1 : index
    %c8_27 = arith.constant 8 : index
    %c0_28 = arith.constant 0 : index
    %33 = vector.load %arg1[%c0_25, %c1_26, %c8_27, %c0_28] : memref<1x18x32x128xf32, #tpu.memory_space<vmem>>, vector<1x16x16x128xf32>
    %34 = vector.shape_cast %33 : vector<1x16x16x128xf32> to vector<16x16x128xf32>
    %35 = arith.truncf %34 : vector<16x16x128xf32> to vector<16x16x128xbf16>
    %36 = vector.shape_cast %35 : vector<16x16x128xbf16> to vector<256x128xbf16>
    %c4 = arith.constant 4 : index
    %c0_29 = arith.constant 0 : index
    %c0_30 = arith.constant 0 : index
    %37 = vector.load %arg4[%c4, %c0_29, %c0_30] : memref<9x128x128xbf16, #tpu.memory_space<vmem>>, vector<1x128x128xbf16>
    %38 = vector.shape_cast %37 : vector<1x128x128xbf16> to vector<128x128xbf16>
    %cst_31 = arith.constant dense<0.000000e+00> : vector<256x128xf32>
    %39 = tpu.matmul %36, %38, %cst_31 {dimension_numbers = #tpu.dot_dimension_numbers<[1], [0], [0], [1], [0, 0, 1, 1], [], []>} : vector<256x128xbf16>, vector<128x128xbf16>, vector<256x128xf32> -> vector<256x128xf32>
    %40 = arith.addf %32, %39 : vector<256x128xf32>
    %c0_32 = arith.constant 0 : index
    %c1_33 = arith.constant 1 : index
    %c9_34 = arith.constant 9 : index
    %c0_35 = arith.constant 0 : index
    %41 = vector.load %arg1[%c0_32, %c1_33, %c9_34, %c0_35] : memref<1x18x32x128xf32, #tpu.memory_space<vmem>>, vector<1x16x16x128xf32>
    %42 = vector.shape_cast %41 : vector<1x16x16x128xf32> to vector<16x16x128xf32>
    %43 = arith.truncf %42 : vector<16x16x128xf32> to vector<16x16x128xbf16>
    %44 = vector.shape_cast %43 : vector<16x16x128xbf16> to vector<256x128xbf16>
    %c5 = arith.constant 5 : index
    %c0_36 = arith.constant 0 : index
    %c0_37 = arith.constant 0 : index
    %45 = vector.load %arg4[%c5, %c0_36, %c0_37] : memref<9x128x128xbf16, #tpu.memory_space<vmem>>, vector<1x128x128xbf16>
    %46 = vector.shape_cast %45 : vector<1x128x128xbf16> to vector<128x128xbf16>
    %cst_38 = arith.constant dense<0.000000e+00> : vector<256x128xf32>
    %47 = tpu.matmul %44, %46, %cst_38 {dimension_numbers = #tpu.dot_dimension_numbers<[1], [0], [0], [1], [0, 0, 1, 1], [], []>} : vector<256x128xbf16>, vector<128x128xbf16>, vector<256x128xf32> -> vector<256x128xf32>
    %48 = arith.addf %40, %47 : vector<256x128xf32>
    %c0_39 = arith.constant 0 : index
    %c2_40 = arith.constant 2 : index
    %c7_41 = arith.constant 7 : index
    %c0_42 = arith.constant 0 : index
    %49 = vector.load %arg1[%c0_39, %c2_40, %c7_41, %c0_42] : memref<1x18x32x128xf32, #tpu.memory_space<vmem>>, vector<1x16x16x128xf32>
    %50 = vector.shape_cast %49 : vector<1x16x16x128xf32> to vector<16x16x128xf32>
    %51 = arith.truncf %50 : vector<16x16x128xf32> to vector<16x16x128xbf16>
    %52 = vector.shape_cast %51 : vector<16x16x128xbf16> to vector<256x128xbf16>
    %c6 = arith.constant 6 : index
    %c0_43 = arith.constant 0 : index
    %c0_44 = arith.constant 0 : index
    %53 = vector.load %arg4[%c6, %c0_43, %c0_44] : memref<9x128x128xbf16, #tpu.memory_space<vmem>>, vector<1x128x128xbf16>
    %54 = vector.shape_cast %53 : vector<1x128x128xbf16> to vector<128x128xbf16>
    %cst_45 = arith.constant dense<0.000000e+00> : vector<256x128xf32>
    %55 = tpu.matmul %52, %54, %cst_45 {dimension_numbers = #tpu.dot_dimension_numbers<[1], [0], [0], [1], [0, 0, 1, 1], [], []>} : vector<256x128xbf16>, vector<128x128xbf16>, vector<256x128xf32> -> vector<256x128xf32>
    %56 = arith.addf %48, %55 : vector<256x128xf32>
    %c0_46 = arith.constant 0 : index
    %c2_47 = arith.constant 2 : index
    %c8_48 = arith.constant 8 : index
    %c0_49 = arith.constant 0 : index
    %57 = vector.load %arg1[%c0_46, %c2_47, %c8_48, %c0_49] : memref<1x18x32x128xf32, #tpu.memory_space<vmem>>, vector<1x16x16x128xf32>
    %58 = vector.shape_cast %57 : vector<1x16x16x128xf32> to vector<16x16x128xf32>
    %59 = arith.truncf %58 : vector<16x16x128xf32> to vector<16x16x128xbf16>
    %60 = vector.shape_cast %59 : vector<16x16x128xbf16> to vector<256x128xbf16>
    %c7_50 = arith.constant 7 : index
    %c0_51 = arith.constant 0 : index
    %c0_52 = arith.constant 0 : index
    %61 = vector.load %arg4[%c7_50, %c0_51, %c0_52] : memref<9x128x128xbf16, #tpu.memory_space<vmem>>, vector<1x128x128xbf16>
    %62 = vector.shape_cast %61 : vector<1x128x128xbf16> to vector<128x128xbf16>
    %cst_53 = arith.constant dense<0.000000e+00> : vector<256x128xf32>
    %63 = tpu.matmul %60, %62, %cst_53 {dimension_numbers = #tpu.dot_dimension_numbers<[1], [0], [0], [1], [0, 0, 1, 1], [], []>} : vector<256x128xbf16>, vector<128x128xbf16>, vector<256x128xf32> -> vector<256x128xf32>
    %64 = arith.addf %56, %63 : vector<256x128xf32>
    %c0_54 = arith.constant 0 : index
    %c2_55 = arith.constant 2 : index
    %c9_56 = arith.constant 9 : index
    %c0_57 = arith.constant 0 : index
    %65 = vector.load %arg1[%c0_54, %c2_55, %c9_56, %c0_57] : memref<1x18x32x128xf32, #tpu.memory_space<vmem>>, vector<1x16x16x128xf32>
    %66 = vector.shape_cast %65 : vector<1x16x16x128xf32> to vector<16x16x128xf32>
    %67 = arith.truncf %66 : vector<16x16x128xf32> to vector<16x16x128xbf16>
    %68 = vector.shape_cast %67 : vector<16x16x128xbf16> to vector<256x128xbf16>
    %c8_58 = arith.constant 8 : index
    %c0_59 = arith.constant 0 : index
    %c0_60 = arith.constant 0 : index
    %69 = vector.load %arg4[%c8_58, %c0_59, %c0_60] : memref<9x128x128xbf16, #tpu.memory_space<vmem>>, vector<1x128x128xbf16>
    %70 = vector.shape_cast %69 : vector<1x128x128xbf16> to vector<128x128xbf16>
    %cst_61 = arith.constant dense<0.000000e+00> : vector<256x128xf32>
    %71 = tpu.matmul %68, %70, %cst_61 {dimension_numbers = #tpu.dot_dimension_numbers<[1], [0], [0], [1], [0, 0, 1, 1], [], []>} : vector<256x128xbf16>, vector<128x128xbf16>, vector<256x128xf32> -> vector<256x128xf32>
    %72 = arith.addf %64, %71 : vector<256x128xf32>
    %c0_62 = arith.constant 0 : index
    %c0_63 = arith.constant 0 : index
    %73 = vector.load %arg2[%c0_62, %c0_63] : memref<1x128xf32, #tpu.memory_space<vmem>>, vector<1x128xf32>
    %74 = vector.broadcast %73 : vector<1x128xf32> to vector<256x128xf32>
    %75 = arith.mulf %72, %74 : vector<256x128xf32>
    %c0_64 = arith.constant 0 : index
    %c0_65 = arith.constant 0 : index
    %76 = vector.load %arg3[%c0_64, %c0_65] : memref<1x128xf32, #tpu.memory_space<vmem>>, vector<1x128xf32>
    %77 = vector.broadcast %76 : vector<1x128xf32> to vector<256x128xf32>
    %78 = arith.addf %75, %77 : vector<256x128xf32>
    %cst_66 = arith.constant 0.000000e+00 : f32
    %79 = vector.broadcast %cst_66 : f32 to vector<256x128xf32>
    %80 = arith.maximumf %78, %79 : vector<256x128xf32>
    %cst_67 = arith.constant 0.000000e+00 : f32
    %81 = vector.broadcast %cst_67 : f32 to vector<1x32x128xf32>
    %c0_68 = arith.constant 0 : index
    %c0_69 = arith.constant 0 : index
    %c0_70 = arith.constant 0 : index
    %82 = vector.load %arg10[%c0_68, %c0_69, %c0_70] : memref<18x32x128xf32, #tpu.memory_space<vmem>>, vector<1x32x128xf32>
    tpu.vector_store %arg10[%c0_68, %c0_69, %c0_70], %81 {strides = array<i32>} : memref<18x32x128xf32, #tpu.memory_space<vmem>>, vector<1x32x128xf32>,
    %cst_71 = arith.constant 0.000000e+00 : f32
    %83 = vector.broadcast %cst_71 : f32 to vector<1x32x128xf32>
    %c17 = arith.constant 17 : index
    %c0_72 = arith.constant 0 : index
    %c0_73 = arith.constant 0 : index
    %84 = vector.load %arg10[%c17, %c0_72, %c0_73] : memref<18x32x128xf32, #tpu.memory_space<vmem>>, vector<1x32x128xf32>
    tpu.vector_store %arg10[%c17, %c0_72, %c0_73], %83 {strides = array<i32>} : memref<18x32x128xf32, #tpu.memory_space<vmem>>, vector<1x32x128xf32>,
    %cst_74 = arith.constant 0.000000e+00 : f32
    %85 = vector.broadcast %cst_74 : f32 to vector<18x8x128xf32>
    %c0_75 = arith.constant 0 : index
    %c0_76 = arith.constant 0 : index
    %c0_77 = arith.constant 0 : index
    %86 = vector.load %arg10[%c0_75, %c0_76, %c0_77] : memref<18x32x128xf32, #tpu.memory_space<vmem>>, vector<18x8x128xf32>
    tpu.vector_store %arg10[%c0_75, %c0_76, %c0_77], %85 {strides = array<i32>} : memref<18x32x128xf32, #tpu.memory_space<vmem>>, vector<18x8x128xf32>,
    %cst_78 = arith.constant 0.000000e+00 : f32
    %87 = vector.broadcast %cst_78 : f32 to vector<18x8x128xf32>
    %c0_79 = arith.constant 0 : index
    %c24 = arith.constant 24 : index
    %c0_80 = arith.constant 0 : index
    %88 = vector.load %arg10[%c0_79, %c24, %c0_80] : memref<18x32x128xf32, #tpu.memory_space<vmem>>, vector<18x8x128xf32>
    tpu.vector_store %arg10[%c0_79, %c24, %c0_80], %87 {strides = array<i32>} : memref<18x32x128xf32, #tpu.memory_space<vmem>>, vector<18x8x128xf32>,
    %89 = vector.shape_cast %80 : vector<256x128xf32> to vector<16x16x128xf32>
    %c1_81 = arith.constant 1 : index
    %c8_82 = arith.constant 8 : index
    %c0_83 = arith.constant 0 : index
    %90 = vector.load %arg10[%c1_81, %c8_82, %c0_83] : memref<18x32x128xf32, #tpu.memory_space<vmem>>, vector<16x16x128xf32>
    tpu.vector_store %arg10[%c1_81, %c8_82, %c0_83], %89 {strides = array<i32>} : memref<18x32x128xf32, #tpu.memory_space<vmem>>, vector<16x16x128xf32>,
    %cst_84 = arith.constant 0.000000e+00 : f32
    %91 = vector.broadcast %cst_84 : f32 to vector<256x128xf32>
    %c0_85 = arith.constant 0 : index
    %c7_86 = arith.constant 7 : index
    %c0_87 = arith.constant 0 : index
    %92 = vector.load %arg10[%c0_85, %c7_86, %c0_87] : memref<18x32x128xf32, #tpu.memory_space<vmem>>, vector<16x16x128xf32>
    %93 = arith.truncf %92 : vector<16x16x128xf32> to vector<16x16x128xbf16>
    %94 = vector.shape_cast %93 : vector<16x16x128xbf16> to vector<256x128xbf16>
    %c0_88 = arith.constant 0 : index
    %c0_89 = arith.constant 0 : index
    %c0_90 = arith.constant 0 : index
    %95 = vector.load %arg7[%c0_88, %c0_89, %c0_90] : memref<9x128x128xbf16, #tpu.memory_space<vmem>>, vector<1x128x128xbf16>
    %96 = vector.shape_cast %95 : vector<1x128x128xbf16> to vector<128x128xbf16>
    %cst_91 = arith.constant dense<0.000000e+00> : vector<256x128xf32>
    %97 = tpu.matmul %94, %96, %cst_91 {dimension_numbers = #tpu.dot_dimension_numbers<[1], [0], [0], [1], [0, 0, 1, 1], [], []>} : vector<256x128xbf16>, vector<128x128xbf16>, vector<256x128xf32> -> vector<256x128xf32>
    %98 = arith.addf %91, %97 : vector<256x128xf32>
    %c0_92 = arith.constant 0 : index
    %c8_93 = arith.constant 8 : index
    %c0_94 = arith.constant 0 : index
    %99 = vector.load %arg10[%c0_92, %c8_93, %c0_94] : memref<18x32x128xf32, #tpu.memory_space<vmem>>, vector<16x16x128xf32>
    %100 = arith.truncf %99 : vector<16x16x128xf32> to vector<16x16x128xbf16>
    %101 = vector.shape_cast %100 : vector<16x16x128xbf16> to vector<256x128xbf16>
    %c1_95 = arith.constant 1 : index
    %c0_96 = arith.constant 0 : index
    %c0_97 = arith.constant 0 : index
    %102 = vector.load %arg7[%c1_95, %c0_96, %c0_97] : memref<9x128x128xbf16, #tpu.memory_space<vmem>>, vector<1x128x128xbf16>
    %103 = vector.shape_cast %102 : vector<1x128x128xbf16> to vector<128x128xbf16>
    %cst_98 = arith.constant dense<0.000000e+00> : vector<256x128xf32>
    %104 = tpu.matmul %101, %103, %cst_98 {dimension_numbers = #tpu.dot_dimension_numbers<[1], [0], [0], [1], [0, 0, 1, 1], [], []>} : vector<256x128xbf16>, vector<128x128xbf16>, vector<256x128xf32> -> vector<256x128xf32>
    %105 = arith.addf %98, %104 : vector<256x128xf32>
    %c0_99 = arith.constant 0 : index
    %c9_100 = arith.constant 9 : index
    %c0_101 = arith.constant 0 : index
    %106 = vector.load %arg10[%c0_99, %c9_100, %c0_101] : memref<18x32x128xf32, #tpu.memory_space<vmem>>, vector<16x16x128xf32>
    %107 = arith.truncf %106 : vector<16x16x128xf32> to vector<16x16x128xbf16>
    %108 = vector.shape_cast %107 : vector<16x16x128xbf16> to vector<256x128xbf16>
    %c2_102 = arith.constant 2 : index
    %c0_103 = arith.constant 0 : index
    %c0_104 = arith.constant 0 : index
    %109 = vector.load %arg7[%c2_102, %c0_103, %c0_104] : memref<9x128x128xbf16, #tpu.memory_space<vmem>>, vector<1x128x128xbf16>
    %110 = vector.shape_cast %109 : vector<1x128x128xbf16> to vector<128x128xbf16>
    %cst_105 = arith.constant dense<0.000000e+00> : vector<256x128xf32>
    %111 = tpu.matmul %108, %110, %cst_105 {dimension_numbers = #tpu.dot_dimension_numbers<[1], [0], [0], [1], [0, 0, 1, 1], [], []>} : vector<256x128xbf16>, vector<128x128xbf16>, vector<256x128xf32> -> vector<256x128xf32>
    %112 = arith.addf %105, %111 : vector<256x128xf32>
    %c1_106 = arith.constant 1 : index
    %c7_107 = arith.constant 7 : index
    %c0_108 = arith.constant 0 : index
    %113 = vector.load %arg10[%c1_106, %c7_107, %c0_108] : memref<18x32x128xf32, #tpu.memory_space<vmem>>, vector<16x16x128xf32>
    %114 = arith.truncf %113 : vector<16x16x128xf32> to vector<16x16x128xbf16>
    %115 = vector.shape_cast %114 : vector<16x16x128xbf16> to vector<256x128xbf16>
    %c3_109 = arith.constant 3 : index
    %c0_110 = arith.constant 0 : index
    %c0_111 = arith.constant 0 : index
    %116 = vector.load %arg7[%c3_109, %c0_110, %c0_111] : memref<9x128x128xbf16, #tpu.memory_space<vmem>>, vector<1x128x128xbf16>
    %117 = vector.shape_cast %116 : vector<1x128x128xbf16> to vector<128x128xbf16>
    %cst_112 = arith.constant dense<0.000000e+00> : vector<256x128xf32>
    %118 = tpu.matmul %115, %117, %cst_112 {dimension_numbers = #tpu.dot_dimension_numbers<[1], [0], [0], [1], [0, 0, 1, 1], [], []>} : vector<256x128xbf16>, vector<128x128xbf16>, vector<256x128xf32> -> vector<256x128xf32>
    %119 = arith.addf %112, %118 : vector<256x128xf32>
    %c1_113 = arith.constant 1 : index
    %c8_114 = arith.constant 8 : index
    %c0_115 = arith.constant 0 : index
    %120 = vector.load %arg10[%c1_113, %c8_114, %c0_115] : memref<18x32x128xf32, #tpu.memory_space<vmem>>, vector<16x16x128xf32>
    %121 = arith.truncf %120 : vector<16x16x128xf32> to vector<16x16x128xbf16>
    %122 = vector.shape_cast %121 : vector<16x16x128xbf16> to vector<256x128xbf16>
    %c4_116 = arith.constant 4 : index
    %c0_117 = arith.constant 0 : index
    %c0_118 = arith.constant 0 : index
    %123 = vector.load %arg7[%c4_116, %c0_117, %c0_118] : memref<9x128x128xbf16, #tpu.memory_space<vmem>>, vector<1x128x128xbf16>
    %124 = vector.shape_cast %123 : vector<1x128x128xbf16> to vector<128x128xbf16>
    %cst_119 = arith.constant dense<0.000000e+00> : vector<256x128xf32>
    %125 = tpu.matmul %122, %124, %cst_119 {dimension_numbers = #tpu.dot_dimension_numbers<[1], [0], [0], [1], [0, 0, 1, 1], [], []>} : vector<256x128xbf16>, vector<128x128xbf16>, vector<256x128xf32> -> vector<256x128xf32>
    %126 = arith.addf %119, %125 : vector<256x128xf32>
    %c1_120 = arith.constant 1 : index
    %c9_121 = arith.constant 9 : index
    %c0_122 = arith.constant 0 : index
    %127 = vector.load %arg10[%c1_120, %c9_121, %c0_122] : memref<18x32x128xf32, #tpu.memory_space<vmem>>, vector<16x16x128xf32>
    %128 = arith.truncf %127 : vector<16x16x128xf32> to vector<16x16x128xbf16>
    %129 = vector.shape_cast %128 : vector<16x16x128xbf16> to vector<256x128xbf16>
    %c5_123 = arith.constant 5 : index
    %c0_124 = arith.constant 0 : index
    %c0_125 = arith.constant 0 : index
    %130 = vector.load %arg7[%c5_123, %c0_124, %c0_125] : memref<9x128x128xbf16, #tpu.memory_space<vmem>>, vector<1x128x128xbf16>
    %131 = vector.shape_cast %130 : vector<1x128x128xbf16> to vector<128x128xbf16>
    %cst_126 = arith.constant dense<0.000000e+00> : vector<256x128xf32>
    %132 = tpu.matmul %129, %131, %cst_126 {dimension_numbers = #tpu.dot_dimension_numbers<[1], [0], [0], [1], [0, 0, 1, 1], [], []>} : vector<256x128xbf16>, vector<128x128xbf16>, vector<256x128xf32> -> vector<256x128xf32>
    %133 = arith.addf %126, %132 : vector<256x128xf32>
    %c2_127 = arith.constant 2 : index
    %c7_128 = arith.constant 7 : index
    %c0_129 = arith.constant 0 : index
    %134 = vector.load %arg10[%c2_127, %c7_128, %c0_129] : memref<18x32x128xf32, #tpu.memory_space<vmem>>, vector<16x16x128xf32>
    %135 = arith.truncf %134 : vector<16x16x128xf32> to vector<16x16x128xbf16>
    %136 = vector.shape_cast %135 : vector<16x16x128xbf16> to vector<256x128xbf16>
    %c6_130 = arith.constant 6 : index
    %c0_131 = arith.constant 0 : index
    %c0_132 = arith.constant 0 : index
    %137 = vector.load %arg7[%c6_130, %c0_131, %c0_132] : memref<9x128x128xbf16, #tpu.memory_space<vmem>>, vector<1x128x128xbf16>
    %138 = vector.shape_cast %137 : vector<1x128x128xbf16> to vector<128x128xbf16>
    %cst_133 = arith.constant dense<0.000000e+00> : vector<256x128xf32>
    %139 = tpu.matmul %136, %138, %cst_133 {dimension_numbers = #tpu.dot_dimension_numbers<[1], [0], [0], [1], [0, 0, 1, 1], [], []>} : vector<256x128xbf16>, vector<128x128xbf16>, vector<256x128xf32> -> vector<256x128xf32>
    %140 = arith.addf %133, %139 : vector<256x128xf32>
    %c2_134 = arith.constant 2 : index
    %c8_135 = arith.constant 8 : index
    %c0_136 = arith.constant 0 : index
    %141 = vector.load %arg10[%c2_134, %c8_135, %c0_136] : memref<18x32x128xf32, #tpu.memory_space<vmem>>, vector<16x16x128xf32>
    %142 = arith.truncf %141 : vector<16x16x128xf32> to vector<16x16x128xbf16>
    %143 = vector.shape_cast %142 : vector<16x16x128xbf16> to vector<256x128xbf16>
    %c7_137 = arith.constant 7 : index
    %c0_138 = arith.constant 0 : index
    %c0_139 = arith.constant 0 : index
    %144 = vector.load %arg7[%c7_137, %c0_138, %c0_139] : memref<9x128x128xbf16, #tpu.memory_space<vmem>>, vector<1x128x128xbf16>
    %145 = vector.shape_cast %144 : vector<1x128x128xbf16> to vector<128x128xbf16>
    %cst_140 = arith.constant dense<0.000000e+00> : vector<256x128xf32>
    %146 = tpu.matmul %143, %145, %cst_140 {dimension_numbers = #tpu.dot_dimension_numbers<[1], [0], [0], [1], [0, 0, 1, 1], [], []>} : vector<256x128xbf16>, vector<128x128xbf16>, vector<256x128xf32> -> vector<256x128xf32>
    %147 = arith.addf %140, %146 : vector<256x128xf32>
    %c2_141 = arith.constant 2 : index
    %c9_142 = arith.constant 9 : index
    %c0_143 = arith.constant 0 : index
    %148 = vector.load %arg10[%c2_141, %c9_142, %c0_143] : memref<18x32x128xf32, #tpu.memory_space<vmem>>, vector<16x16x128xf32>
    %149 = arith.truncf %148 : vector<16x16x128xf32> to vector<16x16x128xbf16>
    %150 = vector.shape_cast %149 : vector<16x16x128xbf16> to vector<256x128xbf16>
    %c8_144 = arith.constant 8 : index
    %c0_145 = arith.constant 0 : index
    %c0_146 = arith.constant 0 : index
    %151 = vector.load %arg7[%c8_144, %c0_145, %c0_146] : memref<9x128x128xbf16, #tpu.memory_space<vmem>>, vector<1x128x128xbf16>
    %152 = vector.shape_cast %151 : vector<1x128x128xbf16> to vector<128x128xbf16>
    %cst_147 = arith.constant dense<0.000000e+00> : vector<256x128xf32>
    %153 = tpu.matmul %150, %152, %cst_147 {dimension_numbers = #tpu.dot_dimension_numbers<[1], [0], [0], [1], [0, 0, 1, 1], [], []>} : vector<256x128xbf16>, vector<128x128xbf16>, vector<256x128xf32> -> vector<256x128xf32>
    %154 = arith.addf %147, %153 : vector<256x128xf32>
    %c0_148 = arith.constant 0 : index
    %c0_149 = arith.constant 0 : index
    %155 = vector.load %arg5[%c0_148, %c0_149] : memref<1x128xf32, #tpu.memory_space<vmem>>, vector<1x128xf32>
    %156 = vector.broadcast %155 : vector<1x128xf32> to vector<256x128xf32>
    %157 = arith.mulf %154, %156 : vector<256x128xf32>
    %c0_150 = arith.constant 0 : index
    %c0_151 = arith.constant 0 : index
    %158 = vector.load %arg6[%c0_150, %c0_151] : memref<1x128xf32, #tpu.memory_space<vmem>>, vector<1x128xf32>
    %159 = vector.broadcast %158 : vector<1x128xf32> to vector<256x128xf32>
    %160 = arith.addf %157, %159 : vector<256x128xf32>
    %c0_152 = arith.constant 0 : index
    %c1_153 = arith.constant 1 : index
    %c8_154 = arith.constant 8 : index
    %c0_155 = arith.constant 0 : index
    %161 = vector.load %arg1[%c0_152, %c1_153, %c8_154, %c0_155] : memref<1x18x32x128xf32, #tpu.memory_space<vmem>>, vector<1x16x16x128xf32>
    %162 = vector.shape_cast %161 : vector<1x16x16x128xf32> to vector<16x16x128xf32>
    %163 = vector.shape_cast %162 : vector<16x16x128xf32> to vector<256x128xf32>
    %164 = arith.addf %160, %163 : vector<256x128xf32>
    %165 = vector.shape_cast %164 : vector<256x128xf32> to vector<16x16x128xf32>
    %c0_156 = arith.constant 0 : index
    %c0_157 = arith.constant 0 : index
    %c0_158 = arith.constant 0 : index
    %c0_159 = arith.constant 0 : index
    %166 = vector.load %arg9[%c0_156, %c0_157, %c0_158, %c0_159] : memref<1x16x16x128xf32, #tpu.memory_space<vmem>>, vector<1x16x16x128xf32>
    %167 = vector.shape_cast %166 : vector<1x16x16x128xf32> to vector<16x16x128xf32>
    %168 = vector.shape_cast %165 : vector<16x16x128xf32> to vector<1x16x16x128xf32>
    tpu.vector_store %arg9[%c0_156, %c0_157, %c0_158, %c0_159], %168 {strides = array<i32>} : memref<1x16x16x128xf32, #tpu.memory_space<vmem>>, vector<1x16x16x128xf32>,
    %cst_160 = arith.constant 0.000000e+00 : f32
    %169 = vector.broadcast %cst_160 : f32 to vector<256x128xf32>
    %170 = arith.maximumf %164, %169 : vector<256x128xf32>
    %171 = vector.shape_cast %170 : vector<256x128xf32> to vector<16x16x128xf32>
    %c0_161 = arith.constant 0 : index
    %c0_162 = arith.constant 0 : index
    %c0_163 = arith.constant 0 : index
    %c0_164 = arith.constant 0 : index
    %172 = vector.load %arg8[%c0_161, %c0_162, %c0_163, %c0_164] : memref<1x16x16x128xf32, #tpu.memory_space<vmem>>, vector<1x16x16x128xf32>
    %173 = vector.shape_cast %172 : vector<1x16x16x128xf32> to vector<16x16x128xf32>
    %174 = vector.shape_cast %171 : vector<16x16x128xf32> to vector<1x16x16x128xf32>
    tpu.vector_store %arg8[%c0_161, %c0_162, %c0_163, %c0_164], %174 {strides = array<i32>} : memref<1x16x16x128xf32, #tpu.memory_space<vmem>>, vector<1x16x16x128xf32>,
    return
  }
  func.func @transform_0(%arg0: i32) -> (i32, i32, i32, i32) {
    %c0_i32 = arith.constant 0 : i32
    %c0_i32_0 = arith.constant 0 : i32
    %c0_i32_1 = arith.constant 0 : i32
    %c0_i32_2 = arith.constant 0 : i32
    return %arg0, %c0_i32, %c0_i32_0, %c0_i32_1 : i32, i32, i32, i32
  }
  func.func @transform_1(%arg0: i32) -> (i32, i32) {
    %c0_i32 = arith.constant 0 : i32
    %c0_i32_0 = arith.constant 0 : i32
    %c0_i32_1 = arith.constant 0 : i32
    return %c0_i32, %c0_i32_0 : i32, i32
  }
  func.func @transform_2(%arg0: i32) -> (i32, i32) {
    %c0_i32 = arith.constant 0 : i32
    %c0_i32_0 = arith.constant 0 : i32
    %c0_i32_1 = arith.constant 0 : i32
    return %c0_i32, %c0_i32_0 : i32, i32
  }
  func.func @transform_3(%arg0: i32) -> (i32, i32, i32) {
    %c0_i32 = arith.constant 0 : i32
    %c0_i32_0 = arith.constant 0 : i32
    %c0_i32_1 = arith.constant 0 : i32
    %c0_i32_2 = arith.constant 0 : i32
    return %c0_i32, %c0_i32_0, %c0_i32_1 : i32, i32, i32
  }
  func.func @transform_4(%arg0: i32) -> (i32, i32) {
    %c0_i32 = arith.constant 0 : i32
    %c0_i32_0 = arith.constant 0 : i32
    %c0_i32_1 = arith.constant 0 : i32
    return %c0_i32, %c0_i32_0 : i32, i32
  }
  func.func @transform_5(%arg0: i32) -> (i32, i32) {
    %c0_i32 = arith.constant 0 : i32
    %c0_i32_0 = arith.constant 0 : i32
    %c0_i32_1 = arith.constant 0 : i32
    return %c0_i32, %c0_i32_0 : i32, i32
  }
  func.func @transform_6(%arg0: i32) -> (i32, i32, i32) {
    %c0_i32 = arith.constant 0 : i32
    %c0_i32_0 = arith.constant 0 : i32
    %c0_i32_1 = arith.constant 0 : i32
    %c0_i32_2 = arith.constant 0 : i32
    return %c0_i32, %c0_i32_0, %c0_i32_1 : i32, i32, i32
  }
  func.func @transform_7(%arg0: i32) -> (i32, i32, i32, i32) {
    %c0_i32 = arith.constant 0 : i32
    %c0_i32_0 = arith.constant 0 : i32
    %c0_i32_1 = arith.constant 0 : i32
    %c0_i32_2 = arith.constant 0 : i32
    return %arg0, %c0_i32, %c0_i32_0, %c0_i32_1 : i32, i32, i32, i32
  }
  func.func @transform_8(%arg0: i32) -> (i32, i32, i32, i32) {
    %c0_i32 = arith.constant 0 : i32
    %c0_i32_0 = arith.constant 0 : i32
    %c0_i32_1 = arith.constant 0 : i32
    %c0_i32_2 = arith.constant 0 : i32
    return %arg0, %c0_i32, %c0_i32_0, %c0_i32_1 : i32, i32, i32, i32
  }
}

</mosaic_0001>

<bundles_post_ra>
// kernel: basicblock_forward.1
= control target key start
LH: loop header
LB: loop body
LE: loop exit
PB: predicated region body
PF: predicated region fallthrough
CT: control target
= control target key end

     0   :  { %s8363_s27 = smov 0   ;;  %s10921_s0 = inlined_call_operand.vmem [shape: f32[2,18,32,128], index: 0, kind: input, shape index: {}]   ;;  %s10922_s1 = inlined_call_operand.vmem [shape: f32[1,128], index: 1, kind: input, shape index: {}]   ;;  %s10923_s2 = inlined_call_operand.vmem [shape: f32[1,128], index: 2, kind: input, shape index: {}]   ;;  %s10924_s3 = inlined_call_operand.vmem [shape: bf16[9,128,128], index: 3, kind: input, shape index: {}]   ;;  %s10925_s4 = inlined_call_operand.vmem [shape: f32[1,128], index: 4, kind: input, shape index: {}]   ;;  %s10926_s5 = inlined_call_operand.vmem [shape: f32[1,128], index: 5, kind: input, shape index: {}]   ;;  %s10927_s6 = inlined_call_operand.vmem [shape: bf16[9,128,128], index: 6, kind: input, shape index: {}]   ;;  %s10928_s7 = inlined_call_operand.vmem [shape: f32[2,16,16,128], index: 7, kind: output, shape index: {0}]   ;;  %s10929_s8 = inlined_call_operand.vmem [shape: f32[2,16,16,128], index: 8, kind: output, shape index: {1}]  }
   0x1 LB: > { %s6215_s28 = sadd.s32 4294967295, %s8314_s27   ;;  %p6219_p0 = scmp.ge.s32.totalorder %s8314_s27, 1  ;;  %s8314_s27 = sphi %s8363_s27, %s19_s27  }
   0x2   : > { %p265_p1 = scmp.lt.s32.totalorder %s8314_s27, 3 }
   0x4   : > { %p266_p2 = pnand %p6219_p0, %p265_p1 }
   0x6   : > { %269 = sbr.rel (%p266_p2) target bundleno = 1037 (0x40d), region = 48 }
   0xb   : > { %v8163_v0 = vld [vmem:[%s10924_s3 + $0x78] sm:$0xff]   ;;  %p304_p3 = scmp.lt.s32.totalorder %s6215_s28, 1  ;;  %v8165_v2 = vld [vmem:[%s10924_s3 + $0x70] sm:$0xff]   ;;  %v8167_v4 = vld [vmem:[%s10924_s3 + $0x68] sm:$0xff]  }
   0xc   : > { %v8164_v1 = vld [vmem:[%s10924_s3 + $0x38] sm:$0xff]   ;;  %7289 = vmatprep.subr.bf16.mxu0 %v8163_v0  ;;  %v8166_v3 = vld [vmem:[%s10924_s3 + $0x30] sm:$0xff]   ;;  %v8168_v5 = vld [vmem:[%s10924_s3 + $0x28] sm:$0xff]  }
   0xd   : > { %7337 = vmatprep.subr.bf16.mxu1 %v8164_v1  ;;  %7290 = vmatpush3.bf16.msra.mxu0 %v8163_v0  ;;  %s11199_s28 = smov (!%p304_p3, %s6215_s28), 1  ;;  %v8169_v6 = vld [vmem:[%s10924_s3 + $0x60] sm:$0xff]   ;;  %v8171_v8 = vld [vmem:[%s10924_s3 + $0x58] sm:$0xff]   ;;  %v8173_v10 = vld [vmem:[%s10924_s3 + $0x50] sm:$0xff]  }
   0xe   : > { %7338 = vmatpush3.bf16.msra.mxu1 %v8164_v1  ;;  %7291 = vmatprep.subr.bf16.mxu0 %v8165_v2  ;;  %v8170_v7 = vld [vmem:[%s10924_s3 + $0x20] sm:$0xff]   ;;  %s8153_s23 = smul.u32 576, %s11199_s28  ;;  %v8172_v9 = vld [vmem:[%s10924_s3 + $0x18] sm:$0xff]   ;;  %v8174_v14 = vld [vmem:[%s10924_s3 + $0x10] sm:$0xff]   ;;  %s6855_s21 = sshll.u32 %s11199_s28, 8 }
   0xf   : > { %7339 = vmatprep.subr.bf16.mxu1 %v8166_v3  ;;  %v8175_v18 = vld [vmem:[%s10924_s3 + $0x48] sm:$0xff]   ;;  %v8177_v20 = vld [vmem:[%s10924_s3 + $0x40] sm:$0xff]   ;;  %v8179_v26 = vld [vmem:[%s10924_s3 + $0xb8] sm:$0xff]   ;;  %s10647_s26 = scalar_lea.vmem %s10928_s7, %s6855_s21 }
  0x10   : > { %s8407_s10 = scalar_lea.vmem %s10921_s0, %s8153_s23  ;;  %v8176_v19 = vld [vmem:[%s10924_s3 + $0x8] sm:$0xff]   ;;  %v8178_v21 = vld [vmem:[%s10924_s3] sm:$0xff]   ;;  %v8180_v37 = vld [vmem:[%s10924_s3 + $0xb0] sm:$0xff]   ;;  %s10634_s23 = scalar_lea.vmem %s10929_s8, %s6855_s21 }
  0x11   : > { %7292 = vmatpush3.bf16.msra.mxu0 %v8165_v2  ;;  %v384_v11 = vld [vmem:[%s8407_s10 + $0x8] sm:$0xff]  ;;  %v385_v12 = vld [vmem:[%s8407_s10 + $0x10] sm:$0xff]  ;;  %v8184_v41 = vld [vmem:[%s10924_s3 + $0xf8] sm:$0xff]  }
  0x12   : > { %7340 = vmatpush3.bf16.msra.mxu1 %v8166_v3  ;;  %7293 = vmatprep.subr.bf16.mxu0 %v8167_v4  ;;  %v320_v13 = vld [vmem:[%s8407_s10 + $0x7] sm:$0xff]  ;;  %v416_v15 = vpack.c.bf16 %v385_v12, %v384_v11  ;;  %v321_v16 = vld [vmem:[%s8407_s10 + $0xf] sm:$0xff]  ;;  %v8183_v62 = vld [vmem:[%s10924_s3 + $0x98] sm:$0xff]  }
  0x13   : > { %7341 = vmatprep.subr.bf16.mxu1 %v8168_v5  ;;  %v352_v17 = vpack.c.bf16 %v321_v16, %v320_v13  ;;  %v386_v22 = vld [vmem:[%s8407_s10 + $0x28] sm:$0xff]  ;;  %v387_v23 = vld [vmem:[%s8407_s10 + $0x30] sm:$0xff]  ;;  %v8182_v51 = vld [vmem:[%s10924_s3 + $0xa0] sm:$0xff]  }
  0x14   : > { %7305 = vmatprep.mubr.bf16.mxu0 %v416_v15  ;;  %v322_v24 = vld [vmem:[%s8407_s10 + $0x27] sm:$0xff]  ;;  %v323_v25 = vld [vmem:[%s8407_s10 + $0x2f] sm:$0xff]  ;;  %v8442_v31 = vpack.c.bf16 %v387_v23, %v386_v22 }
  0x15   : > { %7294 = vmatpush3.bf16.msra.mxu0 %v8167_v4  ;;  %7353 = vmatprep.mubr.bf16.mxu1 %v352_v17  ;;  %v388_v27 = vld [vmem:[%s8407_s10 + $0x48] sm:$0xff]  ;;  %v389_v28 = vld [vmem:[%s8407_s10 + $0x50] sm:$0xff]  ;;  %v8444_v32 = vpack.c.bf16 %v323_v25, %v322_v24  ;;  %v8188_v59 = vld [vmem:[%s10924_s3 + $0xe0] sm:$0xff]  }
  0x16   : > { %7342 = vmatpush3.bf16.msra.mxu1 %v8168_v5  ;;  %7295 = vmatprep.subr.bf16.mxu0 %v8169_v6  ;;  %v324_v29 = vld [vmem:[%s8407_s10 + $0x47] sm:$0xff]  ;;  %v325_v30 = vld [vmem:[%s8407_s10 + $0x4f] sm:$0xff]  ;;  %v8446_v33 = vpack.c.bf16 %v389_v28, %v388_v27 }
  0x17   : > { %7343 = vmatprep.subr.bf16.mxu1 %v8170_v7  ;;  %v8448_v34 = vpack.c.bf16 %v325_v30, %v324_v29  ;;  %v390_v35 = vld [vmem:[%s8407_s10 + $0x68] sm:$0xff]  ;;  %v391_v36 = vld [vmem:[%s8407_s10 + $0x70] sm:$0xff]  ;;  %v8194_v25 = vld [vmem:[%s10924_s3 + $0xc0] sm:$0xff]  }
  0x18   : > { %v326_v38 = vld [vmem:[%s8407_s10 + $0x67] sm:$0xff]  ;;  %v327_v39 = vld [vmem:[%s8407_s10 + $0x6f] sm:$0xff]  ;;  %v8474_v47 = vpack.c.bf16 %v391_v36, %v390_v35  ;;  %v8570_v30 = vld [vmem:[%s10924_s3 + $0x138] sm:$0xff]  }
  0x19   : > { %7296 = vmatpush3.bf16.msra.mxu0 %v8169_v6  ;;  %v392_v40 = vld [vmem:[%s8407_s10 + $0x88] sm:$0xff]  ;;  %v393_v42 = vld [vmem:[%s8407_s10 + $0x90] sm:$0xff]  ;;  %v8476_v48 = vpack.c.bf16 %v327_v39, %v326_v38  ;;  %v8190_v6 = vld [vmem:[%s10924_s3 + $0xd8] sm:$0xff]  }
  0x1a   : > { %7344 = vmatpush3.bf16.msra.mxu1 %v8170_v7  ;;  %7297 = vmatprep.subr.bf16.mxu0 %v8171_v8  ;;  %v8181_v43 = vld [vmem:[%s10924_s3 + $0xa8] sm:$0xff]   ;;  %v8185_v44 = vld [vmem:[%s10924_s3 + $0xf0] sm:$0xff]   ;;  %v8478_v49 = vpack.c.bf16 %v393_v42, %v392_v40 }
  0x1b   : > { %7345 = vmatprep.subr.bf16.mxu1 %v8172_v9  ;;  %v328_v45 = vld [vmem:[%s8407_s10 + $0x87] sm:$0xff]  ;;  %v329_v46 = vld [vmem:[%s8407_s10 + $0x8f] sm:$0xff] }
  0x1c   : > { %v8480_v50 = vpack.c.bf16 %v329_v46, %v328_v45  ;;  %v394_v52 = vld [vmem:[%s8407_s10 + $0xa8] sm:$0xff]  ;;  %v395_v54 = vld [vmem:[%s8407_s10 + $0xb0] sm:$0xff] }
  0x1d   : > { %7298 = vmatpush3.bf16.msra.mxu0 %v8171_v8  ;;  %v8187_v53 = vld [vmem:[%s10924_s3 + $0xe8] sm:$0xff]   ;;  %v397_v58 = vld [vmem:[%s8407_s10 + $0xd0] sm:$0xff]  ;;  %v8506_v63 = vpack.c.bf16 %v395_v54, %v394_v52 }
  0x1e   : > { %7346 = vmatpush3.bf16.msra.mxu1 %v8172_v9  ;;  %7299 = vmatprep.subr.bf16.mxu0 %v8173_v10  ;;  %v330_v55 = vld [vmem:[%s8407_s10 + $0xa7] sm:$0xff]  ;;  %v331_v56 = vld [vmem:[%s8407_s10 + $0xaf] sm:$0xff] }
  0x1f   : > { %7347 = vmatprep.subr.bf16.mxu1 %v8174_v14  ;;  %v396_v57 = vld [vmem:[%s8407_s10 + $0xc8] sm:$0xff]  ;;  %v8508_v0 = vpack.c.bf16 %v331_v56, %v330_v55  ;;  %v399_v4 = vld [vmem:[%s8407_s10 + $0xf0] sm:$0xff] }
  0x20   : > { %v332_v60 = vld [vmem:[%s8407_s10 + $0xc7] sm:$0xff]  ;;  %v333_v61 = vld [vmem:[%s8407_s10 + $0xcf] sm:$0xff]  ;;  %v8510_v1 = vpack.c.bf16 %v397_v58, %v396_v57 }
  0x21   : > { %7300 = vmatpush3.bf16.msra.mxu0 %v8173_v10  ;;  %v8512_v2 = vpack.c.bf16 %v333_v61, %v332_v60  ;;  %v398_v3 = vld [vmem:[%s8407_s10 + $0xe8] sm:$0xff]  ;;  %v8186_v5 = vld [vmem:[%s10924_s3 + $0x90] sm:$0xff]  }
  0x22   : > { %7348 = vmatpush3.bf16.msra.mxu1 %v8174_v14  ;;  %7301 = vmatprep.subr.bf16.mxu0 %v8175_v18  ;;  %v334_v7 = vld [vmem:[%s8407_s10 + $0xe7] sm:$0xff]  ;;  %v335_v8 = vld [vmem:[%s8407_s10 + $0xef] sm:$0xff]  ;;  %v8538_v15 = vpack.c.bf16 %v399_v4, %v398_v3 }
  0x23   : > { %7349 = vmatprep.subr.bf16.mxu1 %v8176_v19  ;;  %v400_v9 = vld [vmem:[%s8407_s10 + $0x108] sm:$0xff]  ;;  %v8191_v10 = vld [vmem:[%s10924_s3 + $0xd0] sm:$0xff]   ;;  %v8540_v16 = vpack.c.bf16 %v335_v8, %v334_v7 }
  0x24   : > { %v401_v11 = vld [vmem:[%s8407_s10 + $0x110] sm:$0xff]  ;;  %v336_v12 = vld [vmem:[%s8407_s10 + $0x107] sm:$0xff] }
  0x25   : > { %7302 = vmatpush3.bf16.msra.mxu0 %v8175_v18  ;;  %v337_v13 = vld [vmem:[%s8407_s10 + $0x10f] sm:$0xff]  ;;  %v8542_v17 = vpack.c.bf16 %v401_v11, %v400_v9  ;;  %v338_v23 = vld [vmem:[%s8407_s10 + $0x127] sm:$0xff] }
  0x26   : > { %7350 = vmatpush3.bf16.msra.mxu1 %v8176_v19  ;;  %7303 = vmatprep.subr.bf16.mxu0 %v8177_v20  ;;  %v8189_v14 = vld [vmem:[%s10924_s3 + $0x88] sm:$0xff]   ;;  %v8544_v18 = vpack.c.bf16 %v337_v13, %v336_v12  ;;  %v8192_v19 = vld [vmem:[%s10924_s3 + $0x80] sm:$0xff]   ;;  %v403_v22 = vld [vmem:[%s8407_s10 + $0x130] sm:$0xff] }
  0x27   : > { %7351 = vmatprep.subr.bf16.mxu1 %v8178_v21  ;;  %v339_v24 = vld [vmem:[%s8407_s10 + $0x12f] sm:$0xff]  ;;  %v340_v28 = vld [vmem:[%s8407_s10 + $0x147] sm:$0xff] }
  0x28   : > { %v405_v27 = vld [vmem:[%s8407_s10 + $0x150] sm:$0xff]  ;;  %v8574_v36 = vpack.c.bf16 %v339_v24, %v338_v23  ;;  %v406_v39 = vld [vmem:[%s8407_s10 + $0x168] sm:$0xff] }
  0x29   : > { %7304 = vmatpush3.bf16.msra.mxu0 %v8177_v20  ;;  %v402_v20 = vld [vmem:[%s8407_s10 + $0x128] sm:$0xff]  ;;  %v407_v40 = vld [vmem:[%s8407_s10 + $0x170] sm:$0xff] }
  0x2a   : > { %7352 = vmatpush3.bf16.msra.mxu1 %v8178_v21  ;;  %7385 = vmatprep.subr.bf16.mxu0 %v8179_v26  ;;  %v8193_v21 = vld [vmem:[%s10924_s3 + $0xc8] sm:$0xff]   ;;  %v8572_v35 = vpack.c.bf16 %v403_v22, %v402_v20  ;;  %v409_v45 = vld [vmem:[%s8407_s10 + $0x190] sm:$0xff]  ;;  %v8599_v52 = vpack.c.bf16 %v407_v40, %v406_v39 }
  0x2b   : > { %7433 = vmatprep.subr.bf16.mxu1 %v8184_v41  ;;  %v341_v29 = vld [vmem:[%s8407_s10 + $0x14f] sm:$0xff]  ;;  %v342_v42 = vld [vmem:[%s8407_s10 + $0x167] sm:$0xff] }
  0x2c   : > { %7306 = vmatmul.mubr.bf16.vlgmr.msra.gmra.mxu0 %v8442_v31  ;;  %v8578_v38 = vpack.c.bf16 %v341_v29, %v340_v28  ;;  %v344_v46 = vld [vmem:[%s8407_s10 + $0x187] sm:$0xff]  ;;  %v411_v57 = vld [vmem:[%s8407_s10 + $0x1b0] sm:$0xff] }
  0x2d   : > { %7354 = vmatmul.mubr.bf16.vlgmr.msra.gmra.mxu1 %v8444_v32  ;;  %7386 = vmatpush3.bf16.msra.mxu0 %v8179_v26  ;;  %v404_v26 = vld [vmem:[%s8407_s10 + $0x148] sm:$0xff]  ;;  %v413_v61 = vld [vmem:[%s8407_s10 + $0x1d0] sm:$0xff] }
  0x2e   : > { %7309 = vmatprep.mubr.bf16.mxu0 %v8446_v33  ;;  %7357 = vmatprep.mubr.bf16.mxu1 %v8448_v34  ;;  %v410_v56 = vld [vmem:[%s8407_s10 + $0x1a8] sm:$0xff]  ;;  %v415_v9 = vld [vmem:[%s8407_s10 + $0x1f0] sm:$0xff] }
  0x2f   : > { %7387 = vmatprep.subr.bf16.mxu0 %v8180_v37  ;;  %7434 = vmatpush3.bf16.msra.mxu1 %v8184_v41  ;;  %v8586_v41 = vld [vmem:[%s10924_s3 + $0x178] sm:$0xff]   ;;  %v346_v58 = vld [vmem:[%s8407_s10 + $0x1a7] sm:$0xff]  ;;  %v349_v3 = vld [vmem:[%s8407_s10 + $0x1cf] sm:$0xff]  ;;  %v8619_v4 = vpack.c.bf16 %v411_v57, %v410_v56 }
  0x30   : > { %7435 = vmatprep.subr.bf16.mxu1 %v8185_v44  ;;  %v412_v60 = vld [vmem:[%s8407_s10 + $0x1c8] sm:$0xff]  ;;  %v868_v13 = vld [vmem:[%s8407_s10 + $0x11] sm:$0xff] }
  0x31   : > { %7388 = vmatpush3.bf16.msra.mxu0 %v8180_v37  ;;  %v8576_v37 = vpack.c.bf16 %v405_v27, %v404_v26  ;;  %v414_v8 = vld [vmem:[%s8407_s10 + $0x1e8] sm:$0xff]  ;;  %v870_v22 = vld [vmem:[%s8407_s10 + $0x31] sm:$0xff] }
  0x32   : > { %7389 = vmatprep.subr.bf16.mxu0 %v8181_v43  ;;  %v351_v11 = vld [vmem:[%s8407_s10 + $0x1ef] sm:$0xff]  ;;  %v8199_v56 = vld [vmem:[%s10924_s3 + $0x118] sm:$0xff]  }
  0x33   : > { %7436 = vmatpush3.bf16.msra.mxu1 %v8185_v44  ;;  %v408_v44 = vld [vmem:[%s8407_s10 + $0x188] sm:$0xff]  ;;  %v872_v24 = vld [vmem:[%s8407_s10 + $0x51] sm:$0xff] }
  0x34   : > { %7310 = vmatmul.mubr.bf16.gmra.mxu0 %v8474_v47  ;;  %7437 = vmatprep.subr.bf16.mxu1 %v8187_v53  ;;  %v8603_v54 = vpack.c.bf16 %v409_v45, %v408_v44  ;;  %v867_v12 = vld [vmem:[%s8407_s10 + $0x9] sm:$0xff]  ;;  %v876_v40 = vld [vmem:[%s8407_s10 + $0x91] sm:$0xff] }
  0x35   : > { %7358 = vmatmul.mubr.bf16.gmra.mxu1 %v8476_v48  ;;  %7313 = vmatprep.mubr.bf16.mxu0 %v8478_v49  ;;  %v899_v20 = vpack.c.bf16 %v868_v13, %v867_v12  ;;  %v871_v23 = vld [vmem:[%s8407_s10 + $0x49] sm:$0xff]  ;;  %v878_v45 = vld [vmem:[%s8407_s10 + $0xb1] sm:$0xff] }
  0x36   : > { %7361 = vmatprep.mubr.bf16.mxu1 %v8480_v50  ;;  %7390 = vmatpush3.bf16.msra.mxu0 %v8181_v43  ;;  %v343_v43 = vld [vmem:[%s8407_s10 + $0x16f] sm:$0xff]  ;;  %v8650_v26 = vpack.c.bf16 %v872_v24, %v871_v23  ;;  %v8206_v57 = vld [vmem:[%s10924_s3 + $0x158] sm:$0xff]  }
  0x37   : > { %7391 = vmatprep.subr.bf16.mxu0 %v8182_v51  ;;  %7438 = vmatpush3.bf16.msra.mxu1 %v8187_v53  ;;  %v8601_v53 = vpack.c.bf16 %v343_v43, %v342_v42  ;;  %v8196_v27 = vld [vmem:[%s10924_s3 + $0x130] sm:$0xff]   ;;  %v8197_v42 = vld [vmem:[%s10924_s3 + $0x128] sm:$0xff]   ;;  %v8216_v23 = vld [vmem:[%s10924_s3 + $0x1f8] sm:$0xff]  }
  0x38   : > { %7439 = vmatprep.subr.bf16.mxu1 %v8188_v59  ;;  %v873_v28 = vld [vmem:[%s8407_s10 + $0x69] sm:$0xff]  ;;  %v886_v12 = vld [vmem:[%s8407_s10 + $0x131] sm:$0xff] }
  0x39   : > { %v8201_v29 = vld [vmem:[%s10924_s3 + $0x170] sm:$0xff]  }
  0x3a   : > { %7392 = vmatpush3.bf16.msra.mxu0 %v8182_v51  ;;  %v345_v51 = vld [vmem:[%s8407_s10 + $0x18f] sm:$0xff] }
  0x3b   : > { %7393 = vmatprep.subr.bf16.mxu0 %v8183_v62  ;;  %7440 = vmatpush3.bf16.msra.mxu1 %v8188_v59  ;;  %v8605_v55 = vpack.c.bf16 %v345_v51, %v344_v46  ;;  %v347_v59 = vld [vmem:[%s8407_s10 + $0x1af] sm:$0xff]  ;;  %v8198_v46 = vld [vmem:[%s10924_s3 + $0x120] sm:$0xff]  }
  0x3c   : > { %7314 = vmatmul.mubr.bf16.gmra.mxu0 %v8506_v63  ;;  %7441 = vmatprep.subr.bf16.mxu1 %v8190_v6  ;;  %v875_v39 = vld [vmem:[%s8407_s10 + $0x89] sm:$0xff]  ;;  %v8204_v51 = vld [vmem:[%s10924_s3 + $0x160] sm:$0xff]  }
  0x3d   : > { %7362 = vmatmul.mubr.bf16.gmra.mxu1 %v8508_v0  ;;  %7317 = vmatprep.mubr.bf16.mxu0 %v8510_v1  ;;  %v8676_v43 = vpack.c.bf16 %v876_v40, %v875_v39  ;;  %v877_v44 = vld [vmem:[%s8407_s10 + $0xa9] sm:$0xff] }
  0x3e   : > { %7365 = vmatprep.mubr.bf16.mxu1 %v8512_v2  ;;  %7394 = vmatpush3.bf16.msra.mxu0 %v8183_v62  ;;  %v348_v62 = vld [vmem:[%s8407_s10 + $0x1c7] sm:$0xff] }
  0x3f   : > { %7395 = vmatprep.subr.bf16.mxu0 %v8186_v5  ;;  %7442 = vmatpush3.bf16.msra.mxu1 %v8190_v6  ;;  %v8623_v6 = vpack.c.bf16 %v413_v61, %v412_v60  ;;  %v8625_v7 = vpack.c.bf16 %v349_v3, %v348_v62  ;;  %v882_v60 = vld [vmem:[%s8407_s10 + $0xf1] sm:$0xff]  ;;  %v883_v61 = vld [vmem:[%s8407_s10 + $0x109] sm:$0xff] }
  0x40   : > { %7443 = vmatprep.subr.bf16.mxu1 %v8191_v10  ;;  %v884_v62 = vld [vmem:[%s8407_s10 + $0x111] sm:$0xff]  ;;  %v887_v13 = vld [vmem:[%s8407_s10 + $0x149] sm:$0xff] }
  0x41   : > { %v8207_v3 = vld [vmem:[%s10924_s3 + $0x150] sm:$0xff]  }
  0x42   : > { %7396 = vmatpush3.bf16.msra.mxu0 %v8186_v5  ;;  %v8621_v5 = vpack.c.bf16 %v347_v59, %v346_v58  ;;  %v8698_v58 = vpack.c.bf16 %v878_v45, %v877_v44  ;;  %v881_v59 = vld [vmem:[%s8407_s10 + $0xe9] sm:$0xff] }
  0x43   : > { %7397 = vmatprep.subr.bf16.mxu0 %v8189_v14  ;;  %7444 = vmatpush3.bf16.msra.mxu1 %v8191_v10  ;;  %v350_v10 = vld [vmem:[%s8407_s10 + $0x1e7] sm:$0xff] }
  0x44   : > { %7318 = vmatmul.mubr.bf16.gmra.mxu0 %v8538_v15  ;;  %7445 = vmatprep.subr.bf16.mxu1 %v8193_v21  ;;  %v893_v40 = vld [vmem:[%s8407_s10 + $0x1a9] sm:$0xff] }
  0x45   : > { %7366 = vmatmul.mubr.bf16.gmra.mxu1 %v8540_v16  ;;  %7321 = vmatprep.mubr.bf16.mxu0 %v8542_v17  ;;  %v897_v45 = vld [vmem:[%s8407_s10 + $0x1e9] sm:$0xff] }
  0x46   : > { %7369 = vmatprep.mubr.bf16.mxu1 %v8544_v18  ;;  %7398 = vmatpush3.bf16.msra.mxu0 %v8189_v14  ;;  %v8637_v14 = vpack.c.bf16 %v415_v9, %v414_v8  ;;  %v8205_v8 = vld [vmem:[%s10924_s3 + $0x108] sm:$0xff]  }
  0x47   : > { %7399 = vmatprep.subr.bf16.mxu0 %v8192_v19  ;;  %7446 = vmatpush3.bf16.msra.mxu1 %v8193_v21  ;;  %v869_v21 = vld [vmem:[%s8407_s10 + $0x29] sm:$0xff] }
  0x48   : > { %7447 = vmatprep.subr.bf16.mxu1 %v8194_v25  ;;  %v8209_v9 = vld [vmem:[%s10924_s3 + $0x148] sm:$0xff]  }
  0x4a   : > { %7400 = vmatpush3.bf16.msra.mxu0 %v8192_v19  ;;  %v8639_v19 = vpack.c.bf16 %v351_v11, %v350_v10  ;;  %v8722_v10 = vpack.c.bf16 %v882_v60, %v881_v59  ;;  %v885_v11 = vld [vmem:[%s8407_s10 + $0x129] sm:$0xff] }
  0x4b   : > { %7481 = vmatprep.subr.bf16.mxu0 %v8570_v30  ;;  %7448 = vmatpush3.bf16.msra.mxu1 %v8194_v25  ;;  %v8648_v25 = vpack.c.bf16 %v870_v22, %v869_v21  ;;  %v8210_v21 = vld [vmem:[%s10924_s3 + $0x140] sm:$0xff]   ;;  %v8211_v22 = vld [vmem:[%s10924_s3 + $0x1b8] sm:$0xff]   ;;  %v8746_v24 = vpack.c.bf16 %v886_v12, %v885_v11 }
  0x4c   : > { %7322 = vmatmul.mubr.bf16.gmra.mxu0 %v8572_v35  ;;  %7529 = vmatprep.subr.bf16.mxu1 %v8586_v41  ;;  %v6451_v60 = vld [vmem:[%s8407_s10 + $0x67] sm:$0xff] }
  0x4d   : > { %7370 = vmatmul.mubr.bf16.gmra.mxu1 %v8574_v36  ;;  %7325 = vmatprep.mubr.bf16.mxu0 %v8576_v37 }
  0x4e   : > { %7373 = vmatprep.mubr.bf16.mxu1 %v8578_v38 }
  0x54   : > { %7326 = vmatmul.mubr.bf16.gmra.mxu0 %v8599_v52 }
  0x55   : > { %7374 = vmatmul.mubr.bf16.gmra.mxu1 %v8601_v53  ;;  %7329 = vmatprep.mubr.bf16.mxu0 %v8603_v54 }
  0x56   : > { %7377 = vmatprep.mubr.bf16.mxu1 %v8605_v55 }
  0x5c   : > { %7330 = vmatmul.mubr.bf16.gmra.mxu0 %v8619_v4 }
  0x5d   : > { %7378 = vmatmul.mubr.bf16.gmra.mxu1 %v8621_v5  ;;  %7333 = vmatprep.mubr.bf16.mxu0 %v8623_v6 }
  0x5e   : > { %7381 = vmatprep.mubr.bf16.mxu1 %v8625_v7 }
  0x64   : > { %7334 = vmatmul.mubr.bf16.gmra.mxu0 %v8637_v14 }
  0x65   : > { %7382 = vmatmul.mubr.bf16.gmra.mxu1 %v8639_v19  ;;  %7401 = vmatprep.mubr.bf16.mxu0 %v899_v20  ;;  %v888_v20 = vld [vmem:[%s8407_s10 + $0x151] sm:$0xff] }
  0x66   : > { %7449 = vmatprep.mubr.bf16.mxu1 %v8444_v32  ;;  %v874_v32 = vld [vmem:[%s8407_s10 + $0x71] sm:$0xff] }
  0x6c   : > { %7402 = vmatmul.mubr.bf16.vlgmr.msra.gmra.mxu0 %v8648_v25 }
  0x6d   : > { %7482 = vmatpush3.bf16.msra.mxu0 %v8570_v30  ;;  %7450 = vmatmul.mubr.bf16.vlgmr.msra.gmra.mxu1 %v8448_v34  ;;  %v8203_v34 = vld [vmem:[%s10924_s3 + $0x168] sm:$0xff]   ;;  %v8674_v30 = vpack.c.bf16 %v874_v32, %v873_v28 }
  0x6e   : > { %7405 = vmatprep.mubr.bf16.mxu0 %v8650_v26  ;;  %7483 = vmatprep.subr.bf16.mxu0 %v8196_v27  ;;  %v891_v28 = vld [vmem:[%s8407_s10 + $0x189] sm:$0xff] }
  0x6f   : > { %7453 = vmatprep.mubr.bf16.mxu1 %v8476_v48  ;;  %7530 = vmatpush3.bf16.msra.mxu1 %v8586_v41  ;;  %v879_v48 = vld [vmem:[%s8407_s10 + $0xc9] sm:$0xff]  ;;  %v880_v41 = vld [vmem:[%s8407_s10 + $0xd1] sm:$0xff] }
  0x70   : > { %7531 = vmatprep.subr.bf16.mxu1 %v8201_v29 }
  0x71   : > { %7484 = vmatpush3.bf16.msra.mxu0 %v8196_v27  ;;  %v889_v27 = vld [vmem:[%s8407_s10 + $0x169] sm:$0xff] }
  0x72   : > { %7485 = vmatprep.subr.bf16.mxu0 %v8197_v42 }
  0x73   : > { %7532 = vmatpush3.bf16.msra.mxu1 %v8201_v29  ;;  %v892_v29 = vld [vmem:[%s8407_s10 + $0x191] sm:$0xff] }
  0x74   : > { %7406 = vmatmul.mubr.bf16.gmra.mxu0 %v8674_v30  ;;  %7533 = vmatprep.subr.bf16.mxu1 %v8203_v34  ;;  %v8760_v39 = vpack.c.bf16 %v892_v29, %v891_v28  ;;  %v6457_v28 = vld [vmem:[%s8407_s10 + $0xc7] sm:$0xff]  ;;  %v6458_v29 = vld [vmem:[%s8407_s10 + $0xcf] sm:$0xff] }
  0x75   : > { %7454 = vmatmul.mubr.bf16.gmra.mxu1 %v8480_v50  ;;  %7409 = vmatprep.mubr.bf16.mxu0 %v8676_v43  ;;  %v8700_v50 = vpack.c.bf16 %v880_v41, %v879_v48  ;;  %v6311_v48 = vld [vmem:[%s8407_s10 + $0x207] sm:$0xff] }
  0x76   : > { %7457 = vmatprep.mubr.bf16.mxu1 %v8508_v0  ;;  %7486 = vmatpush3.bf16.msra.mxu0 %v8197_v42  ;;  %v8202_v0 = vld [vmem:[%s10924_s3 + $0x110] sm:$0xff]  }
  0x77   : > { %7487 = vmatprep.subr.bf16.mxu0 %v8198_v46  ;;  %7534 = vmatpush3.bf16.msra.mxu1 %v8203_v34  ;;  %v894_v42 = vld [vmem:[%s8407_s10 + $0x1b1] sm:$0xff]  ;;  %v895_v34 = vld [vmem:[%s8407_s10 + $0x1c9] sm:$0xff] }
  0x78   : > { %7535 = vmatprep.subr.bf16.mxu1 %v8204_v51 }
  0x7a   : > { %7488 = vmatpush3.bf16.msra.mxu0 %v8198_v46  ;;  %v898_v46 = vld [vmem:[%s8407_s10 + $0x1f1] sm:$0xff] }
  0x7b   : > { %7489 = vmatprep.subr.bf16.mxu0 %v8199_v56  ;;  %7536 = vmatpush3.bf16.msra.mxu1 %v8204_v51  ;;  %v8782_v41 = vpack.c.bf16 %v898_v46, %v897_v45  ;;  %v8213_v51 = vld [vmem:[%s10924_s3 + $0x1a8] sm:$0xff]   ;;  %v2129_v46 = vpack.c.bf16 %v6458_v29, %v6457_v28 }
  0x7c   : > { %7410 = vmatmul.mubr.bf16.gmra.mxu0 %v8698_v58  ;;  %7537 = vmatprep.subr.bf16.mxu1 %v8206_v57 }
  0x7d   : > { %7458 = vmatmul.mubr.bf16.gmra.mxu1 %v8512_v2  ;;  %7413 = vmatprep.mubr.bf16.mxu0 %v8700_v50  ;;  %v8724_v2 = vpack.c.bf16 %v884_v62, %v883_v61  ;;  %v6507_v61 = vld [vmem:[%s8407_s10 + $0x68] sm:$0xff]  ;;  %v6508_v62 = vld [vmem:[%s8407_s10 + $0x70] sm:$0xff] }
  0x7e   : > { %7461 = vmatprep.mubr.bf16.mxu1 %v8540_v16  ;;  %7490 = vmatpush3.bf16.msra.mxu0 %v8199_v56  ;;  %v8208_v16 = vld [vmem:[%s10924_s3 + $0x100] sm:$0xff]   ;;  %v8227_v56 = vld [vmem:[%s10924_s3 + $0x238] sm:$0xff]   ;;  %v2432_v11 = vpack.c.bf16 %v6508_v62, %v6507_v61  ;;  %v8232_v61 = vld [vmem:[%s10924_s3 + $0x210] sm:$0xff]  }
  0x7f   : > { %7491 = vmatprep.subr.bf16.mxu0 %v8202_v0  ;;  %7538 = vmatpush3.bf16.msra.mxu1 %v8206_v57  ;;  %v6505_v57 = vld [vmem:[%s8407_s10 + $0x48] sm:$0xff] }
  0x80   : > { %7539 = vmatprep.subr.bf16.mxu1 %v8207_v3 }
  0x82   : > { %7492 = vmatpush3.bf16.msra.mxu0 %v8202_v0  ;;  %v6452_v0 = vld [vmem:[%s8407_s10 + $0x6f] sm:$0xff] }
  0x83   : > { %7493 = vmatprep.subr.bf16.mxu0 %v8205_v8  ;;  %7540 = vmatpush3.bf16.msra.mxu1 %v8207_v3  ;;  %v6453_v3 = vld [vmem:[%s8407_s10 + $0x87] sm:$0xff] }
  0x84   : > { %7414 = vmatmul.mubr.bf16.gmra.mxu0 %v8722_v10  ;;  %7541 = vmatprep.subr.bf16.mxu1 %v8209_v9 }
  0x85   : > { %7462 = vmatmul.mubr.bf16.gmra.mxu1 %v8544_v18  ;;  %7417 = vmatprep.mubr.bf16.mxu0 %v8724_v2  ;;  %v8748_v18 = vpack.c.bf16 %v888_v20, %v887_v13 }
  0x86   : > { %7465 = vmatprep.mubr.bf16.mxu1 %v8574_v36  ;;  %7494 = vmatpush3.bf16.msra.mxu0 %v8205_v8  ;;  %v890_v36 = vld [vmem:[%s8407_s10 + $0x171] sm:$0xff] }
  0x87   : > { %7495 = vmatprep.subr.bf16.mxu0 %v8208_v16  ;;  %7542 = vmatpush3.bf16.msra.mxu1 %v8209_v9  ;;  %v8758_v32 = vpack.c.bf16 %v890_v36, %v889_v27  ;;  %v6454_v8 = vld [vmem:[%s8407_s10 + $0x8f] sm:$0xff]  ;;  %v2126_v9 = vpack.c.bf16 %v6452_v0, %v6451_v60 }
  0x88   : > { %7543 = vmatprep.subr.bf16.mxu1 %v8210_v21  ;;  %v2127_v12 = vpack.c.bf16 %v6454_v8, %v6453_v3 }
  0x8a   : > { %7496 = vmatpush3.bf16.msra.mxu0 %v8208_v16  ;;  %v8228_v16 = vld [vmem:[%s10924_s3 + $0x230] sm:$0xff]  }
  0x8b   : > { %7544 = vmatpush3.bf16.msra.mxu1 %v8210_v21  ;;  %7577 = vmatprep.subr.bf16.mxu0 %v8211_v22  ;;  %v6455_v21 = vld [vmem:[%s8407_s10 + $0xa7] sm:$0xff] }
  0x8c   : > { %7418 = vmatmul.mubr.bf16.gmra.mxu0 %v8746_v24  ;;  %7625 = vmatprep.subr.bf16.mxu1 %v8216_v23 }
  0x8d   : > { %7466 = vmatmul.mubr.bf16.gmra.mxu1 %v8578_v38  ;;  %7421 = vmatprep.mubr.bf16.mxu0 %v8748_v18  ;;  %v896_v38 = vld [vmem:[%s8407_s10 + $0x1d1] sm:$0xff] }
  0x8e   : > { %7469 = vmatprep.mubr.bf16.mxu1 %v8601_v53  ;;  %v8770_v53 = vpack.c.bf16 %v894_v42, %v893_v40  ;;  %v8772_v44 = vpack.c.bf16 %v896_v38, %v895_v34  ;;  %v6513_v40 = vld [vmem:[%s8407_s10 + $0xc8] sm:$0xff]  ;;  %v6514_v42 = vld [vmem:[%s8407_s10 + $0xd0] sm:$0xff] }
  0x94   : > { %7422 = vmatmul.mubr.bf16.gmra.mxu0 %v8758_v32 }
  0x95   : > { %7470 = vmatmul.mubr.bf16.gmra.mxu1 %v8605_v55  ;;  %7425 = vmatprep.mubr.bf16.mxu0 %v8760_v39  ;;  %v6312_v55 = vld [vmem:[%s8407_s10 + $0x20f] sm:$0xff] }
  0x96   : > { %7473 = vmatprep.mubr.bf16.mxu1 %v8621_v5  ;;  %v8784_v5 = vpack.c.bf16 %v6312_v55, %v6311_v48 }
  0x9c   : > { %7426 = vmatmul.mubr.bf16.gmra.mxu0 %v8770_v53 }
  0x9d   : > { %7474 = vmatmul.mubr.bf16.gmra.mxu1 %v8625_v7  ;;  %7429 = vmatprep.mubr.bf16.mxu0 %v8772_v44  ;;  %v8212_v7 = vld [vmem:[%s10924_s3 + $0x1b0] sm:$0xff]  }
  0x9e   : > { %7477 = vmatprep.mubr.bf16.mxu1 %v8639_v19  ;;  %v8217_v19 = vld [vmem:[%s10924_s3 + $0x1f0] sm:$0xff]  }
  0xa4   : > { %7430 = vmatmul.mubr.bf16.gmra.mxu0 %v8782_v41 }
  0xa5   : > { %7478 = vmatmul.mubr.bf16.gmra.mxu1 %v8784_v5  ;;  %7497 = vmatprep.mubr.bf16.mxu0 %v8442_v31  ;;  %v8219_v31 = vld [vmem:[%s10924_s3 + $0x1e8] sm:$0xff]  }
  0xa6   : > { %7545 = vmatprep.mubr.bf16.mxu1 %v8648_v25  ;;  %v8220_v25 = vld [vmem:[%s10924_s3 + $0x1e0] sm:$0xff]  }
  0xac   : > { %7498 = vmatmul.mubr.bf16.vlgmr.msra.gmra.mxu0 %v8446_v33  ;;  %v8214_v33 = vld [vmem:[%s10924_s3 + $0x1a0] sm:$0xff]  }
  0xad   : > { %7578 = vmatpush3.bf16.msra.mxu0 %v8211_v22  ;;  %7546 = vmatmul.mubr.bf16.vlgmr.msra.gmra.mxu1 %v8650_v26  ;;  %v8222_v26 = vld [vmem:[%s10924_s3 + $0x1d8] sm:$0xff]  }
  0xae   : > { %7501 = vmatprep.mubr.bf16.mxu0 %v8474_v47  ;;  %7579 = vmatprep.subr.bf16.mxu0 %v8212_v7  ;;  %v8215_v47 = vld [vmem:[%s10924_s3 + $0x198] sm:$0xff]  }
  0xaf   : > { %7549 = vmatprep.mubr.bf16.mxu1 %v8674_v30  ;;  %7626 = vmatpush3.bf16.msra.mxu1 %v8216_v23  ;;  %v8221_v30 = vld [vmem:[%s10924_s3 + $0x188] sm:$0xff]  }
  0xb0   : > { %7627 = vmatprep.subr.bf16.mxu1 %v8217_v19  ;;  %v6456_v23 = vld [vmem:[%s8407_s10 + $0xaf] sm:$0xff] }
  0xb1   : > { %7580 = vmatpush3.bf16.msra.mxu0 %v8212_v7 }
  0xb2   : > { %7581 = vmatprep.subr.bf16.mxu0 %v8213_v51 }
  0xb3   : > { %7628 = vmatpush3.bf16.msra.mxu1 %v8217_v19  ;;  %v8230_v19 = vld [vmem:[%s10924_s3 + $0x220] sm:$0xff]  }
  0xb4   : > { %7502 = vmatmul.mubr.bf16.gmra.mxu0 %v8478_v49  ;;  %7629 = vmatprep.subr.bf16.mxu1 %v8219_v31  ;;  %v8218_v49 = vld [vmem:[%s10924_s3 + $0x190] sm:$0xff]  }
  0xb5   : > { %7550 = vmatmul.mubr.bf16.gmra.mxu1 %v8676_v43  ;;  %7505 = vmatprep.mubr.bf16.mxu0 %v8506_v63  ;;  %v8223_v63 = vld [vmem:[%s10924_s3 + $0x1d0] sm:$0xff]   ;;  %v8226_v43 = vld [vmem:[%s10924_s3 + $0x1c0] sm:$0xff]  }
  0xb6   : > { %7553 = vmatprep.mubr.bf16.mxu1 %v8698_v58  ;;  %7582 = vmatpush3.bf16.msra.mxu0 %v8213_v51 }
  0xb7   : > { %7583 = vmatprep.subr.bf16.mxu0 %v8214_v33  ;;  %7630 = vmatpush3.bf16.msra.mxu1 %v8219_v31 }
  0xb8   : > { %7631 = vmatprep.subr.bf16.mxu1 %v8220_v25 }
  0xba   : > { %7584 = vmatpush3.bf16.msra.mxu0 %v8214_v33 }
  0xbb   : > { %7585 = vmatprep.subr.bf16.mxu0 %v8215_v47  ;;  %7632 = vmatpush3.bf16.msra.mxu1 %v8220_v25  ;;  %v6459_v25 = vld [vmem:[%s8407_s10 + $0xe7] sm:$0xff] }
  0xbc   : > { %7506 = vmatmul.mubr.bf16.gmra.mxu0 %v8510_v1  ;;  %7633 = vmatprep.subr.bf16.mxu1 %v8222_v26  ;;  %v8225_v1 = vld [vmem:[%s10924_s3 + $0x1c8] sm:$0xff]  }
  0xbd   : > { %7554 = vmatmul.mubr.bf16.gmra.mxu1 %v8700_v50  ;;  %7509 = vmatprep.mubr.bf16.mxu0 %v8538_v15  ;;  %v8224_v15 = vld [vmem:[%s10924_s3 + $0x180] sm:$0xff]  }
  0xbe   : > { %7557 = vmatprep.mubr.bf16.mxu1 %v8722_v10  ;;  %7586 = vmatpush3.bf16.msra.mxu0 %v8215_v47  ;;  %v6509_v10 = vld [vmem:[%s8407_s10 + $0x88] sm:$0xff] }
  0xbf   : > { %7587 = vmatprep.subr.bf16.mxu0 %v8218_v49  ;;  %7634 = vmatpush3.bf16.msra.mxu1 %v8222_v26  ;;  %v6460_v47 = vld [vmem:[%s8407_s10 + $0xef] sm:$0xff] }
  0xc0   : > { %7635 = vmatprep.subr.bf16.mxu1 %v8223_v63  ;;  %v6515_v26 = vld [vmem:[%s8407_s10 + $0xe8] sm:$0xff] }
  0xc2   : > { %7588 = vmatpush3.bf16.msra.mxu0 %v8218_v49 }
  0xc3   : > { %7589 = vmatprep.subr.bf16.mxu0 %v8221_v30  ;;  %7636 = vmatpush3.bf16.msra.mxu1 %v8223_v63 }
  0xc4   : > { %7510 = vmatmul.mubr.bf16.gmra.mxu0 %v8542_v17  ;;  %7637 = vmatprep.subr.bf16.mxu1 %v8225_v1  ;;  %v6367_v17 = vld [vmem:[%s8407_s10 + $0x208] sm:$0xff] }
  0xc5   : > { %7558 = vmatmul.mubr.bf16.gmra.mxu1 %v8724_v2  ;;  %7513 = vmatprep.mubr.bf16.mxu0 %v8572_v35  ;;  %v6368_v35 = vld [vmem:[%s8407_s10 + $0x210] sm:$0xff] }
  0xc6   : > { %7561 = vmatprep.mubr.bf16.mxu1 %v8746_v24  ;;  %7590 = vmatpush3.bf16.msra.mxu0 %v8221_v30  ;;  %v8871_v58 = vpack.c.bf16 %v6368_v35, %v6367_v17  ;;  %v6510_v2 = vld [vmem:[%s8407_s10 + $0x90] sm:$0xff]  ;;  %v6511_v24 = vld [vmem:[%s8407_s10 + $0xa8] sm:$0xff]  ;;  %v8231_v35 = vld [vmem:[%s10924_s3 + $0x218] sm:$0xff]  }
  0xc7   : > { %7591 = vmatprep.subr.bf16.mxu0 %v8224_v15  ;;  %7638 = vmatpush3.bf16.msra.mxu1 %v8225_v1  ;;  %v2433_v13 = vpack.c.bf16 %v6510_v2, %v6509_v10  ;;  %v6516_v30 = vld [vmem:[%s8407_s10 + $0xf0] sm:$0xff]  ;;  %v6461_v1 = vld [vmem:[%s8407_s10 + $0x107] sm:$0xff] }
  0xc8   : > { %7639 = vmatprep.subr.bf16.mxu1 %v8226_v43  ;;  %v6518_v17 = vld [vmem:[%s8407_s10 + $0x110] sm:$0xff]  ;;  %v6519_v2 = vld [vmem:[%s8407_s10 + $0x128] sm:$0xff] }
  0xc9   : > { %v6464_v10 = vld [vmem:[%s8407_s10 + $0x12f] sm:$0xff] }
  0xca   : > { %7592 = vmatpush3.bf16.msra.mxu0 %v8224_v15  ;;  %v6462_v15 = vld [vmem:[%s8407_s10 + $0x10f] sm:$0xff] }
  0xcb   : > { %7640 = vmatpush3.bf16.msra.mxu1 %v8226_v43  ;;  %7673 = vmatprep.subr.bf16.mxu0 %v8227_v56 }
  0xcc   : > { %7514 = vmatmul.mubr.bf16.gmra.mxu0 %v8576_v37  ;;  %v6423_v37 = vld [vmem:[%s8407_s10 + $0x209] sm:$0xff] }
  0xcd   : > { %7562 = vmatmul.mubr.bf16.gmra.mxu1 %v8748_v18  ;;  %7517 = vmatprep.mubr.bf16.mxu0 %v8599_v52  ;;  %v6424_v52 = vld [vmem:[%s8407_s10 + $0x211] sm:$0xff] }
  0xce   : > { %7565 = vmatprep.mubr.bf16.mxu1 %v8758_v32  ;;  %v6512_v18 = vld [vmem:[%s8407_s10 + $0xb0] sm:$0xff]  ;;  %v8229_v32 = vld [vmem:[%s10924_s3 + $0x228] sm:$0xff]  }
  0xcf   : > { %v2434_v45 = vpack.c.bf16 %v6512_v18, %v6511_v24  ;;  %v8233_v24 = vld [vmem:[%s10924_s3 + $0x208] sm:$0xff]  }
  0xd4   : > { %7518 = vmatmul.mubr.bf16.gmra.mxu0 %v8603_v54  ;;  %v6449_v54 = vld [vmem:[%s8407_s10 + $0x47] sm:$0xff] }
  0xd5   : > { %7566 = vmatmul.mubr.bf16.gmra.mxu1 %v8760_v39  ;;  %7521 = vmatprep.mubr.bf16.mxu0 %v8619_v4  ;;  %v6450_v4 = vld [vmem:[%s8407_s10 + $0x4f] sm:$0xff] }
  0xd6   : > { %7569 = vmatprep.mubr.bf16.mxu1 %v8770_v53  ;;  %v2125_v50 = vpack.c.bf16 %v6450_v4, %v6449_v54  ;;  %v2128_v53 = vpack.c.bf16 %v6456_v23, %v6455_v21  ;;  %v2130_v54 = vpack.c.bf16 %v6460_v47, %v6459_v25  ;;  %v6522_v23 = vld [vmem:[%s8407_s10 + $0x150] sm:$0xff]  ;;  %v6469_v47 = vld [vmem:[%s8407_s10 + $0x187] sm:$0xff] }
  0xd7   : > { %v6524_v25 = vld [vmem:[%s8407_s10 + $0x170] sm:$0xff] }
  0xdc   : > { %7522 = vmatmul.mubr.bf16.gmra.mxu0 %v8623_v6  ;;  %v6506_v6 = vld [vmem:[%s8407_s10 + $0x50] sm:$0xff] }
  0xdd   : > { %7570 = vmatmul.mubr.bf16.gmra.mxu1 %v8772_v44  ;;  %7525 = vmatprep.mubr.bf16.mxu0 %v8637_v14  ;;  %v8873_v14 = vpack.c.bf16 %v6424_v52, %v6423_v37  ;;  %v2431_v59 = vpack.c.bf16 %v6506_v6, %v6505_v57  ;;  %v2436_v57 = vpack.c.bf16 %v6516_v30, %v6515_v26  ;;  %v6470_v26 = vld [vmem:[%s8407_s10 + $0x18f] sm:$0xff] }
  0xde   : > { %7573 = vmatprep.mubr.bf16.mxu1 %v8782_v41  ;;  %v2435_v41 = vpack.c.bf16 %v6514_v42, %v6513_v40  ;;  %v2131_v6 = vpack.c.bf16 %v6462_v15, %v6461_v1  ;;  %v6525_v30 = vld [vmem:[%s8407_s10 + $0x188] sm:$0xff]  ;;  %v6526_v1 = vld [vmem:[%s8407_s10 + $0x190] sm:$0xff] }
  0xe4   : > { %7526 = vmatmul.mubr.bf16.gmra.mxu0 %v8871_v58 }
  0xe5   : > { %7574 = vmatmul.mubr.bf16.gmra.mxu1 %v8873_v14  ;;  %7593 = vmatprep.mubr.bf16.mxu0 %v2125_v50 }
  0xe6   : > { %7641 = vmatprep.mubr.bf16.mxu1 %v2431_v59 }
  0xec   : > { %v7307_v20 = vpop.f32.mrf.mxu0  ;;  %7594 = vmatmul.mubr.bf16.vlgmr.msra.gmra.mxu0 %v2126_v9  ;;  %v6463_v9 = vld [vmem:[%s8407_s10 + $0x127] sm:$0xff] }
  0xed   : > { %v7355_v22 = vpop.f32.mrf.mxu1  ;;  %7674 = vmatpush3.bf16.msra.mxu0 %v8227_v56  ;;  %7642 = vmatmul.mubr.bf16.vlgmr.msra.gmra.mxu1 %v2432_v11  ;;  %v6517_v56 = vld [vmem:[%s8407_s10 + $0x108] sm:$0xff]  ;;  %v2132_v28 = vpack.c.bf16 %v6464_v10, %v6463_v9 }
  0xee   : > { %v8892_v27 = vadd.f32 %v7355_v22, %v7307_v20  ;;  %v531_v36 = vpop.f32.mrf.mxu0  ;;  %7597 = vmatprep.mubr.bf16.mxu0 %v2127_v12  ;;  %7675 = vmatprep.subr.bf16.mxu0 %v8228_v16  ;;  %v2437_v60 = vpack.c.bf16 %v6518_v17, %v6517_v56  ;;  %v6466_v20 = vld [vmem:[%s8407_s10 + $0x14f] sm:$0xff] }
  0xef   : > { %v740_v39 = vpop.f32.mrf.mxu1  ;;  %7645 = vmatprep.mubr.bf16.mxu1 %v2433_v13  ;;  %v6465_v13 = vld [vmem:[%s8407_s10 + $0x147] sm:$0xff] }
  0xf0   : > { %v8901_v34 = vadd.f32 %v740_v39, %v531_v36  ;;  %v7308_v38 = vpop.f32.mrf.mxu0  ;;  %v6521_v22 = vld [vmem:[%s8407_s10 + $0x148] sm:$0xff]  ;;  %v2133_v39 = vpack.c.bf16 %v6466_v20, %v6465_v13 }
  0xf1   : > { %v7356_v44 = vpop.f32.mrf.mxu1  ;;  %7676 = vmatpush3.bf16.msra.mxu0 %v8228_v16  ;;  %v6520_v16 = vld [vmem:[%s8407_s10 + $0x130] sm:$0xff]  ;;  %v6529_v20 = vld [vmem:[%s8407_s10 + $0x1c8] sm:$0xff] }
  0xf2   : > { %v8903_v48 = vadd.f32 %v7356_v44, %v7308_v38  ;;  %v534_v55 = vpop.f32.mrf.mxu0  ;;  %7677 = vmatprep.subr.bf16.mxu0 %v8229_v32  ;;  %v2439_v38 = vpack.c.bf16 %v6522_v23, %v6521_v22  ;;  %v8234_v44 = vld [vmem:[%s10924_s3 + $0x200] sm:$0xff]  }
  0xf3   : > { %v743_v7 = vpop.f32.mrf.mxu1 }
  0xf4   : > { %v8908_v51 = vadd.f32 %v743_v7, %v534_v55  ;;  %v7311_v31 = vpop.f32.mrf.mxu0  ;;  %7598 = vmatmul.mubr.bf16.gmra.mxu0 %v2128_v53  ;;  %v6468_v7 = vld [vmem:[%s8407_s10 + $0x16f] sm:$0xff] }
  0xf5   : > { %v7359_v33 = vpop.f32.mrf.mxu1  ;;  %7646 = vmatmul.mubr.bf16.gmra.mxu1 %v2434_v45  ;;  %7601 = vmatprep.mubr.bf16.mxu0 %v2129_v46 }
  0xf6   : > { %v8913_v49 = vadd.f32 %v7359_v33, %v7311_v31  ;;  %v547_v63 = vpop.f32.mrf.mxu0  ;;  %7649 = vmatprep.mubr.bf16.mxu1 %v2435_v41  ;;  %7678 = vmatpush3.bf16.msra.mxu0 %v8229_v32  ;;  %v2438_v32 = vpack.c.bf16 %v6520_v16, %v6519_v2  ;;  %v6467_v41 = vld [vmem:[%s8407_s10 + $0x167] sm:$0xff]  ;;  %v6528_v2 = vld [vmem:[%s8407_s10 + $0x1b0] sm:$0xff] }
  0xf7   : > { %v756_v43 = vpop.f32.mrf.mxu1  ;;  %7679 = vmatprep.subr.bf16.mxu0 %v8230_v19  ;;  %v2134_v56 = vpack.c.bf16 %v6468_v7, %v6467_v41  ;;  %v6474_v16 = vld [vmem:[%s8407_s10 + $0x1cf] sm:$0xff] }
  0xf8   : > { %v8923_v37 = vadd.f32 %v756_v43, %v547_v63  ;;  %v7312_v52 = vpop.f32.mrf.mxu0 }
  0xf9   : > { %v7360_v4 = vpop.f32.mrf.mxu1 }
  0xfa   : > { %v8925_v50 = vadd.f32 %v7360_v4, %v7312_v52  ;;  %v550_v59 = vpop.f32.mrf.mxu0  ;;  %7680 = vmatpush3.bf16.msra.mxu0 %v8230_v19  ;;  %v6523_v19 = vld [vmem:[%s8407_s10 + $0x168] sm:$0xff]  ;;  %v2135_v52 = vpack.c.bf16 %v6470_v26, %v6469_v47 }
  0xfb   : > { %v759_v0 = vpop.f32.mrf.mxu1  ;;  %7681 = vmatprep.subr.bf16.mxu0 %v8231_v35 }
  0xfc   : > { %v8930_v62 = vadd.f32 %v759_v0, %v550_v59  ;;  %v7315_v3 = vpop.f32.mrf.mxu0  ;;  %7602 = vmatmul.mubr.bf16.gmra.mxu0 %v2130_v54 }
  0xfd   : > { %v7363_v8 = vpop.f32.mrf.mxu1  ;;  %7650 = vmatmul.mubr.bf16.gmra.mxu1 %v2436_v57  ;;  %7605 = vmatprep.mubr.bf16.mxu0 %v2131_v6  ;;  %v2441_v57 = vpack.c.bf16 %v6526_v1, %v6525_v30 }
  0xfe   : > { %v8935_v11 = vadd.f32 %v7363_v8, %v7315_v3  ;;  %v563_v12 = vpop.f32.mrf.mxu0  ;;  %7653 = vmatprep.mubr.bf16.mxu1 %v2437_v60  ;;  %7682 = vmatpush3.bf16.msra.mxu0 %v8231_v35  ;;  %v2440_v35 = vpack.c.bf16 %v6524_v25, %v6523_v19  ;;  %v6472_v3 = vld [vmem:[%s8407_s10 + $0x1af] sm:$0xff] }
  0xff   : > { %v772_v21 = vpop.f32.mrf.mxu1  ;;  %7683 = vmatprep.subr.bf16.mxu0 %v8232_v61  ;;  %v6527_v8 = vld [vmem:[%s8407_s10 + $0x1a8] sm:$0xff] }
 0x100   : > { %v8945_v18 = vadd.f32 %v772_v21, %v563_v12  ;;  %v7316_v36 = vpop.f32.mrf.mxu0  ;;  %v6473_v12 = vld [vmem:[%s8407_s10 + $0x1c7] sm:$0xff]  ;;  %v6530_v21 = vld [vmem:[%s8407_s10 + $0x1d0] sm:$0xff] }
 0x101   : > { %v7364_v29 = vpop.f32.mrf.mxu1  ;;  %v6531_v19 = vld [vmem:[%s8407_s10 + $0x1e8] sm:$0xff] }
 0x102   : > { %v8947_v40 = vadd.f32 %v7364_v29, %v7316_v36  ;;  %v566_v42 = vpop.f32.mrf.mxu0  ;;  %7684 = vmatpush3.bf16.msra.mxu0 %v8232_v61  ;;  %v6471_v61 = vld [vmem:[%s8407_s10 + $0x1a7] sm:$0xff]  ;;  %v2137_v29 = vpack.c.bf16 %v6474_v16, %v6473_v12 }
 0x103   : > { %v775_v53 = vpop.f32.mrf.mxu1  ;;  %7685 = vmatprep.subr.bf16.mxu0 %v8233_v24 }
 0x104   : > { %v8952_v45 = vadd.f32 %v775_v53, %v566_v42  ;;  %v7319_v46 = vpop.f32.mrf.mxu0  ;;  %7606 = vmatmul.mubr.bf16.gmra.mxu0 %v2132_v28  ;;  %v2442_v28 = vpack.c.bf16 %v6528_v2, %v6527_v8  ;;  %v2443_v42 = vpack.c.bf16 %v6530_v21, %v6529_v20  ;;  %v6562_v8 = vld [vmem:[%s8407_s10 + $0x51] sm:$0xff] }
 0x105   : > { %v7367_v55 = vpop.f32.mrf.mxu1  ;;  %7654 = vmatmul.mubr.bf16.gmra.mxu1 %v2438_v32  ;;  %7609 = vmatprep.mubr.bf16.mxu0 %v2133_v39 }
 0x106   : > { %v8957_v31 = vadd.f32 %v7367_v55, %v7319_v46  ;;  %v579_v33 = vpop.f32.mrf.mxu0  ;;  %7657 = vmatprep.mubr.bf16.mxu1 %v2439_v38  ;;  %7686 = vmatpush3.bf16.msra.mxu0 %v8233_v24  ;;  %v2136_v24 = vpack.c.bf16 %v6472_v3, %v6471_v61  ;;  %v6475_v46 = vld [vmem:[%s8407_s10 + $0x1e7] sm:$0xff]  ;;  %v6476_v55 = vld [vmem:[%s8407_s10 + $0x1ef] sm:$0xff] }
 0x107   : > { %v788_v63 = vpop.f32.mrf.mxu1  ;;  %7687 = vmatprep.subr.bf16.mxu0 %v8234_v44  ;;  %v6536_v61 = vld [vmem:[%s8407_s10 + $0x230] sm:$0xff] }
 0x108   : > { %v8964_v15 = vadd.f32 %v788_v63, %v579_v33  ;;  %v7320_v43 = vpop.f32.mrf.mxu0  ;;  %v6532_v33 = vld [vmem:[%s8407_s10 + $0x1f0] sm:$0xff]  ;;  %v2138_v63 = vpack.c.bf16 %v6476_v55, %v6475_v46 }
 0x109   : > { %v7368_v17 = vpop.f32.mrf.mxu1  ;;  %v2444_v1 = vpack.c.bf16 %v6532_v33, %v6531_v19  ;;  %v6561_v3 = vld [vmem:[%s8407_s10 + $0x49] sm:$0xff]  ;;  %v6566_v46 = vld [vmem:[%s8407_s10 + $0x91] sm:$0xff] }
 0x10a   : > { %v8966_v54 = vadd.f32 %v7368_v17, %v7320_v43  ;;  %v582_v4 = vpop.f32.mrf.mxu0  ;;  %7688 = vmatpush3.bf16.msra.mxu0 %v8234_v44  ;;  %v2737_v20 = vpack.c.bf16 %v6562_v8, %v6561_v3  ;;  %v6570_v3 = vld [vmem:[%s8407_s10 + $0xd1] sm:$0xff] }
 0x10b   : > { %v791_v6 = vpop.f32.mrf.mxu1 }
 0x10c   : > { %v8968_v59 = vadd.f32 %v791_v6, %v582_v4  ;;  %v7323_v60 = vpop.f32.mrf.mxu0  ;;  %7610 = vmatmul.mubr.bf16.gmra.mxu0 %v2134_v56  ;;  %v6479_v4 = vld [vmem:[%s8407_s10 + $0x227] sm:$0xff] }
 0x10d   : > { %v7371_v0 = vpop.f32.mrf.mxu1  ;;  %7658 = vmatmul.mubr.bf16.gmra.mxu1 %v2440_v35  ;;  %7613 = vmatprep.mubr.bf16.mxu0 %v2135_v52  ;;  %v6535_v6 = vld [vmem:[%s8407_s10 + $0x228] sm:$0xff] }
 0x10e   : > { %v8973_v9 = vadd.f32 %v7371_v0, %v7323_v60  ;;  %v595_v10 = vpop.f32.mrf.mxu0  ;;  %7661 = vmatprep.mubr.bf16.mxu1 %v2441_v57  ;;  %v6480_v57 = vld [vmem:[%s8407_s10 + $0x22f] sm:$0xff] }
 0x10f   : > { %v804_v13 = vpop.f32.mrf.mxu1  ;;  %v2140_v16 = vpack.c.bf16 %v6480_v57, %v6479_v4  ;;  %v6567_v57 = vld [vmem:[%s8407_s10 + $0xa9] sm:$0xff] }
 0x110   : > { %v8980_v22 = vadd.f32 %v804_v13, %v595_v10  ;;  %v7324_v23 = vpop.f32.mrf.mxu0  ;;  %v2446_v13 = vpack.c.bf16 %v6536_v61, %v6535_v6  ;;  %v6568_v6 = vld [vmem:[%s8407_s10 + $0xb1] sm:$0xff]  ;;  %v6569_v61 = vld [vmem:[%s8407_s10 + $0xc9] sm:$0xff] }
 0x111   : > { %v7372_v36 = vpop.f32.mrf.mxu1 }
 0x112   : > { %v8982_v32 = vadd.f32 %v7372_v36, %v7324_v23  ;;  %v8984_v39 = vpop.f32.mrf.mxu0 }
 0x113   : > { %v8986_v38 = vpop.f32.mrf.mxu1 }
 0x114   : > { %v7327_v53 = vpop.f32.mrf.mxu0  ;;  %7614 = vmatmul.mubr.bf16.gmra.mxu0 %v2136_v24 }
 0x115   : > { %v7375_v44 = vpop.f32.mrf.mxu1  ;;  %7662 = vmatmul.mubr.bf16.gmra.mxu1 %v2442_v28  ;;  %7617 = vmatprep.mubr.bf16.mxu0 %v2137_v29  ;;  %v6563_v28 = vld [vmem:[%s8407_s10 + $0x69] sm:$0xff]  ;;  %v6564_v29 = vld [vmem:[%s8407_s10 + $0x71] sm:$0xff] }
 0x116   : > { %v8990_v41 = vadd.f32 %v7375_v44, %v7327_v53  ;;  %v611_v7 = vpop.f32.mrf.mxu0  ;;  %7665 = vmatprep.mubr.bf16.mxu1 %v2443_v42  ;;  %v6565_v44 = vld [vmem:[%s8407_s10 + $0x89] sm:$0xff]  ;;  %v2738_v33 = vpack.c.bf16 %v6564_v29, %v6563_v28 }
 0x117   : > { %v820_v25 = vpop.f32.mrf.mxu1 }
 0x118   : > { %v8994_v47 = vadd.f32 %v820_v25, %v611_v7  ;;  %v7328_v26 = vpop.f32.mrf.mxu0 }
 0x119   : > { %v7376_v30 = vpop.f32.mrf.mxu1 }
 0x11a   : > { %v8996_v43 = vadd.f32 %v7376_v30, %v7328_v26  ;;  %v8998_v56 = vpop.f32.mrf.mxu0  ;;  %v2739_v26 = vpack.c.bf16 %v6566_v46, %v6565_v44 }
 0x11b   : > { %v9000_v17 = vpop.f32.mrf.mxu1 }
 0x11c   : > { %v7331_v35 = vpop.f32.mrf.mxu0  ;;  %7618 = vmatmul.mubr.bf16.gmra.mxu0 %v2138_v63 }
 0x11d   : > { %v7379_v52 = vpop.f32.mrf.mxu1  ;;  %7666 = vmatmul.mubr.bf16.gmra.mxu1 %v2444_v1  ;;  %7621 = vmatprep.mubr.bf16.mxu0 %v8784_v5 }
 0x11e   : > { %v9006_v60 = vadd.f32 %v7379_v52, %v7331_v35  ;;  %v627_v0 = vpop.f32.mrf.mxu0  ;;  %7669 = vmatprep.mubr.bf16.mxu1 %v8871_v58 }
 0x11f   : > { %v836_v10 = vpop.f32.mrf.mxu1 }
 0x120   : > { %v9012_v2 = vadd.f32 %v836_v10, %v627_v0  ;;  %v7332_v12 = vpop.f32.mrf.mxu0 }
 0x121   : > { %v7380_v5 = vpop.f32.mrf.mxu1 }
 0x122   : > { %v9014_v21 = vadd.f32 %v7380_v5, %v7332_v12  ;;  %v9016_v23 = vpop.f32.mrf.mxu0  ;;  %v2740_v5 = vpack.c.bf16 %v6568_v6, %v6567_v57 }
 0x123   : > { %v9018_v58 = vpop.f32.mrf.mxu1 }
 0x124   : > { %v7335_v24 = vpop.f32.mrf.mxu0  ;;  %7622 = vmatmul.mubr.bf16.gmra.mxu0 %v2140_v16 }
 0x125   : > { %v7383_v36 = vpop.f32.mrf.mxu1  ;;  %7670 = vmatmul.mubr.bf16.gmra.mxu1 %v2446_v13  ;;  %7689 = vmatprep.mubr.bf16.mxu0 %v2737_v20 }
 0x126   : > { %v9022_v42 = vadd.f32 %v7383_v36, %v7335_v24  ;;  %v643_v53 = vpop.f32.mrf.mxu0  ;;  %v2741_v24 = vpack.c.bf16 %v6570_v3, %v6569_v61 }
 0x127   : > { %v852_v55 = vpop.f32.mrf.mxu1 }
 0x128   : > { %v9026_v7 = vadd.f32 %v852_v55, %v643_v53  ;;  %v7336_v19 = vpop.f32.mrf.mxu0  ;;  %v6572_v55 = vld [vmem:[%s8407_s10 + $0xf1] sm:$0xff] }
 0x129   : > { %v7384_v25 = vpop.f32.mrf.mxu1 }
 0x12a   : > { %v9028_v63 = vadd.f32 %v7384_v25, %v7336_v19  ;;  %v9030_v30 = vpop.f32.mrf.mxu0  ;;  %v6574_v25 = vld [vmem:[%s8407_s10 + $0x111] sm:$0xff] }
 0x12b   : > { %v9032_v1 = vpop.f32.mrf.mxu1 }
 0x12c   : > { %v7403_v35 = vpop.f32.mrf.mxu0  ;;  %7690 = vmatmul.mubr.bf16.vlgmr.msra.gmra.mxu0 %v2738_v33  ;;  %v6573_v33 = vld [vmem:[%s8407_s10 + $0x109] sm:$0xff] }
 0x12d   : > { %v1143_v52 = vadd.f32 %v7403_v35, %v8892_v27  ;;  %v7451_v4 = vpop.f32.mrf.mxu1  ;;  %7693 = vmatprep.mubr.bf16.mxu0 %v2739_v26 }
 0x12e   : > { %v1014_v0 = vpop.f32.mrf.mxu0 }
 0x12f   : > { %v1141_v8 = vadd.f32 %v1014_v0, %v8901_v34  ;;  %v9040_v10 = vadd.f32 %v7451_v4, %v1143_v52  ;;  %v1321_v12 = vpop.f32.mrf.mxu1  ;;  %v2743_v0 = vpack.c.bf16 %v6574_v25, %v6573_v33 }
 0x130   : > { %v7404_v16 = vpop.f32.mrf.mxu0 }
 0x131   : > { %v1144_v13 = vadd.f32 %v7404_v16, %v8903_v48  ;;  %v9043_v27 = vadd.f32 %v1321_v12, %v1141_v8  ;;  %v7452_v20 = vpop.f32.mrf.mxu1  ;;  %v6571_v48 = vld [vmem:[%s8407_s10 + $0xe9] sm:$0xff] }
 0x132   : > { %v1017_v36 = vpop.f32.mrf.mxu0  ;;  %v2742_v4 = vpack.c.bf16 %v6572_v55, %v6571_v48 }
 0x133   : > { %v9046_v28 = vadd.f32 %v1017_v36, %v8908_v51  ;;  %v9048_v34 = vadd.f32 %v7452_v20, %v1144_v13  ;;  %v9050_v29 = vpop.f32.mrf.mxu1  ;;  %v6576_v13 = vld [vmem:[%s8407_s10 + $0x131] sm:$0xff] }
 0x134   : > { %v7407_v53 = vpop.f32.mrf.mxu0  ;;  %7694 = vmatmul.mubr.bf16.gmra.mxu0 %v2740_v5  ;;  %v6578_v36 = vld [vmem:[%s8407_s10 + $0x151] sm:$0xff] }
 0x135   : > { %v1147_v44 = vadd.f32 %v7407_v53, %v8913_v49  ;;  %v7455_v46 = vpop.f32.mrf.mxu1  ;;  %7697 = vmatprep.mubr.bf16.mxu0 %v2741_v24  ;;  %v6577_v24 = vld [vmem:[%s8407_s10 + $0x149] sm:$0xff] }
 0x136   : > { %v1030_v19 = vpop.f32.mrf.mxu0  ;;  %v2745_v33 = vpack.c.bf16 %v6578_v36, %v6577_v24 }
 0x137   : > { %v1145_v26 = vadd.f32 %v1030_v19, %v8923_v37  ;;  %v9058_v35 = vadd.f32 %v7455_v46, %v1147_v44  ;;  %v1337_v51 = vpop.f32.mrf.mxu1 }
 0x138   : > { %v7408_v52 = vpop.f32.mrf.mxu0 }
 0x139   : > { %v1148_v57 = vadd.f32 %v7408_v52, %v8925_v50  ;;  %v9061_v49 = vadd.f32 %v1337_v51, %v1145_v26  ;;  %v7456_v6 = vpop.f32.mrf.mxu1  ;;  %v6575_v50 = vld [vmem:[%s8407_s10 + $0x129] sm:$0xff] }
 0x13a   : > { %v1033_v61 = vpop.f32.mrf.mxu0  ;;  %v2744_v48 = vpack.c.bf16 %v6576_v13, %v6575_v50 }
 0x13b   : > { %v9064_v3 = vadd.f32 %v1033_v61, %v8930_v62  ;;  %v9066_v37 = vadd.f32 %v7456_v6, %v1148_v57  ;;  %v9068_v8 = vpop.f32.mrf.mxu1  ;;  %v6580_v6 = vld [vmem:[%s8407_s10 + $0x171] sm:$0xff] }
 0x13c   : > { %v7411_v12 = vpop.f32.mrf.mxu0  ;;  %7698 = vmatmul.mubr.bf16.gmra.mxu0 %v2742_v4 }
 0x13d   : > { %v1151_v16 = vadd.f32 %v7411_v12, %v8935_v11  ;;  %v7459_v5 = vpop.f32.mrf.mxu1  ;;  %7701 = vmatprep.mubr.bf16.mxu0 %v2743_v0  ;;  %v8235_v0 = vld [vmem:[%s10927_s6 + $0x78] sm:$0xff]   ;;  %v6581_v12 = vld [vmem:[%s8407_s10 + $0x189] sm:$0xff] }
 0x13e   : > { %v1046_v20 = vpop.f32.mrf.mxu0  ;;  %7721 = vmatprep.subr.bf16.mxu1 %v8235_v0 }
 0x13f   : > { %v1149_v53 = vadd.f32 %v1046_v20, %v8945_v18  ;;  %v9076_v44 = vadd.f32 %v7459_v5, %v1151_v16  ;;  %v1353_v62 = vpop.f32.mrf.mxu1  ;;  %7722 = vmatpush3.bf16.msra.mxu1 %v8235_v0 }
 0x140   : > { %v7412_v46 = vpop.f32.mrf.mxu0 }
 0x141   : > { %v1152_v55 = vadd.f32 %v7412_v46, %v8947_v40  ;;  %v9079_v19 = vadd.f32 %v1353_v62, %v1149_v53  ;;  %v7460_v11 = vpop.f32.mrf.mxu1  ;;  %v6579_v40 = vld [vmem:[%s8407_s10 + $0x169] sm:$0xff] }
 0x142   : > { %v1049_v25 = vpop.f32.mrf.mxu0 }
 0x143   : > { %v9082_v26 = vadd.f32 %v1049_v25, %v8952_v45  ;;  %v9084_v18 = vadd.f32 %v7460_v11, %v1152_v55  ;;  %v9086_v51 = vpop.f32.mrf.mxu1  ;;  %v6582_v45 = vld [vmem:[%s8407_s10 + $0x191] sm:$0xff] }
 0x144   : > { %v7415_v52 = vpop.f32.mrf.mxu0  ;;  %7702 = vmatmul.mubr.bf16.gmra.mxu0 %v2744_v48  ;;  %v2747_v53 = vpack.c.bf16 %v6582_v45, %v6581_v12  ;;  %v6584_v25 = vld [vmem:[%s8407_s10 + $0x1b1] sm:$0xff] }
 0x145   : > { %v1155_v4 = vadd.f32 %v7415_v52, %v8957_v31  ;;  %v7463_v57 = vpop.f32.mrf.mxu1  ;;  %7705 = vmatprep.mubr.bf16.mxu0 %v2745_v33  ;;  %v2746_v31 = vpack.c.bf16 %v6580_v6, %v6579_v40  ;;  %v8236_v52 = vld [vmem:[%s10927_s6 + $0x70] sm:$0xff]  }
 0x146   : > { %v1062_v61 = vpop.f32.mrf.mxu0  ;;  %7723 = vmatprep.subr.bf16.mxu1 %v8236_v52 }
 0x147   : > { %v1153_v16 = vadd.f32 %v1062_v61, %v8964_v15  ;;  %v9097_v5 = vadd.f32 %v7463_v57, %v1155_v4  ;;  %v1369_v50 = vpop.f32.mrf.mxu1  ;;  %v6585_v57 = vld [vmem:[%s8407_s10 + $0x1c9] sm:$0xff]  ;;  %7724 = vmatpush3.bf16.msra.mxu1 %v8236_v52 }
 0x148   : > { %v7416_v13 = vpop.f32.mrf.mxu0 }
 0x149   : > { %v1156_v20 = vadd.f32 %v7416_v13, %v8966_v54  ;;  %v9100_v24 = vadd.f32 %v1369_v50, %v1153_v16  ;;  %v7464_v36 = vpop.f32.mrf.mxu1  ;;  %v6583_v54 = vld [vmem:[%s8407_s10 + $0x1a9] sm:$0xff] }
 0x14a   : > { %v1065_v62 = vpop.f32.mrf.mxu0 }
 0x14b   : > { %v9103_v15 = vadd.f32 %v1065_v62, %v8968_v59  ;;  %v9105_v46 = vadd.f32 %v7464_v36, %v1156_v20  ;;  %v9107_v48 = vpop.f32.mrf.mxu1  ;;  %v6586_v59 = vld [vmem:[%s8407_s10 + $0x1d1] sm:$0xff]  ;;  %v6587_v62 = vld [vmem:[%s8407_s10 + $0x1e9] sm:$0xff] }
 0x14c   : > { %v7419_v55 = vpop.f32.mrf.mxu0  ;;  %7706 = vmatmul.mubr.bf16.gmra.mxu0 %v2746_v31  ;;  %v2749_v50 = vpack.c.bf16 %v6586_v59, %v6585_v57 }
 0x14d   : > { %v1159_v11 = vadd.f32 %v7419_v55, %v8973_v9  ;;  %v7467_v33 = vpop.f32.mrf.mxu1  ;;  %7709 = vmatprep.mubr.bf16.mxu0 %v2747_v53  ;;  %v2748_v9 = vpack.c.bf16 %v6584_v25, %v6583_v54  ;;  %v6588_v55 = vld [vmem:[%s8407_s10 + $0x1f1] sm:$0xff] }
 0x14e   : > { %v1078_v4 = vpop.f32.mrf.mxu0 }
 0x14f   : > { %v1157_v40 = vadd.f32 %v1078_v4, %v8980_v22  ;;  %v9118_v6 = vadd.f32 %v7467_v33, %v1159_v11  ;;  %v1385_v0 = vpop.f32.mrf.mxu1  ;;  %v2750_v4 = vpack.c.bf16 %v6588_v55, %v6587_v62 }
 0x150   : > { %v7420_v61 = vpop.f32.mrf.mxu0 }
 0x151   : > { %v1160_v12 = vadd.f32 %v7420_v61, %v8982_v32  ;;  %v9121_v45 = vadd.f32 %v1385_v0, %v1157_v40  ;;  %v7468_v16 = vpop.f32.mrf.mxu1  ;;  %v8237_v32 = vld [vmem:[%s10927_s6 + $0x68] sm:$0xff]  }
 0x152   : > { %v9123_v13 = vpop.f32.mrf.mxu0  ;;  %7725 = vmatprep.subr.bf16.mxu1 %v8237_v32 }
 0x153   : > { %v9125_v31 = vadd.f32 %v7468_v16, %v1160_v12  ;;  %v9127_v22 = vpop.f32.mrf.mxu1  ;;  %7726 = vmatpush3.bf16.msra.mxu1 %v8237_v32  ;;  %v6591_v16 = vld [vmem:[%s8407_s10 + $0x229] sm:$0xff] }
 0x154   : > { %v7423_v20 = vpop.f32.mrf.mxu0  ;;  %7710 = vmatmul.mubr.bf16.gmra.mxu0 %v2748_v9 }
 0x155   : > { %v1163_v36 = vadd.f32 %v7423_v20, %v8990_v41  ;;  %v7471_v53 = vpop.f32.mrf.mxu1  ;;  %7713 = vmatprep.mubr.bf16.mxu0 %v2749_v50  ;;  %v6592_v50 = vld [vmem:[%s8407_s10 + $0x231] sm:$0xff] }
 0x156   : > { %v1094_v11 = vpop.f32.mrf.mxu0  ;;  %v2752_v32 = vpack.c.bf16 %v6592_v50, %v6591_v16 }
 0x157   : > { %v1161_v33 = vadd.f32 %v1094_v11, %v8994_v47  ;;  %v9136_v54 = vadd.f32 %v7471_v53, %v1163_v36  ;;  %v1401_v25 = vpop.f32.mrf.mxu1 }
 0x158   : > { %v7424_v52 = vpop.f32.mrf.mxu0 }
 0x159   : > { %v1164_v41 = vadd.f32 %v7424_v52, %v8996_v43  ;;  %v9139_v57 = vadd.f32 %v1401_v25, %v1161_v33  ;;  %v7472_v59 = vpop.f32.mrf.mxu1  ;;  %v8238_v43 = vld [vmem:[%s10927_s6 + $0x60] sm:$0xff]  }
 0x15a   : > { %v9141_v40 = vpop.f32.mrf.mxu0  ;;  %7727 = vmatprep.subr.bf16.mxu1 %v8238_v43 }
 0x15b   : > { %v9143_v0 = vadd.f32 %v7472_v59, %v1164_v41  ;;  %v9145_v61 = vpop.f32.mrf.mxu1  ;;  %7728 = vmatpush3.bf16.msra.mxu1 %v8238_v43 }
 0x15c   : > { %v7427_v47 = vpop.f32.mrf.mxu0  ;;  %7714 = vmatmul.mubr.bf16.gmra.mxu0 %v2750_v4 }
 0x15d   : > { %v1167_v9 = vadd.f32 %v7427_v47, %v9006_v60  ;;  %v7475_v12 = vpop.f32.mrf.mxu1  ;;  %7717 = vmatprep.mubr.bf16.mxu0 %v8873_v14 }
 0x15e   : > { %v1110_v20 = vpop.f32.mrf.mxu0 }
 0x15f   : > { %v1165_v36 = vadd.f32 %v1110_v20, %v9012_v2  ;;  %v9155_v53 = vadd.f32 %v7475_v12, %v1167_v9  ;;  %v1417_v62 = vpop.f32.mrf.mxu1  ;;  %v8240_v2 = vld [vmem:[%s10927_s6 + $0x38] sm:$0xff]  }
 0x160   : > { %v7428_v55 = vpop.f32.mrf.mxu0  ;;  %7769 = vmatprep.subr.bf16.mxu0 %v8240_v2 }
 0x161   : > { %v1168_v60 = vadd.f32 %v7428_v55, %v9014_v21  ;;  %v9158_v11 = vadd.f32 %v1417_v62, %v1165_v36  ;;  %v7476_v14 = vpop.f32.mrf.mxu1  ;;  %v8239_v21 = vld [vmem:[%s10927_s6 + $0x58] sm:$0xff]   ;;  %7770 = vmatpush3.bf16.msra.mxu0 %v8240_v2 }
 0x162   : > { %v9160_v33 = vpop.f32.mrf.mxu0  ;;  %7729 = vmatprep.subr.bf16.mxu1 %v8239_v21 }
 0x163   : > { %v9162_v25 = vadd.f32 %v7476_v14, %v1168_v60  ;;  %v9164_v52 = vpop.f32.mrf.mxu1  ;;  %7730 = vmatpush3.bf16.msra.mxu1 %v8239_v21  ;;  %v8243_v60 = vld [vmem:[%s10927_s6 + $0x28] sm:$0xff]   ;;  %v8242_v21 = vld [vmem:[%s10927_s6 + $0x50] sm:$0xff]  }
 0x164   : > { %v7431_v4 = vpop.f32.mrf.mxu0  ;;  %7718 = vmatmul.mubr.bf16.gmra.mxu0 %v2752_v32  ;;  %7731 = vmatprep.subr.bf16.mxu1 %v8242_v21 }
 0x165   : > { %v1171_v41 = vadd.f32 %v7431_v4, %v9022_v42  ;;  %v7479_v59 = vpop.f32.mrf.mxu1  ;;  %v8241_v42 = vld [vmem:[%s10927_s6 + $0x30] sm:$0xff]  }
 0x166   : > { %v1126_v47 = vpop.f32.mrf.mxu0  ;;  %7771 = vmatprep.subr.bf16.mxu0 %v8241_v42 }
 0x167   : > { %v1169_v9 = vadd.f32 %v1126_v47, %v9026_v7  ;;  %v9174_v12 = vadd.f32 %v7479_v59, %v1171_v41  ;;  %v1433_v16 = vpop.f32.mrf.mxu1  ;;  %7772 = vmatpush3.bf16.msra.mxu0 %v8241_v42  ;;  %7732 = vmatpush3.bf16.msra.mxu1 %v8242_v21  ;;  %v8245_v42 = vld [vmem:[%s10927_s6 + $0x48] sm:$0xff]   ;;  %v8247_v21 = vld [vmem:[%s10927_s6 + $0x10] sm:$0xff]  }
 0x168   : > { %v7432_v50 = vpop.f32.mrf.mxu0  ;;  %7773 = vmatprep.subr.bf16.mxu0 %v8243_v60  ;;  %7733 = vmatprep.subr.bf16.mxu1 %v8245_v42 }
 0x169   : > { %v1172_v43 = vadd.f32 %v7432_v50, %v9028_v63  ;;  %v9180_v20 = vadd.f32 %v1433_v16, %v1169_v9  ;;  %v7480_v36 = vpop.f32.mrf.mxu1 }
 0x16a   : > { %v9182_v62 = vpop.f32.mrf.mxu0 }
 0x16b   : > { %v9184_v7 = vadd.f32 %v7480_v36, %v1172_v43  ;;  %v9186_v55 = vpop.f32.mrf.mxu1  ;;  %7774 = vmatpush3.bf16.msra.mxu0 %v8243_v60  ;;  %v8316_v60 = vmov 0.0   ;;  %7734 = vmatpush3.bf16.msra.mxu1 %v8245_v42 }
 0x16c   : > { %v7499_v32 = vpop.f32.mrf.mxu0  ;;  %3122 = vst [vmem:[#allocation2 + $0x8] sm:$0xff] %v8316_v60  ;;  %3123 = vst [vmem:[#allocation2 + $0x10] sm:$0xff] %v8316_v60 }
 0x16d   : > { %v9192_v14 = vadd.f32 %v7499_v32, %v9040_v10  ;;  %v9194_v63 = vpop.f32.mrf.mxu1  ;;  %v8244_v10 = vld [vmem:[%s10927_s6 + $0x20] sm:$0xff]   ;;  %3127 = vst [vmem:[#allocation2 + $0x228] sm:$0xff] %v8316_v60  ;;  %3128 = vst [vmem:[#allocation2 + $0x230] sm:$0xff] %v8316_v60 }
 0x16e   : > { %v1627_v4 = vpop.f32.mrf.mxu0  ;;  %7775 = vmatprep.subr.bf16.mxu0 %v8244_v10  ;;  %3131 = vst [vmem:[#allocation2 + $0x20] sm:$0xff] %v8316_v60  ;;  %3132 = vst [vmem:[#allocation2 + $0x40] sm:$0xff] %v8316_v60 }
 0x16f   : > { %v9197_v2 = vadd.f32 %v1627_v4, %v9043_v27  ;;  %v9199_v41 = vpop.f32.mrf.mxu1  ;;  %7776 = vmatpush3.bf16.msra.mxu0 %v8244_v10  ;;  %3133 = vst [vmem:[#allocation2 + $0x60] sm:$0xff] %v8316_v60  ;;  %3134 = vst [vmem:[#allocation2 + $0x80] sm:$0xff] %v8316_v60  ;;  %v8248_v10 = vld [vmem:[%s10927_s6 + $0x40] sm:$0xff]  }
 0x170   : > { %v7500_v59 = vpop.f32.mrf.mxu0  ;;  %3135 = vst [vmem:[#allocation2 + $0xa0] sm:$0xff] %v8316_v60  ;;  %3136 = vst [vmem:[#allocation2 + $0xc0] sm:$0xff] %v8316_v60  ;;  %7735 = vmatprep.subr.bf16.mxu1 %v8248_v10 }
 0x171   : > { %v9208_v47 = vadd.f32 %v7500_v59, %v9048_v34  ;;  %v9210_v9 = vpop.f32.mrf.mxu1  ;;  %v8246_v34 = vld [vmem:[%s10927_s6 + $0x18] sm:$0xff]   ;;  %3137 = vst [vmem:[#allocation2 + $0xe0] sm:$0xff] %v8316_v60  ;;  %3138 = vst [vmem:[#allocation2 + $0x100] sm:$0xff] %v8316_v60  ;;  %7736 = vmatpush3.bf16.msra.mxu1 %v8248_v10  ;;  %v8250_v10 = vld [vmem:[%s10927_s6] sm:$0xff]  }
 0x172   : > { %v9212_v16 = vpop.f32.mrf.mxu0  ;;  %7777 = vmatprep.subr.bf16.mxu0 %v8246_v34  ;;  %3139 = vst [vmem:[#allocation2 + $0x120] sm:$0xff] %v8316_v60  ;;  %3140 = vst [vmem:[#allocation2 + $0x140] sm:$0xff] %v8316_v60 }
 0x173   : > { %v9214_v27 = vpop.f32.mrf.mxu1  ;;  %3141 = vst [vmem:[#allocation2 + $0x160] sm:$0xff] %v8316_v60  ;;  %3142 = vst [vmem:[#allocation2 + $0x180] sm:$0xff] %v8316_v60  ;;  %7778 = vmatpush3.bf16.msra.mxu0 %v8246_v34 }
 0x174   : > { %v7503_v50 = vpop.f32.mrf.mxu0  ;;  %3143 = vst [vmem:[#allocation2 + $0x1a0] sm:$0xff] %v8316_v60  ;;  %3144 = vst [vmem:[#allocation2 + $0x1c0] sm:$0xff] %v8316_v60  ;;  %7779 = vmatprep.subr.bf16.mxu0 %v8247_v21 }
 0x175   : > { %v9223_v43 = vadd.f32 %v7503_v50, %v9058_v35  ;;  %v9225_v36 = vpop.f32.mrf.mxu1  ;;  %3145 = vst [vmem:[#allocation2 + $0x1e0] sm:$0xff] %v8316_v60  ;;  %3146 = vst [vmem:[#allocation2 + $0x200] sm:$0xff] %v8316_v60 }
 0x176   : > { %v1643_v32 = vpop.f32.mrf.mxu0  ;;  %3149 = vst [vmem:[#allocation2 + $0x38] sm:$0xff] %v8316_v60  ;;  %3150 = vst [vmem:[#allocation2 + $0x58] sm:$0xff] %v8316_v60 }
 0x177   : > { %3151 = vst [vmem:[#allocation2 + $0x78] sm:$0xff] %v8316_v60  ;;  %3152 = vst [vmem:[#allocation2 + $0x98] sm:$0xff] %v8316_v60  ;;  %v9228_v35 = vadd.f32 %v1643_v32, %v9061_v49  ;;  %v9230_v4 = vpop.f32.mrf.mxu1  ;;  %7780 = vmatpush3.bf16.msra.mxu0 %v8247_v21  ;;  %v8249_v32 = vld [vmem:[%s10927_s6 + $0x8] sm:$0xff]  }
 0x178   : > { %3153 = vst [vmem:[#allocation2 + $0xb8] sm:$0xff] %v8316_v60  ;;  %3154 = vst [vmem:[#allocation2 + $0xd8] sm:$0xff] %v8316_v60  ;;  %v7504_v59 = vpop.f32.mrf.mxu0  ;;  %7781 = vmatprep.subr.bf16.mxu0 %v8249_v32 }
 0x179   : > { %3155 = vst [vmem:[#allocation2 + $0xf8] sm:$0xff] %v8316_v60  ;;  %3156 = vst [vmem:[#allocation2 + $0x118] sm:$0xff] %v8316_v60  ;;  %v9239_v50 = vadd.f32 %v7504_v59, %v9066_v37  ;;  %v8317_v59 = vmov 0.0|0.0  }
 0x17a   : > { %3157 = vst [vmem:[#allocation2 + $0x138] sm:$0xff] %v8316_v60  ;;  %3158 = vst [vmem:[#allocation2 + $0x158] sm:$0xff] %v8316_v60  ;;  %v9243_v49 = vpop.f32.mrf.mxu0  ;;  %7737 = vmatprep.mubr.bf16.mxu1 %v8317_v59 }
 0x17b   : > { %3159 = vst [vmem:[#allocation2 + $0x178] sm:$0xff] %v8316_v60  ;;  %3160 = vst [vmem:[#allocation2 + $0x198] sm:$0xff] %v8316_v60  ;;  %7782 = vmatpush3.bf16.msra.mxu0 %v8249_v32 }
 0x17c   : > { %3161 = vst [vmem:[#allocation2 + $0x1b8] sm:$0xff] %v8316_v60  ;;  %3162 = vst [vmem:[#allocation2 + $0x1d8] sm:$0xff] %v8316_v60  ;;  %v7507_v34 = vpop.f32.mrf.mxu0  ;;  %7783 = vmatprep.subr.bf16.mxu0 %v8250_v10 }
 0x17d   : > { %3163 = vst [vmem:[#allocation2 + $0x1f8] sm:$0xff] %v8316_v60  ;;  %3164 = vst [vmem:[#allocation2 + $0x218] sm:$0xff] %v8316_v60 }
 0x17e   : > { %3130 = vst [vmem:[#allocation2] sm:$0xff] %v8316_v60  ;;  %3147 = vst [vmem:[#allocation2 + $0x220] sm:$0xff] %v8316_v60 }
 0x17f   : > { %3148 = vst [vmem:[#allocation2 + $0x18] sm:$0xff] %v8316_v60  ;;  %3165 = vst [vmem:[#allocation2 + $0x238] sm:$0xff] %v8316_v60  ;;  %v9241_v60 = vpop.f32.mrf.mxu1  ;;  %7784 = vmatpush3.bf16.msra.mxu0 %v8250_v10 }
 0x180   : > { %10932 = vst [vmem:[#allocation3_spill] sm:$0xff] %v9228_v35  ;;  %10933 = vst [vmem:[#allocation4_spill] sm:$0xff] %v9230_v4  ;;  %v9251_v4 = vadd.f32 %v7507_v34, %v9076_v44 }
 0x181   : > { %10934 = vst [vmem:[#allocation5_spill] sm:$0xff] %v9239_v50  ;;  %10935 = vst [vmem:[#allocation6_spill] sm:$0xff] %v9241_v60  ;;  %v9245_v42 = vpop.f32.mrf.mxu1  ;;  %v1659_v60 = vpop.f32.mrf.mxu0 }
 0x182   : > { %10936 = vst [vmem:[#allocation7_spill] sm:$0xff] %v9245_v42  ;;  %10937 = vst [vmem:[#allocation8_spill] sm:$0xff] %v9251_v4  ;;  %v9256_v50 = vadd.f32 %v1659_v60, %v9079_v19  ;;  %v3200_v4 = vld [vmem:[#allocation2 + $0xf] sm:$0xff] }
 0x183   : > { %v9253_v37 = vpop.f32.mrf.mxu1  ;;  %v7508_v21 = vpop.f32.mrf.mxu0 }
 0x184   : > { %10938 = vst [vmem:[#allocation9_spill] sm:$0xff] %v9253_v37  ;;  %10939 = vst [vmem:[#allocation10_spill] sm:$0xff] %v9256_v50  ;;  %v9264_v44 = vadd.f32 %v7508_v21, %v9084_v18 }
 0x185   : > { %v9258_v42 = vpop.f32.mrf.mxu1  ;;  %v9268_v37 = vpop.f32.mrf.mxu0  ;;  %v3199_v59 = vld [vmem:[#allocation2 + $0x7] sm:$0xff] }
 0x186   : > { %10940 = vst [vmem:[#allocation11_spill] sm:$0xff] %v9258_v42  ;;  %10941 = vst [vmem:[#allocation12_spill] sm:$0xff] %v9264_v44  ;;  %v3231_v60 = vpack.c.bf16 %v3200_v4, %v3199_v59 }
 0x187   : > { %v9266_v34 = vpop.f32.mrf.mxu1  ;;  %v7511_v32 = vpop.f32.mrf.mxu0 }
 0x188   : > { %10942 = vst [vmem:[#allocation13_spill] sm:$0xff] %v9266_v34  ;;  %v9273_v42 = vadd.f32 %v7511_v32, %v9097_v5  ;;  %7785 = vmatprep.mubr.bf16.mxu0 %v3231_v60 }
 0x189   : > { %v9270_v19 = vpop.f32.mrf.mxu1  ;;  %v1675_v18 = vpop.f32.mrf.mxu0 }
 0x18a   : > { %10943 = vst [vmem:[#allocation14_spill] sm:$0xff] %v9270_v19  ;;  %v9278_v21 = vadd.f32 %v1675_v18, %v9100_v24  ;;  %v9299_v24 = vld [vmem:[%s10927_s6 + $0xb8] sm:$0xff]  }
 0x18b   : > { %v9275_v50 = vpop.f32.mrf.mxu1  ;;  %v7512_v44 = vpop.f32.mrf.mxu0  ;;  %10948 = vst [vmem:[#allocation19_spill] sm:$0xff] %v9299_v24  ;;  %7817 = vmatprep.subr.bf16.mxu1 %v9299_v24 }
 0x18c   : > { %v9283_v35 = vadd.f32 %v7512_v44, %v9105_v46 }
 0x18d   : > { %v9280_v34 = vpop.f32.mrf.mxu1  ;;  %v9287_v4 = vpop.f32.mrf.mxu0 }
 0x18f   : > { %v9285_v19 = vpop.f32.mrf.mxu1  ;;  %v7515_v5 = vpop.f32.mrf.mxu0 }
 0x190   : > { %10944 = vst [vmem:[#allocation15_spill] sm:$0xff] %v9285_v19  ;;  %v9292_v59 = vadd.f32 %v7515_v5, %v9118_v6 }
 0x191   : > { %v9289_v10 = vpop.f32.mrf.mxu1  ;;  %v1691_v32 = vpop.f32.mrf.mxu0 }
 0x192   : > { %10945 = vst [vmem:[#allocation16_spill] sm:$0xff] %v9289_v10  ;;  %10946 = vst [vmem:[#allocation17_spill] sm:$0xff] %v9292_v59  ;;  %v9302_v46 = vadd.f32 %v1691_v32, %v9121_v45 }
 0x193   : > { %v9294_v60 = vpop.f32.mrf.mxu1  ;;  %v7516_v18 = vpop.f32.mrf.mxu0 }
 0x194   : > { %10947 = vst [vmem:[#allocation18_spill] sm:$0xff] %v9294_v60  ;;  %10949 = vst [vmem:[#allocation20_spill] sm:$0xff] %v9302_v46  ;;  %v9308_v10 = vadd.f32 %v7516_v18, %v9125_v31 }
 0x195   : > { %v9304_v44 = vpop.f32.mrf.mxu1  ;;  %v9312_v5 = vpop.f32.mrf.mxu0 }
 0x196   : > { %10950 = vst [vmem:[#allocation21_spill] sm:$0xff] %v9304_v44  ;;  %10951 = vst [vmem:[#allocation22_spill] sm:$0xff] %v9308_v10 }
 0x197   : > { %v9310_v6 = vpop.f32.mrf.mxu1  ;;  %v7519_v59 = vpop.f32.mrf.mxu0 }
 0x198   : > { %10952 = vst [vmem:[#allocation23_spill] sm:$0xff] %v9310_v6  ;;  %v9317_v19 = vadd.f32 %v7519_v59, %v9136_v54 }
 0x199   : > { %v9314_v60 = vpop.f32.mrf.mxu1  ;;  %v1707_v32 = vpop.f32.mrf.mxu0 }
 0x19a   : > { %10953 = vst [vmem:[#allocation24_spill] sm:$0xff] %v9314_v60  ;;  %10954 = vst [vmem:[#allocation25_spill] sm:$0xff] %v9317_v19  ;;  %v9322_v44 = vadd.f32 %v1707_v32, %v9139_v57 }
 0x19b   : > { %v9319_v45 = vpop.f32.mrf.mxu1  ;;  %v7520_v31 = vpop.f32.mrf.mxu0 }
 0x19c   : > { %10955 = vst [vmem:[#allocation26_spill] sm:$0xff] %v9319_v45  ;;  %10956 = vst [vmem:[#allocation27_spill] sm:$0xff] %v9322_v44  ;;  %v9327_v18 = vadd.f32 %v7520_v31, %v9143_v0 }
 0x19d   : > { %v9324_v24 = vpop.f32.mrf.mxu1  ;;  %v9331_v10 = vpop.f32.mrf.mxu0 }
 0x19e   : > { %10957 = vst [vmem:[#allocation28_spill] sm:$0xff] %v9324_v24  ;;  %10958 = vst [vmem:[#allocation29_spill] sm:$0xff] %v9327_v18 }
 0x19f   : > { %v9329_v6 = vpop.f32.mrf.mxu1  ;;  %10960 = vst [vmem:[#allocation31_spill] sm:$0xff] %v9331_v10  ;;  %v7523_v54 = vpop.f32.mrf.mxu0 }
 0x1a0   : > { %10959 = vst [vmem:[#allocation30_spill] sm:$0xff] %v9329_v6  ;;  %v9336_v59 = vadd.f32 %v7523_v54, %v9155_v53  ;;  %v9357_v54 = vld [vmem:[%s10927_s6 + $0xf8] sm:$0xff]  }
 0x1a1   : > { %v9333_v60 = vpop.f32.mrf.mxu1  ;;  %v1723_v57 = vpop.f32.mrf.mxu0  ;;  %10970 = vst [vmem:[#allocation41_spill] sm:$0xff] %v9357_v54  ;;  %7865 = vmatprep.subr.bf16.mxu0 %v9357_v54 }
 0x1a2   : > { %10961 = vst [vmem:[#allocation32_spill] sm:$0xff] %v9333_v60  ;;  %10962 = vst [vmem:[#allocation33_spill] sm:$0xff] %v9336_v59  ;;  %v9341_v32 = vadd.f32 %v1723_v57, %v9158_v11 }
 0x1a3   : > { %v9338_v45 = vpop.f32.mrf.mxu1  ;;  %v7524_v0 = vpop.f32.mrf.mxu0 }
 0x1a4   : > { %10963 = vst [vmem:[#allocation34_spill] sm:$0xff] %v9338_v45  ;;  %10964 = vst [vmem:[#allocation35_spill] sm:$0xff] %v9341_v32  ;;  %v9346_v31 = vadd.f32 %v7524_v0, %v9162_v25 }
 0x1a5   : > { %v9343_v24 = vpop.f32.mrf.mxu1  ;;  %v9350_v18 = vpop.f32.mrf.mxu0 }
 0x1a6   : > { %10965 = vst [vmem:[#allocation36_spill] sm:$0xff] %v9343_v24  ;;  %10966 = vst [vmem:[#allocation37_spill] sm:$0xff] %v9346_v31 }
 0x1a7   : > { %v9348_v6 = vpop.f32.mrf.mxu1  ;;  %10968 = vst [vmem:[#allocation39_spill] sm:$0xff] %v9350_v18  ;;  %v7527_v53 = vpop.f32.mrf.mxu0 }
 0x1a8   : > { %10967 = vst [vmem:[#allocation38_spill] sm:$0xff] %v9348_v6  ;;  %v9360_v11 = vadd.f32 %v7527_v53, %v9174_v12 }
 0x1a9   : > { %v9352_v60 = vpop.f32.mrf.mxu1  ;;  %v1739_v24 = vpop.f32.mrf.mxu0 }
 0x1aa   : > { %10969 = vst [vmem:[#allocation40_spill] sm:$0xff] %v9352_v60  ;;  %10971 = vst [vmem:[#allocation42_spill] sm:$0xff] %v9360_v11  ;;  %v9366_v25 = vadd.f32 %v1739_v24, %v9180_v20 }
 0x1ab   : > { %v9362_v57 = vpop.f32.mrf.mxu1  ;;  %v7528_v60 = vpop.f32.mrf.mxu0 }
 0x1ac   : > { %10972 = vst [vmem:[#allocation43_spill] sm:$0xff] %v9362_v57  ;;  %10973 = vst [vmem:[#allocation44_spill] sm:$0xff] %v9366_v25  ;;  %v9371_v6 = vadd.f32 %v7528_v60, %v9184_v7 }
 0x1ad   : > { %v9368_v0 = vpop.f32.mrf.mxu1  ;;  %v9375_v18 = vpop.f32.mrf.mxu0 }
 0x1ae   : > { %10974 = vst [vmem:[#allocation45_spill] sm:$0xff] %v9368_v0  ;;  %10975 = vst [vmem:[#allocation46_spill] sm:$0xff] %v9371_v6 }
 0x1af   : > { %v9373_v31 = vpop.f32.mrf.mxu1  ;;  %10977 = vst [vmem:[#allocation48_spill] sm:$0xff] %v9375_v18  ;;  %v7595_v53 = vpop.f32.mrf.mxu0 }
 0x1b0   : > { %10976 = vst [vmem:[#allocation47_spill] sm:$0xff] %v9373_v31 }
 0x1b1   : > { %v9377_v12 = vpop.f32.mrf.mxu1  ;;  %v9381_v11 = vpop.f32.mrf.mxu0 }
 0x1b2   : > { %10978 = vst [vmem:[#allocation49_spill] sm:$0xff] %v9377_v12 }
 0x1b3   : > { %v9379_v57 = vpop.f32.mrf.mxu1  ;;  %v9385_v20 = vpop.f32.mrf.mxu0 }
 0x1b5   : > { %v9383_v54 = vpop.f32.mrf.mxu1  ;;  %v9389_v0 = vpop.f32.mrf.mxu0 }
 0x1b7   : > { %v9387_v24 = vpop.f32.mrf.mxu1  ;;  %v9391_v7 = vpop.f32.mrf.mxu0 }
 0x1b9   : > { %v9393_v60 = vpop.f32.mrf.mxu1  ;;  %v9395_v31 = vpop.f32.mrf.mxu0 }
 0x1bb   : > { %v9397_v12 = vpop.f32.mrf.mxu0  ;;  %v9399_v6 = vpop.f32.mrf.mxu1 }
 0x1bc   : > { %10979 = vst [vmem:[#allocation50_spill] sm:$0xff] %v9397_v12  ;;  %10980 = vst [vmem:[#allocation51_spill] sm:$0xff] %v9399_v6 }
 0x1bd   : > { %v9401_v18 = vpop.f32.mrf.mxu0  ;;  %v9405_v32 = vpop.f32.mrf.mxu1 }
 0x1be   : > { %10981 = vst [vmem:[#allocation52_spill] sm:$0xff] %v9401_v18  ;;  %10983 = vst [vmem:[#allocation54_spill] sm:$0xff] %v9405_v32 }
 0x1bf   : > { %v9403_v25 = vpop.f32.mrf.mxu0  ;;  %v9411_v44 = vpop.f32.mrf.mxu1 }
 0x1c0   : > { %10982 = vst [vmem:[#allocation53_spill] sm:$0xff] %v9403_v25  ;;  %10986 = vst [vmem:[#allocation57_spill] sm:$0xff] %v9411_v44 }
 0x1c1   : > { %v9407_v45 = vpop.f32.mrf.mxu0  ;;  %v9417_v46 = vpop.f32.mrf.mxu1 }
 0x1c2   : > { %10984 = vst [vmem:[#allocation55_spill] sm:$0xff] %v9407_v45  ;;  %10989 = vst [vmem:[#allocation60_spill] sm:$0xff] %v9417_v46 }
 0x1c3   : > { %v9409_v59 = vpop.f32.mrf.mxu0  ;;  %v9423_v18 = vpop.f32.mrf.mxu1 }
 0x1c4   : > { %10985 = vst [vmem:[#allocation56_spill] sm:$0xff] %v9409_v59  ;;  %10992 = vst [vmem:[#allocation63_spill] sm:$0xff] %v9423_v18 }
 0x1c5   : > { %v9413_v10 = vpop.f32.mrf.mxu0  ;;  %v9429_v45 = vpop.f32.mrf.mxu1 }
 0x1c6   : > { %10987 = vst [vmem:[#allocation58_spill] sm:$0xff] %v9413_v10  ;;  %10995 = vst [vmem:[#allocation66_spill] sm:$0xff] %v9429_v45 }
 0x1c7   : > { %v9415_v19 = vpop.f32.mrf.mxu0  ;;  %v9435_v10 = vpop.f32.mrf.mxu1 }
 0x1c8   : > { %10988 = vst [vmem:[#allocation59_spill] sm:$0xff] %v9415_v19  ;;  %10998 = vst [vmem:[#allocation69_spill] sm:$0xff] %v9435_v10 }
 0x1c9   : > { %v9419_v12 = vpop.f32.mrf.mxu0 }
 0x1ca   : > { %10990 = vst [vmem:[#allocation61_spill] sm:$0xff] %v9419_v12  ;;  %v9441_v12 = vpop.f32.mrf.mxu1 }
 0x1cb   : > { %v9421_v6 = vpop.f32.mrf.mxu0 }
 0x1cc   : > { %10991 = vst [vmem:[#allocation62_spill] sm:$0xff] %v9421_v6 }
 0x1cd   : > { %v9425_v25 = vpop.f32.mrf.mxu0 }
 0x1ce   : > { %10993 = vst [vmem:[#allocation64_spill] sm:$0xff] %v9425_v25  ;;  %v9447_v25 = vpop.f32.mrf.mxu1 }
 0x1cf   : > { %v9427_v32 = vpop.f32.mrf.mxu0 }
 0x1d0   : > { %10994 = vst [vmem:[#allocation65_spill] sm:$0xff] %v9427_v32 }
 0x1d1   : > { %v9431_v59 = vpop.f32.mrf.mxu0 }
 0x1d2   : > { %10996 = vst [vmem:[#allocation67_spill] sm:$0xff] %v9431_v59  ;;  %v9453_v59 = vpop.f32.mrf.mxu1 }
 0x1d3   : > { %v9433_v44 = vpop.f32.mrf.mxu0 }
 0x1d4   : > { %10997 = vst [vmem:[#allocation68_spill] sm:$0xff] %v9433_v44 }
 0x1d5   : > { %v9437_v19 = vpop.f32.mrf.mxu0 }
 0x1d6   : > { %10999 = vst [vmem:[#allocation70_spill] sm:$0xff] %v9437_v19  ;;  %v9459_v19 = vpop.f32.mrf.mxu1 }
 0x1d7   : > { %v9439_v46 = vpop.f32.mrf.mxu0  ;;  %11007 = vst [vmem:[#allocation78_spill] sm:$0xff] %v9459_v19 }
 0x1d8   : > { %11000 = vst [vmem:[#allocation71_spill] sm:$0xff] %v9439_v46 }
 0x1d9   : > { %v9443_v6 = vpop.f32.mrf.mxu0 }
 0x1da   : > { %11001 = vst [vmem:[#allocation72_spill] sm:$0xff] %v9443_v6  ;;  %v808_v6 = vadd.f32 %v8986_v38, %v8984_v39  ;;  %v2062_v39 = vadd.f32 %v9194_v63, %v9192_v14  ;;  %v9479_v38 = vpop.f32.mrf.mxu1 }
 0x1db   : > { %v9445_v18 = vpop.f32.mrf.mxu0 }
 0x1dc   : > { %11002 = vst [vmem:[#allocation73_spill] sm:$0xff] %v9445_v18  ;;  %v824_v18 = vadd.f32 %v9000_v17, %v8998_v56  ;;  %v1158_v19 = vadd.f32 %v9123_v13, %v808_v6  ;;  %v1453_v56 = vadd.f32 %v9068_v8, %v9064_v3  ;;  %v1461_v13 = vadd.f32 %v9107_v48, %v9103_v15  ;;  %v9504_v63 = vpop.f32.mrf.mxu1 }
 0x1dd   : > { %v9449_v32 = vpop.f32.mrf.mxu0 }
 0x1de   : > { %11003 = vst [vmem:[#allocation74_spill] sm:$0xff] %v9449_v32  ;;  %v840_v32 = vadd.f32 %v9018_v58, %v9016_v23  ;;  %v1759_v3 = vadd.f32 %v9243_v49, %v1453_v56  ;;  %v11012_v49 = vld [vmem:[#allocation6_spill] sm:$0xff]  ;;  %v1767_v6 = vadd.f32 %v9287_v4, %v1461_v13  ;;  %v11019_v56 = vld [vmem:[#allocation13_spill] sm:$0xff] }
 0x1df   : > { %v9451_v45 = vpop.f32.mrf.mxu0  ;;  %v11020_v4 = vld [vmem:[#allocation14_spill] sm:$0xff] }
 0x1e0   : > { %11004 = vst [vmem:[#allocation75_spill] sm:$0xff] %v9451_v45  ;;  %v856_v45 = vadd.f32 %v9032_v1, %v9030_v30  ;;  %v1166_v17 = vadd.f32 %v9160_v33, %v840_v32  ;;  %v2060_v1 = vadd.f32 %v9199_v41, %v9197_v2  ;;  %v11009_v2 = vld [vmem:[#allocation3_spill] sm:$0xff]  ;;  %v11010_v41 = vld [vmem:[#allocation4_spill] sm:$0xff] }
 0x1e1   : > { %v9455_v44 = vpop.f32.mrf.mxu0 }
 0x1e2   : > { %11005 = vst [vmem:[#allocation76_spill] sm:$0xff] %v9455_v44  ;;  %v1449_v44 = vadd.f32 %v9050_v29, %v9046_v28  ;;  %v1170_v23 = vadd.f32 %v9182_v62, %v856_v45  ;;  %v2369_v28 = vadd.f32 %v7595_v53, %v2062_v39  ;;  %v1457_v29 = vadd.f32 %v9086_v51, %v9082_v26  ;;  %v9537_v53 = vpop.f32.mrf.mxu1  ;;  %v11018_v39 = vld [vmem:[#allocation12_spill] sm:$0xff] }
 0x1e3   : > { %v9457_v10 = vpop.f32.mrf.mxu0  ;;  %v2063_v62 = vadd.f32 %v9210_v9, %v9208_v47  ;;  %v2367_v14 = vadd.f32 %v9381_v11, %v2060_v1  ;;  %v9507_v26 = vadd.f32 %v9164_v52, %v1166_v17  ;;  %v2064_v47 = vadd.f32 %v11010_v41, %v11009_v2  ;;  %v11023_v41 = vld [vmem:[#allocation17_spill] sm:$0xff] }
 0x1e4   : > { %11006 = vst [vmem:[#allocation77_spill] sm:$0xff] %v9457_v10  ;;  %v1755_v58 = vadd.f32 %v9212_v16, %v1449_v44  ;;  %v9510_v51 = vadd.f32 %v9186_v55, %v1170_v23  ;;  %v1763_v48 = vadd.f32 %v9268_v37, %v1457_v29  ;;  %v2675_v9 = vadd.f32 %v9379_v57, %v2369_v28  ;;  %v11011_v16 = vld [vmem:[#allocation5_spill] sm:$0xff] }
 0x1e5   : > { %v9461_v46 = vpop.f32.mrf.mxu0  ;;  %v2370_v52 = vadd.f32 %v9385_v20, %v2063_v62  ;;  %v2067_v55 = vadd.f32 %v11012_v49, %v11011_v16  ;;  %v11015_v44 = vld [vmem:[#allocation9_spill] sm:$0xff]  ;;  %v2673_v11 = vadd.f32 %v9383_v54, %v2367_v14  ;;  %v9541_v17 = vadd.f32 %v11019_v56, %v11018_v39  ;;  %v9554_v54 = vld [vmem:[%s10923_s2] ss:$0 sm:$0xff]  ;;  %v11033_v56 = vld [vmem:[#allocation52_spill] sm:$0xff] }
 0x1e6   : > { %11008 = vst [vmem:[#allocation79_spill] sm:$0xff] %v9461_v46  ;;  %v1162_v46 = vadd.f32 %v9141_v40, %v824_v18  ;;  %v1465_v40 = vadd.f32 %v9127_v22, %v1158_v19  ;;  %v2061_v15 = vadd.f32 %v9214_v27, %v1755_v58  ;;  %v11013_v19 = vld [vmem:[#allocation7_spill] sm:$0xff]  ;;  %v11014_v27 = vld [vmem:[#allocation8_spill] sm:$0xff]  ;;  %v9544_v23 = vadd.f32 %v11020_v4, %v1763_v48  ;;  %v11026_v16 = vld [vmem:[#allocation21_spill] sm:$0xff] }
 0x1e7   : > { %v9473_v10 = vpop.f32.mrf.mxu0  ;;  %v2070_v37 = vadd.f32 %v11015_v44, %v11014_v27  ;;  %v11017_v18 = vld [vmem:[#allocation11_spill] sm:$0xff]  ;;  %v9548_v58 = vadd.f32 %v9275_v50, %v9273_v42  ;;  %v9558_v28 = vadd.f32 %v9280_v34, %v9278_v21  ;;  %v2676_v29 = vadd.f32 %v9387_v24, %v2370_v52  ;;  %v9572_v21 = vpop.f32.mrf.mxu1  ;;  %v11025_v52 = vld [vmem:[#allocation20_spill] sm:$0xff] }
 0x1e8   : > { %v9499_v33 = vadd.f32 %v9145_v61, %v1162_v46  ;;  %v2066_v61 = vadd.f32 %v9225_v36, %v9223_v43  ;;  %v2065_v46 = vadd.f32 %v11013_v19, %v1759_v3  ;;  %v9531_v43 = vld [vmem:[%s10922_s1] ss:$0 sm:$0xff]  ;;  %v11016_v36 = vld [vmem:[#allocation10_spill] sm:$0xff]  ;;  %v2368_v57 = vadd.f32 %v9389_v0, %v2061_v15 }
 0x1e9   : > { %v9486_v30 = vpop.f32.mrf.mxu0  ;;  %v2068_v32 = vadd.f32 %v11017_v18, %v11016_v36  ;;  %v11021_v50 = vld [vmem:[#allocation15_spill] sm:$0xff]  ;;  %v1771_v14 = vadd.f32 %v9312_v5, %v1465_v40  ;;  %v2371_v15 = vadd.f32 %v9395_v31, %v2064_v47  ;;  %v9582_v49 = vadd.f32 %v11026_v16, %v11025_v52  ;;  %v11028_v40 = vld [vmem:[#allocation50_spill] sm:$0xff] }
 0x1ea   : > { %v2373_v1 = vadd.f32 %v9391_v7, %v2066_v61  ;;  %v9564_v42 = vadd.f32 %v11021_v50, %v9283_v35  ;;  %v11022_v7 = vld [vmem:[#allocation16_spill] sm:$0xff]  ;;  %v2674_v34 = vadd.f32 %v9393_v60, %v2368_v57  ;;  %v11024_v35 = vld [vmem:[#allocation18_spill] sm:$0xff]  ;;  %v11027_v5 = vld [vmem:[#allocation51_spill] sm:$0xff]  ;;  %v2374_v47 = vadd.f32 %v11028_v40, %v2067_v55  ;;  %v9597_v55 = vpop.f32.mrf.mxu1 }
 0x1eb   : > { %v9495_v8 = vpop.f32.mrf.mxu0  ;;  %v9567_v62 = vadd.f32 %v11022_v7, %v1767_v6  ;;  %v11030_v36 = vld [vmem:[#allocation23_spill] sm:$0xff]  ;;  %v2372_v4 = vadd.f32 %v11033_v56, %v2065_v46  ;;  %v11034_v50 = vld [vmem:[#allocation25_spill] sm:$0xff]  ;;  %v11035_v7 = vld [vmem:[#allocation26_spill] sm:$0xff] }
 0x1ec   : > { %v2679_v31 = vadd.f32 %v11027_v5, %v2373_v1  ;;  %v11038_v46 = vld [vmem:[#allocation53_spill] sm:$0xff]  ;;  %v11039_v5 = vld [vmem:[#allocation27_spill] sm:$0xff] }
 0x1ed   : > { %v9514_v22 = vpop.f32.mrf.mxu0 }
 0x1ef   : > { %v7691_v45 = vpop.f32.mrf.mxu0 }
 0x1f0   : > { %v2981_v20 = vadd.f32 %v7691_v45, %v2675_v9  ;;  %v9578_v9 = vadd.f32 %v11024_v35, %v11023_v41  ;;  %v11029_v45 = vld [vmem:[#allocation22_spill] sm:$0xff] }
 0x1f1   : > { %v2852_v0 = vpop.f32.mrf.mxu0  ;;  %v9590_v18 = vadd.f32 %v11030_v36, %v11029_v45  ;;  %v9621_v36 = vpop.f32.mrf.mxu1 }
 0x1f2   : > { %v3020_v13 = vmul.f32 %v9531_v43, %v2981_v20  ;;  %v2979_v3 = vadd.f32 %v2852_v0, %v2673_v11  ;;  %v11031_v11 = vld [vmem:[#allocation24_spill] sm:$0xff]  ;;  %v11032_v20 = vld [vmem:[#allocation54_spill] sm:$0xff] }
 0x1f3   : > { %v7692_v48 = vpop.f32.mrf.mxu0  ;;  %v9593_v57 = vadd.f32 %v11031_v11, %v1771_v14  ;;  %v2677_v39 = vadd.f32 %v11032_v20, %v2371_v15  ;;  %v11036_v14 = vld [vmem:[#allocation31_spill] sm:$0xff]  ;;  %v11037_v15 = vld [vmem:[#allocation57_spill] sm:$0xff] }
 0x1f4   : > { %v3059_v24 = vadd.f32 %v9554_v54, %v3020_v13  ;;  %v3018_v61 = vmul.f32 %v9531_v43, %v2979_v3  ;;  %v2982_v2 = vadd.f32 %v7692_v48, %v2676_v29  ;;  %v9603_v48 = vadd.f32 %v11035_v7, %v11034_v50  ;;  %v11047_v50 = vld [vmem:[#allocation56_spill] sm:$0xff] }
 0x1f5   : > { %v2855_v60 = vpop.f32.mrf.mxu0 }
 0x1f6   : > { %v3091_v19 = vmax.f32 %v3059_v24, 0.0  ;;  %v3057_v27 = vadd.f32 %v9554_v54, %v3018_v61  ;;  %v3021_v44 = vmul.f32 %v9531_v43, %v2982_v2  ;;  %v2980_v6 = vadd.f32 %v2855_v60, %v2674_v34  ;;  %v11041_v60 = vld [vmem:[#allocation29_spill] sm:$0xff] }
 0x1f7   : > { %v7695_v1 = vpop.f32.mrf.mxu0  ;;  %v1775_v34 = vadd.f32 %v11036_v14, %v9499_v33  ;;  %v2680_v24 = vadd.f32 %v11037_v15, %v2374_v47  ;;  %v2377_v61 = vadd.f32 %v11038_v46, %v2070_v37  ;;  %v11043_v33 = vld [vmem:[#allocation60_spill] sm:$0xff] }
 0x1f8   : > { %3169 = vst [vmem:[#allocation2 + $0x48] sm:$0xff] %v3091_v19  ;;  %v3089_v0 = vmax.f32 %v3057_v27, 0.0  ;;  %v3060_v29 = vadd.f32 %v9554_v54, %v3021_v44  ;;  %v3019_v13 = vmul.f32 %v9531_v43, %v2980_v6  ;;  %v2985_v3 = vadd.f32 %v7695_v1, %v2679_v31  ;;  %v11040_v31 = vld [vmem:[#allocation28_spill] sm:$0xff]  ;;  %v11042_v27 = vld [vmem:[#allocation30_spill] sm:$0xff]  ;;  %v11044_v6 = vld [vmem:[#allocation55_spill] sm:$0xff] }
 0x1f9   : > { %v2868_v2 = vpop.f32.mrf.mxu0  ;;  %v9613_v40 = vadd.f32 %v11040_v31, %v11039_v5  ;;  %v9617_v44 = vadd.f32 %v11042_v27, %v11041_v60  ;;  %v2678_v47 = vadd.f32 %v11043_v33, %v2372_v4  ;;  %v2375_v37 = vadd.f32 %v11044_v6, %v2068_v32  ;;  %v11045_v1 = vld [vmem:[#allocation32_spill] sm:$0xff] }
 0x1fa   : > { %3167 = vst [vmem:[#allocation2 + $0x28] sm:$0xff] %v3089_v0  ;;  %v3092_v41 = vmax.f32 %v3060_v29, 0.0  ;;  %v3058_v35 = vadd.f32 %v9554_v54, %v3019_v13  ;;  %v3024_v52 = vmul.f32 %v9531_v43, %v2985_v3  ;;  %v2983_v16 = vadd.f32 %v2868_v2, %v2677_v39  ;;  %v11046_v13 = vld [vmem:[#allocation63_spill] sm:$0xff] }
 0x1fb   : > { %v7696_v45 = vpop.f32.mrf.mxu0  ;;  %v9626_v29 = vadd.f32 %v11045_v1, %v1775_v34  ;;  %v2683_v3 = vadd.f32 %v11046_v13, %v2377_v61  ;;  %v2378_v4 = vadd.f32 %v11047_v50, %v9541_v17  ;;  %v8252_v17 = vld [vmem:[%s10927_s6 + $0xb0] sm:$0xff]  }
 0x1fc   : > { %3170 = vst [vmem:[#allocation2 + $0x50] sm:$0xff] %v3092_v41  ;;  %v3090_v11 = vmax.f32 %v3058_v35, 0.0  ;;  %v3063_v20 = vadd.f32 %v9554_v54, %v3024_v52  ;;  %v3022_v39 = vmul.f32 %v9531_v43, %v2983_v16  ;;  %v2986_v56 = vadd.f32 %v7696_v45, %v2680_v24  ;;  %v11048_v35 = vld [vmem:[#allocation66_spill] sm:$0xff]  ;;  %v11050_v16 = vld [vmem:[#allocation59_spill] sm:$0xff]  ;;  %v11055_v45 = vld [vmem:[#allocation69_spill] sm:$0xff] }
 0x1fd   : > { %v2871_v7 = vpop.f32.mrf.mxu0  ;;  %v3297_v32 = vpack.c.bf16 %v3092_v41, %v3091_v19  ;;  %v2681_v52 = vadd.f32 %v11048_v35, %v2375_v37  ;;  %v11049_v24 = vld [vmem:[#allocation58_spill] sm:$0xff]  ;;  %v2381_v61 = vadd.f32 %v11050_v16, %v9548_v58  ;;  %v9641_v19 = vpop.f32.mrf.mxu1  ;;  %v11053_v58 = vld [vmem:[#allocation35_spill] sm:$0xff]  ;;  %v11054_v37 = vld [vmem:[#allocation36_spill] sm:$0xff] }
 0x1fe   : > { %3168 = vst [vmem:[#allocation2 + $0x30] sm:$0xff] %v3090_v11  ;;  %v3095_v14 = vmax.f32 %v3063_v20, 0.0  ;;  %v3061_v15 = vadd.f32 %v9554_v54, %v3022_v39  ;;  %v3025_v46 = vmul.f32 %v9531_v43, %v2986_v56  ;;  %v2984_v2 = vadd.f32 %v2871_v7, %v2678_v47  ;;  %v11051_v47 = vld [vmem:[#allocation33_spill] sm:$0xff]  ;;  %v11057_v7 = vld [vmem:[#allocation19_spill] sm:$0xff] }
 0x1ff   : > { %v2376_v34 = vadd.f32 %v11049_v24, %v9544_v23  ;;  %v7699_v5 = vpop.f32.mrf.mxu0  ;;  %v3296_v31 = vpack.c.bf16 %v3090_v11, %v3089_v0  ;;  %v11052_v23 = vld [vmem:[#allocation34_spill] sm:$0xff]  ;;  %v9651_v0 = vadd.f32 %v11054_v37, %v11053_v58  ;;  %v2684_v11 = vadd.f32 %v11055_v45, %v2378_v4  ;;  %v11056_v20 = vld [vmem:[#allocation61_spill] sm:$0xff] }
 0x200   : > { %3173 = vst [vmem:[#allocation2 + $0x88] sm:$0xff] %v3095_v14  ;;  %v3093_v41 = vmax.f32 %v3061_v15, 0.0  ;;  %v3064_v60 = vadd.f32 %v9554_v54, %v3025_v46  ;;  %v3023_v27 = vmul.f32 %v9531_v43, %v2984_v2  ;;  %v2989_v33 = vadd.f32 %v7699_v5, %v2683_v3  ;;  %v11058_v15 = vld [vmem:[#allocation39_spill] sm:$0xff]  ;;  %v11059_v2 = vld [vmem:[#allocation37_spill] sm:$0xff]  ;;  %v11060_v4 = vld [vmem:[#allocation38_spill] sm:$0xff] }
 0x201   : > { %v9647_v6 = vadd.f32 %v11052_v23, %v11051_v47  ;;  %v2379_v39 = vadd.f32 %v11056_v20, %v9558_v28  ;;  %v2884_v56 = vpop.f32.mrf.mxu0  ;;  %7738 = vmatmul.mubr.bf16.vlgmr.msra.gmra.mxu1 %v3296_v31  ;;  %v1779_v46 = vadd.f32 %v11058_v15, %v9507_v26  ;;  %v9663_v35 = vadd.f32 %v11060_v4, %v11059_v2  ;;  %v8257_v2 = vld [vmem:[%s10927_s6 + $0xf0] sm:$0xff]  }
 0x202   : > { %3171 = vst [vmem:[#allocation2 + $0x68] sm:$0xff] %v3093_v41  ;;  %v3096_v1 = vmax.f32 %v3064_v60, 0.0  ;;  %v3062_v13 = vadd.f32 %v9554_v54, %v3023_v27  ;;  %v3028_v3 = vmul.f32 %v9531_v43, %v2989_v33  ;;  %v2987_v50 = vadd.f32 %v2884_v56, %v2681_v52  ;;  %7741 = vmatprep.mubr.bf16.mxu1 %v3297_v32  ;;  %v8253_v52 = vld [vmem:[%s10927_s6 + $0xa8] sm:$0xff]   ;;  %v9670_v32 = vpop.f32.mrf.mxu1 }
 0x203   : > { %7818 = vmatpush3.bf16.msra.mxu1 %v11057_v7  ;;  %v2682_v28 = vadd.f32 %v9441_v12, %v2376_v34  ;;  %v2687_v24 = vadd.f32 %v9447_v25, %v2381_v61  ;;  %v7700_v16 = vpop.f32.mrf.mxu0  ;;  %v3204_v27 = vld [vmem:[#allocation2 + $0x4f] sm:$0xff]  ;;  %v11061_v12 = vld [vmem:[#allocation62_spill] sm:$0xff]  ;;  %v2685_v34 = vadd.f32 %v9453_v59, %v2379_v39  ;;  %v3201_v56 = vld [vmem:[#allocation2 + $0x27] sm:$0xff] }
 0x204   : > { %7819 = vmatprep.subr.bf16.mxu1 %v8252_v17  ;;  %3174 = vst [vmem:[#allocation2 + $0x90] sm:$0xff] %v3096_v1  ;;  %v3094_v5 = vmax.f32 %v3062_v13, 0.0  ;;  %v9673_v26 = vadd.f32 %v9554_v54, %v3028_v3  ;;  %v3026_v31 = vmul.f32 %v9531_v43, %v2987_v50  ;;  %v2990_v60 = vadd.f32 %v7700_v16, %v2684_v11  ;;  %v11062_v61 = vld [vmem:[#allocation64_spill] sm:$0xff]  ;;  %v11063_v59 = vld [vmem:[#allocation65_spill] sm:$0xff] }
 0x205   : > { %v2382_v25 = vadd.f32 %v11061_v12, %v9564_v42  ;;  %v2380_v33 = vadd.f32 %v11062_v61, %v9567_v62  ;;  %v2887_v47 = vpop.f32.mrf.mxu0  ;;  %v3202_v23 = vld [vmem:[#allocation2 + $0x2f] sm:$0xff]  ;;  %v3299_v58 = vpack.c.bf16 %v3096_v1, %v3095_v14  ;;  %v3203_v13 = vld [vmem:[#allocation2 + $0x47] sm:$0xff]  ;;  %v2385_v42 = vadd.f32 %v11063_v59, %v9578_v9  ;;  %v9692_v1 = vpop.f32.mrf.mxu1 }
 0x206   : > { %3172 = vst [vmem:[#allocation2 + $0x70] sm:$0xff] %v3094_v5  ;;  %v3099_v37 = vmax.f32 %v9673_v26, 0.0  ;;  %v9683_v45 = vadd.f32 %v9554_v54, %v3026_v31  ;;  %v3029_v11 = vmul.f32 %v9531_v43, %v2990_v60  ;;  %v2988_v20 = vadd.f32 %v2887_v47, %v2682_v28  ;;  %v8254_v9 = vld [vmem:[%s10927_s6 + $0xa0] sm:$0xff]   ;;  %v11065_v28 = vld [vmem:[#allocation78_spill] sm:$0xff] }
 0x207   : > { %7820 = vmatpush3.bf16.msra.mxu1 %v8252_v17  ;;  %v7703_v39 = vpop.f32.mrf.mxu0  ;;  %v9688_v62 = vpack.c.bf16 %v3202_v23, %v3201_v56  ;;  %v9690_v3 = vpack.c.bf16 %v3204_v27, %v3203_v13  ;;  %v3298_v14 = vpack.c.bf16 %v3094_v5, %v3093_v41  ;;  %v11064_v41 = vld [vmem:[#allocation40_spill] sm:$0xff]  ;;  %v2688_v16 = vadd.f32 %v11065_v28, %v2382_v25  ;;  %v11066_v5 = vld [vmem:[#allocation67_spill] sm:$0xff]  ;;  %v11068_v23 = vld [vmem:[#allocation41_spill] sm:$0xff] }
 0x208   : > { %7821 = vmatprep.subr.bf16.mxu1 %v8253_v52  ;;  %3177 = vst [vmem:[#allocation2 + $0xc8] sm:$0xff] %v3099_v37  ;;  %v3097_v50 = vmax.f32 %v9683_v45, 0.0  ;;  %v3068_v7 = vadd.f32 %v9554_v54, %v3029_v11  ;;  %v3027_v15 = vmul.f32 %v9531_v43, %v2988_v20  ;;  %v2993_v17 = vadd.f32 %v7703_v39, %v2687_v24  ;;  %v9718_v45 = vpop.f32.mrf.mxu1  ;;  %v11070_v13 = vld [vmem:[#allocation71_spill] sm:$0xff] }
 0x209   : > { %v9704_v4 = vadd.f32 %v11064_v41, %v1779_v46  ;;  %v2383_v26 = vadd.f32 %v11066_v5, %v9582_v49  ;;  %7786 = vmatmul.mubr.bf16.vlgmr.msra.gmra.mxu0 %v9688_v62  ;;  %v2900_v31 = vpop.f32.mrf.mxu0  ;;  %7742 = vmatmul.mubr.bf16.gmra.mxu1 %v3298_v14  ;;  %v2686_v46 = vadd.f32 %v9479_v38, %v2380_v33  ;;  %v11067_v49 = vld [vmem:[#allocation68_spill] sm:$0xff]  ;;  %v11069_v33 = vld [vmem:[#allocation70_spill] sm:$0xff] }
 0x20a   : > { %3175 = vst [vmem:[#allocation2 + $0xa8] sm:$0xff] %v3097_v50  ;;  %v3100_v24 = vmax.f32 %v3068_v7, 0.0  ;;  %v3066_v60 = vadd.f32 %v9554_v54, %v3027_v15  ;;  %v3032_v27 = vmul.f32 %v9531_v43, %v2993_v17  ;;  %v2991_v12 = vadd.f32 %v2900_v31, %v2685_v34  ;;  %7789 = vmatprep.mubr.bf16.mxu0 %v9690_v3  ;;  %v3205_v28 = vld [vmem:[#allocation2 + $0x67] sm:$0xff] }
 0x20b   : > { %7745 = vmatprep.mubr.bf16.mxu1 %v3299_v58  ;;  %v2691_v25 = vadd.f32 %v9504_v63, %v2385_v42  ;;  %v2386_v61 = vadd.f32 %v11067_v49, %v9590_v18  ;;  %v7704_v47 = vpop.f32.mrf.mxu0  ;;  %7822 = vmatpush3.bf16.msra.mxu1 %v8253_v52  ;;  %v3208_v38 = vld [vmem:[#allocation2 + $0x8f] sm:$0xff]  ;;  %v8255_v63 = vld [vmem:[%s10927_s6 + $0x98] sm:$0xff]   ;;  %v2689_v52 = vadd.f32 %v9537_v53, %v2383_v26  ;;  %v3207_v53 = vld [vmem:[#allocation2 + $0x87] sm:$0xff] }
 0x20c   : > { %7866 = vmatpush3.bf16.msra.mxu0 %v11068_v23  ;;  %3178 = vst [vmem:[#allocation2 + $0xd0] sm:$0xff] %v3100_v24  ;;  %v3098_v11 = vmax.f32 %v3066_v60, 0.0  ;;  %v9721_v34 = vadd.f32 %v9554_v54, %v3032_v27  ;;  %v3030_v58 = vmul.f32 %v9531_v43, %v2991_v12  ;;  %v2994_v20 = vadd.f32 %v7704_v47, %v2688_v16  ;;  %v8259_v18 = vld [vmem:[%s10927_s6 + $0xe8] sm:$0xff]   ;;  %v8258_v27 = vld [vmem:[%s10927_s6 + $0x90] sm:$0xff]  }
 0x20d   : > { %7823 = vmatprep.subr.bf16.mxu1 %v8254_v9  ;;  %7867 = vmatprep.subr.bf16.mxu0 %v8257_v2  ;;  %v2384_v56 = vadd.f32 %v11069_v33, %v9593_v57  ;;  %v2389_v59 = vadd.f32 %v11070_v13, %v9603_v48  ;;  %v2903_v42 = vpop.f32.mrf.mxu0  ;;  %v3206_v39 = vld [vmem:[#allocation2 + $0x6f] sm:$0xff]  ;;  %v3301_v14 = vpack.c.bf16 %v3100_v24, %v3099_v37  ;;  %v9744_v37 = vpop.f32.mrf.mxu1 }
 0x20e   : > { %3176 = vst [vmem:[#allocation2 + $0xb0] sm:$0xff] %v3098_v11  ;;  %v3103_v7 = vmax.f32 %v9721_v34, 0.0  ;;  %v9737_v15 = vadd.f32 %v9554_v54, %v3030_v58  ;;  %v3033_v17 = vmul.f32 %v9531_v43, %v2994_v20  ;;  %v2992_v41 = vadd.f32 %v2903_v42, %v2686_v46  ;;  %v11073_v49 = vld [vmem:[#allocation72_spill] sm:$0xff] }
 0x20f   : > { %v7707_v16 = vpop.f32.mrf.mxu0  ;;  %v9740_v5 = vpack.c.bf16 %v3206_v39, %v3205_v28  ;;  %v9742_v57 = vpack.c.bf16 %v3208_v38, %v3207_v53  ;;  %v3300_v48 = vpack.c.bf16 %v3098_v11, %v3097_v50  ;;  %7824 = vmatpush3.bf16.msra.mxu1 %v8254_v9  ;;  %v8260_v50 = vld [vmem:[%s10927_s6 + $0xe0] sm:$0xff]   ;;  %v11071_v9 = vld [vmem:[#allocation42_spill] sm:$0xff]  ;;  %v2692_v46 = vadd.f32 %v9572_v21, %v2386_v61  ;;  %v9770_v33 = vpop.f32.mrf.mxu1 }
 0x210   : > { %7868 = vmatpush3.bf16.msra.mxu0 %v8257_v2  ;;  %3181 = vst [vmem:[#allocation2 + $0x108] sm:$0xff] %v3103_v7  ;;  %v3101_v26 = vmax.f32 %v9737_v15, 0.0  ;;  %v3072_v31 = vadd.f32 %v9554_v54, %v3033_v17  ;;  %v3031_v24 = vmul.f32 %v9531_v43, %v2992_v41  ;;  %v2997_v60 = vadd.f32 %v7707_v16, %v2691_v25  ;;  %v11072_v2 = vld [vmem:[#allocation43_spill] sm:$0xff] }
 0x211   : > { %7825 = vmatprep.subr.bf16.mxu1 %v8255_v63  ;;  %7869 = vmatprep.subr.bf16.mxu0 %v8259_v18  ;;  %v9757_v12 = vadd.f32 %v11072_v2, %v11071_v9  ;;  %v2387_v47 = vadd.f32 %v11073_v49, %v9613_v40  ;;  %v2916_v25 = vpop.f32.mrf.mxu0  ;;  %v2690_v20 = vadd.f32 %v9597_v55, %v2384_v56  ;;  %v11074_v40 = vld [vmem:[#allocation73_spill] sm:$0xff]  ;;  %v8261_v55 = vld [vmem:[%s10927_s6 + $0x88] sm:$0xff]   ;;  %v11076_v56 = vld [vmem:[#allocation75_spill] sm:$0xff] }
 0x212   : > { %7790 = vmatmul.mubr.bf16.gmra.mxu0 %v9740_v5  ;;  %7746 = vmatmul.mubr.bf16.gmra.mxu1 %v3300_v48  ;;  %3179 = vst [vmem:[#allocation2 + $0xe8] sm:$0xff] %v3101_v26  ;;  %v3104_v23 = vmax.f32 %v3072_v31, 0.0  ;;  %v3070_v11 = vadd.f32 %v9554_v54, %v3031_v24  ;;  %v3036_v34 = vmul.f32 %v9531_v43, %v2997_v60  ;;  %v3209_v31 = vld [vmem:[#allocation2 + $0xa7] sm:$0xff] }
 0x213   : > { %v2995_v58 = vadd.f32 %v2916_v25, %v2689_v52  ;;  %7793 = vmatprep.mubr.bf16.mxu0 %v9742_v57  ;;  %7749 = vmatprep.mubr.bf16.mxu1 %v3301_v14  ;;  %v2695_v21 = vadd.f32 %v9621_v36, %v2389_v59  ;;  %v2390_v61 = vadd.f32 %v11074_v40, %v9617_v44  ;;  %v7708_v38 = vpop.f32.mrf.mxu0  ;;  %v3212_v14 = vld [vmem:[#allocation2 + $0xcf] sm:$0xff]  ;;  %v8262_v44 = vld [vmem:[%s10927_s6 + $0xd8] sm:$0xff]  }
 0x214   : > { %7826 = vmatpush3.bf16.msra.mxu1 %v8255_v63  ;;  %7870 = vmatpush3.bf16.msra.mxu0 %v8259_v18  ;;  %3182 = vst [vmem:[#allocation2 + $0x110] sm:$0xff] %v3104_v23  ;;  %v3102_v13 = vmax.f32 %v3070_v11, 0.0  ;;  %v9773_v42 = vadd.f32 %v9554_v54, %v3036_v34  ;;  %v2998_v39 = vadd.f32 %v7708_v38, %v2692_v46  ;;  %v11075_v63 = vld [vmem:[#allocation74_spill] sm:$0xff]  ;;  %v11079_v11 = vld [vmem:[#allocation76_spill] sm:$0xff] }
 0x215   : > { %v3034_v52 = vmul.f32 %v9531_v43, %v2995_v58  ;;  %7827 = vmatprep.subr.bf16.mxu1 %v8258_v27  ;;  %7871 = vmatprep.subr.bf16.mxu0 %v8260_v50  ;;  %v2693_v36 = vadd.f32 %v9641_v19, %v2387_v47  ;;  %v2388_v18 = vadd.f32 %v11075_v63, %v9626_v29  ;;  %v2919_v15 = vpop.f32.mrf.mxu0  ;;  %v3210_v17 = vld [vmem:[#allocation2 + $0xaf] sm:$0xff]  ;;  %v3211_v19 = vld [vmem:[#allocation2 + $0xc7] sm:$0xff] }
 0x216   : > { %v2393_v59 = vadd.f32 %v11076_v56, %v9647_v6  ;;  %v3303_v41 = vpack.c.bf16 %v3104_v23, %v3103_v7  ;;  %3180 = vst [vmem:[#allocation2 + $0xf0] sm:$0xff] %v3102_v13  ;;  %v3107_v28 = vmax.f32 %v9773_v42, 0.0  ;;  %v3037_v16 = vmul.f32 %v9531_v43, %v2998_v39  ;;  %v9796_v7 = vpop.f32.mrf.mxu1  ;;  %v8263_v47 = vld [vmem:[%s10927_s6 + $0xd0] sm:$0xff]  }
 0x217   : > { %v9789_v53 = vadd.f32 %v9554_v54, %v3034_v52  ;;  %v2996_v48 = vadd.f32 %v2919_v15, %v2690_v20  ;;  %v7711_v24 = vpop.f32.mrf.mxu0  ;;  %v9792_v60 = vpack.c.bf16 %v3210_v17, %v3209_v31  ;;  %v9794_v29 = vpack.c.bf16 %v3212_v14, %v3211_v19 }
 0x218   : > { %v3302_v6 = vpack.c.bf16 %v3102_v13, %v3101_v26  ;;  %7828 = vmatpush3.bf16.msra.mxu1 %v8258_v27  ;;  %7872 = vmatpush3.bf16.msra.mxu0 %v8260_v50  ;;  %3185 = vst [vmem:[#allocation2 + $0x148] sm:$0xff] %v3107_v28  ;;  %v3076_v2 = vadd.f32 %v9554_v54, %v3037_v16  ;;  %v8264_v26 = vld [vmem:[%s10927_s6 + $0x80] sm:$0xff]   ;;  %v11077_v27 = vld [vmem:[#allocation44_spill] sm:$0xff]  ;;  %v11078_v50 = vld [vmem:[#allocation45_spill] sm:$0xff]  ;;  %v9820_v52 = vpop.f32.mrf.mxu1 }
 0x219   : > { %v3105_v9 = vmax.f32 %v9789_v53, 0.0  ;;  %v3035_v46 = vmul.f32 %v9531_v43, %v2996_v48  ;;  %v3001_v49 = vadd.f32 %v7711_v24, %v2695_v21  ;;  %7829 = vmatprep.subr.bf16.mxu1 %v8261_v55  ;;  %7873 = vmatprep.subr.bf16.mxu0 %v8262_v44  ;;  %v2088_v25 = vadd.f32 %v11078_v50, %v11077_v27  ;;  %v2932_v58 = vpop.f32.mrf.mxu0  ;;  %v11080_v13 = vld [vmem:[#allocation48_spill] sm:$0xff]  ;;  %v8266_v50 = vld [vmem:[%s10927_s6 + $0xc0] sm:$0xff]  }
 0x21a   : > { %v2696_v23 = vadd.f32 %v9670_v32, %v2390_v61  ;;  %v2391_v34 = vadd.f32 %v11079_v11, %v9651_v0  ;;  %7794 = vmatmul.mubr.bf16.gmra.mxu0 %v9792_v60  ;;  %7750 = vmatmul.mubr.bf16.gmra.mxu1 %v3302_v6  ;;  %v3108_v20 = vmax.f32 %v3076_v2, 0.0  ;;  %v2999_v38 = vadd.f32 %v2932_v58, %v2693_v36  ;;  %v3213_v19 = vld [vmem:[#allocation2 + $0xe7] sm:$0xff] }
 0x21b   : > { %3183 = vst [vmem:[#allocation2 + $0x128] sm:$0xff] %v3105_v9  ;;  %v3074_v21 = vadd.f32 %v9554_v54, %v3035_v46  ;;  %v3040_v40 = vmul.f32 %v9531_v43, %v3001_v49  ;;  %7797 = vmatprep.mubr.bf16.mxu0 %v9794_v29  ;;  %7753 = vmatprep.mubr.bf16.mxu1 %v3303_v41  ;;  %v7712_v42 = vpop.f32.mrf.mxu0  ;;  %v3216_v56 = vld [vmem:[#allocation2 + $0x10f] sm:$0xff]  ;;  %v3215_v24 = vld [vmem:[#allocation2 + $0x107] sm:$0xff] }
 0x21c   : > { %v1783_v32 = vadd.f32 %v11080_v13, %v9510_v51  ;;  %v2694_v61 = vadd.f32 %v9692_v1, %v2388_v18  ;;  %v2699_v0 = vadd.f32 %v9718_v45, %v2393_v59  ;;  %7830 = vmatpush3.bf16.msra.mxu1 %v8261_v55  ;;  %7874 = vmatpush3.bf16.msra.mxu0 %v8262_v44  ;;  %v8265_v51 = vld [vmem:[%s10927_s6 + $0xc8] sm:$0xff]   ;;  %v9832_v1 = vld [vmem:[%s10927_s6 + $0x138] sm:$0xff]   ;;  %v11081_v45 = vld [vmem:[#allocation77_spill] sm:$0xff] }
 0x21d   : > { %3186 = vst [vmem:[#allocation2 + $0x150] sm:$0xff] %v3108_v20  ;;  %v3106_v39 = vmax.f32 %v3074_v21, 0.0  ;;  %v9823_v14 = vadd.f32 %v9554_v54, %v3040_v40  ;;  %v3038_v36 = vmul.f32 %v9531_v43, %v2999_v38  ;;  %v3002_v63 = vadd.f32 %v7712_v42, %v2696_v23  ;;  %7875 = vmatprep.subr.bf16.mxu0 %v8263_v47  ;;  %v11082_v18 = vld [vmem:[#allocation79_spill] sm:$0xff]  ;;  %v2935_v15 = vpop.f32.mrf.mxu0  ;;  %v3214_v17 = vld [vmem:[#allocation2 + $0xef] sm:$0xff] }
 0x21e   : > { %7831 = vmatprep.subr.bf16.mxu1 %v8264_v26  ;;  %v2394_v55 = vadd.f32 %v11081_v45, %v9663_v35  ;;  %v2697_v44 = vadd.f32 %v9744_v37, %v2391_v34  ;;  %v2392_v59 = vadd.f32 %v11082_v18, %v9704_v4  ;;  %v3305_v41 = vpack.c.bf16 %v3108_v20, %v3107_v28  ;;  %v2658_v28 = vpop.f32.mrf.mxu1  ;;  %v11084_v21 = vld [vmem:[#allocation47_spill] sm:$0xff] }
 0x21f   : > { %3184 = vst [vmem:[#allocation2 + $0x130] sm:$0xff] %v3106_v39  ;;  %v3111_v53 = vmax.f32 %v9823_v14, 0.0  ;;  %v9841_v16 = vadd.f32 %v9554_v54, %v3038_v36  ;;  %v3041_v48 = vmul.f32 %v9531_v43, %v3002_v63  ;;  %v3000_v31 = vadd.f32 %v2935_v15, %v2694_v61  ;;  %v7715_v35 = vpop.f32.mrf.mxu0  ;;  %v9874_v14 = vld [vmem:[%s10927_s6 + $0x178] sm:$0xff]   ;;  %v3219_v15 = vld [vmem:[#allocation2 + $0x147] sm:$0xff] }
 0x220   : > { %v9844_v6 = vpack.c.bf16 %v3214_v17, %v3213_v19  ;;  %v9846_v37 = vpack.c.bf16 %v3216_v56, %v3215_v24  ;;  %v3304_v4 = vpack.c.bf16 %v3106_v39, %v3105_v9  ;;  %7876 = vmatpush3.bf16.msra.mxu0 %v8263_v47  ;;  %7832 = vmatpush3.bf16.msra.mxu1 %v8264_v26  ;;  %v7672_v38 = vpop.f32.mrf.mxu1 }
 0x221   : > { %3189 = vst [vmem:[#allocation2 + $0x188] sm:$0xff] %v3111_v53  ;;  %v3109_v2 = vmax.f32 %v9841_v16, 0.0  ;;  %v3080_v46 = vadd.f32 %v9554_v54, %v3041_v48  ;;  %v3039_v49 = vmul.f32 %v9531_v43, %v3000_v31  ;;  %v3005_v27 = vadd.f32 %v7715_v35, %v2699_v0  ;;  %7877 = vmatprep.subr.bf16.mxu0 %v8265_v51  ;;  %v2948_v23 = vpop.f32.mrf.mxu0 }
 0x222   : > { %7913 = vmatprep.subr.bf16.mxu1 %v9832_v1  ;;  %v2700_v9 = vadd.f32 %v9770_v33, %v2394_v55  ;;  %v2397_v47 = vadd.f32 %v9473_v10, %v9757_v12  ;;  %v2395_v26 = vadd.f32 %v9486_v30, %v2088_v25  ;;  %7798 = vmatmul.mubr.bf16.gmra.mxu0 %v9844_v6  ;;  %v11083_v33 = vld [vmem:[#allocation46_spill] sm:$0xff]  ;;  %v11085_v10 = vld [vmem:[#allocation49_spill] sm:$0xff] }
 0x223   : > { %7754 = vmatmul.mubr.bf16.gmra.mxu1 %v3304_v4  ;;  %3187 = vst [vmem:[#allocation2 + $0x168] sm:$0xff] %v3109_v2  ;;  %v3112_v11 = vmax.f32 %v3080_v46, 0.0  ;;  %v3078_v34 = vadd.f32 %v9554_v54, %v3039_v49  ;;  %v3044_v58 = vmul.f32 %v9531_v43, %v3005_v27  ;;  %v3003_v20 = vadd.f32 %v2948_v23, %v2697_v44  ;;  %v7716_v25 = vpop.f32.mrf.mxu0 }
 0x224   : > { %7801 = vmatprep.mubr.bf16.mxu0 %v9846_v37  ;;  %7757 = vmatprep.mubr.bf16.mxu1 %v3305_v41  ;;  %v2091_v40 = vadd.f32 %v11084_v21, %v11083_v33  ;;  %v2089_v12 = vadd.f32 %v11085_v10, %v1783_v32  ;;  %v2698_v30 = vadd.f32 %v9796_v7, %v2392_v59  ;;  %v3220_v39 = vld [vmem:[#allocation2 + $0x14f] sm:$0xff]  ;;  %v3217_v59 = vld [vmem:[#allocation2 + $0x127] sm:$0xff] }
 0x225   : > { %7878 = vmatpush3.bf16.msra.mxu0 %v8265_v51  ;;  %3190 = vst [vmem:[#allocation2 + $0x190] sm:$0xff] %v3112_v11  ;;  %v9867_v13 = vmax.f32 %v3078_v34, 0.0  ;;  %v3083_v61 = vadd.f32 %v9554_v54, %v3044_v58  ;;  %v3042_v0 = vmul.f32 %v9531_v43, %v3003_v20  ;;  %v3006_v42 = vadd.f32 %v7716_v25, %v2700_v9  ;;  %v2951_v63 = vpop.f32.mrf.mxu0 }
 0x226   : > { %7879 = vmatprep.subr.bf16.mxu0 %v8266_v50  ;;  %v2703_v7 = vadd.f32 %v9820_v52, %v2397_v47  ;;  %v2398_v32 = vadd.f32 %v9495_v8, %v2091_v40  ;;  %v2701_v36 = vadd.f32 %v2658_v28, %v2395_v26  ;;  %v3218_v56 = vld [vmem:[#allocation2 + $0x12f] sm:$0xff]  ;;  %v3307_v51 = vpack.c.bf16 %v3112_v11, %v3111_v53  ;;  %v2661_v53 = vpop.f32.mrf.mxu1 }
 0x227   : > { %3188 = vst [vmem:[#allocation2 + $0x170] sm:$0xff] %v9867_v13  ;;  %v3115_v45 = vmax.f32 %v3083_v61, 0.0  ;;  %v3081_v55 = vadd.f32 %v9554_v54, %v3042_v0  ;;  %v3045_v44 = vmul.f32 %v9531_v43, %v3006_v42  ;;  %v3004_v18 = vadd.f32 %v2951_v63, %v2698_v30  ;;  %v7719_v41 = vpop.f32.mrf.mxu0 }
 0x228   : > { %v2396_v17 = vadd.f32 %v9514_v22, %v2089_v12  ;;  %v9882_v52 = vpack.c.bf16 %v3218_v56, %v3217_v59  ;;  %v9884_v8 = vpack.c.bf16 %v3220_v39, %v3219_v15  ;;  %v3306_v16 = vpack.c.bf16 %v9867_v13, %v3109_v2  ;;  %v3223_v30 = vld [vmem:[#allocation2 + $0x187] sm:$0xff]  ;;  %v3749_v15 = vld [vmem:[#allocation2 + $0x31] sm:$0xff] }
 0x229   : > { %7880 = vmatpush3.bf16.msra.mxu0 %v8266_v50  ;;  %3193 = vst [vmem:[#allocation2 + $0x1c8] sm:$0xff] %v3115_v45  ;;  %v3113_v48 = vmax.f32 %v3081_v55, 0.0  ;;  %v3084_v31 = vadd.f32 %v9554_v54, %v3045_v44  ;;  %v3043_v19 = vmul.f32 %v9531_v43, %v3004_v18  ;;  %v3009_v24 = vadd.f32 %v7719_v41, %v2703_v7  ;;  %v2964_v22 = vpop.f32.mrf.mxu0  ;;  %v3748_v59 = vld [vmem:[#allocation2 + $0x29] sm:$0xff] }
 0x22a   : > { %7961 = vmatprep.subr.bf16.mxu0 %v9874_v14  ;;  %v2704_v35 = vadd.f32 %v7672_v38, %v2398_v32  ;;  %7802 = vmatmul.mubr.bf16.gmra.mxu0 %v9882_v52  ;;  %v3007_v46 = vadd.f32 %v2964_v22, %v2701_v36  ;;  %v2702_v49 = vadd.f32 %v2661_v53, %v2396_v17  ;;  %v3221_v10 = vld [vmem:[#allocation2 + $0x167] sm:$0xff]  ;;  %v3747_v36 = vld [vmem:[#allocation2 + $0x11] sm:$0xff] }
 0x22b   : > { %7758 = vmatmul.mubr.bf16.gmra.mxu1 %v3306_v16  ;;  %3191 = vst [vmem:[#allocation2 + $0x1a8] sm:$0xff] %v3113_v48  ;;  %v9891_v4 = vmax.f32 %v3084_v31, 0.0  ;;  %v3082_v28 = vadd.f32 %v9554_v54, %v3043_v19  ;;  %v3048_v2 = vmul.f32 %v9531_v43, %v3009_v24  ;;  %7805 = vmatprep.mubr.bf16.mxu0 %v9884_v8  ;;  %v7720_v27 = vpop.f32.mrf.mxu0  ;;  %v3746_v32 = vld [vmem:[#allocation2 + $0x9] sm:$0xff]  ;;  %v3751_v53 = vld [vmem:[#allocation2 + $0x51] sm:$0xff] }
 0x22c   : > { %7761 = vmatprep.mubr.bf16.mxu1 %v3307_v51  ;;  %v3046_v47 = vmul.f32 %v9531_v43, %v3007_v46  ;;  %v3010_v26 = vadd.f32 %v7720_v27, %v2704_v35  ;;  %v3224_v34 = vld [vmem:[#allocation2 + $0x18f] sm:$0xff]  ;;  %v3778_v44 = vpack.c.bf16 %v3747_v36, %v3746_v32  ;;  %v9930_v31 = vpack.c.bf16 %v3749_v15, %v3748_v59 }
 0x22d   : > { %3194 = vst [vmem:[#allocation2 + $0x1d0] sm:$0xff] %v9891_v4  ;;  %v3114_v50 = vmax.f32 %v3082_v28, 0.0  ;;  %v3087_v9 = vadd.f32 %v9554_v54, %v3048_v2  ;;  %v2967_v23 = vpop.f32.mrf.mxu0  ;;  %v3309_v58 = vpack.c.bf16 %v9891_v4, %v3115_v45  ;;  %v9910_v42 = vpack.c.bf16 %v3224_v34, %v3223_v30  ;;  %v3750_v17 = vld [vmem:[#allocation2 + $0x49] sm:$0xff]  ;;  %v3753_v22 = vld [vmem:[#allocation2 + $0x71] sm:$0xff]  ;;  %v8276_v34 = vld [vmem:[%s10927_s6 + $0x160] sm:$0xff]  }
 0x22e   : > { %v3222_v11 = vld [vmem:[#allocation2 + $0x16f] sm:$0xff]  ;;  %v3085_v33 = vadd.f32 %v9554_v54, %v3046_v47  ;;  %v3049_v21 = vmul.f32 %v9531_v43, %v3010_v26  ;;  %v3008_v40 = vadd.f32 %v2967_v23, %v2702_v49  ;;  %v9932_v19 = vpack.c.bf16 %v3751_v53, %v3750_v17 }
 0x22f   : > { %3192 = vst [vmem:[#allocation2 + $0x1b0] sm:$0xff] %v3114_v50  ;;  %v3119_v20 = vmax.f32 %v3087_v9, 0.0  ;;  %v9902_v12 = vpack.c.bf16 %v3222_v11, %v3221_v10  ;;  %v9904_v25 = vpack.c.bf16 %v3114_v50, %v3113_v48  ;;  %v8268_v24 = vld [vmem:[%s10927_s6 + $0x130] sm:$0xff]   ;;  %v8269_v28 = vld [vmem:[%s10927_s6 + $0x128] sm:$0xff]   ;;  %v8271_v50 = vld [vmem:[%s10927_s6 + $0x118] sm:$0xff]  }
 0x230   : > { %v3117_v38 = vmax.f32 %v3085_v33, 0.0  ;;  %v9907_v61 = vadd.f32 %v9554_v54, %v3049_v21  ;;  %v3047_v0 = vmul.f32 %v9531_v43, %v3008_v40  ;;  %v3227_v18 = vld [vmem:[#allocation2 + $0x1c7] sm:$0xff]  ;;  %v3755_v46 = vld [vmem:[#allocation2 + $0x91] sm:$0xff] }
 0x231   : > { %3197 = vst [vmem:[#allocation2 + $0x208] sm:$0xff] %v3119_v20  ;;  %v3752_v35 = vld [vmem:[#allocation2 + $0x69] sm:$0xff]  ;;  %v3757_v47 = vld [vmem:[#allocation2 + $0xb1] sm:$0xff] }
 0x232   : > { %7806 = vmatmul.mubr.bf16.gmra.mxu0 %v9902_v12  ;;  %3195 = vst [vmem:[#allocation2 + $0x1e8] sm:$0xff] %v3117_v38  ;;  %v3120_v39 = vmax.f32 %v9907_v61, 0.0  ;;  %v3086_v7 = vadd.f32 %v9554_v54, %v3047_v0  ;;  %v3225_v63 = vld [vmem:[#allocation2 + $0x1a7] sm:$0xff]  ;;  %v9945_v49 = vpack.c.bf16 %v3753_v22, %v3752_v35  ;;  %v3759_v23 = vld [vmem:[#allocation2 + $0xd1] sm:$0xff] }
 0x233   : > { %7762 = vmatmul.mubr.bf16.gmra.mxu1 %v9904_v25  ;;  %7809 = vmatprep.mubr.bf16.mxu0 %v9910_v42  ;;  %v3754_v2 = vld [vmem:[#allocation2 + $0x89] sm:$0xff]  ;;  %v3761_v33 = vld [vmem:[#allocation2 + $0xf1] sm:$0xff] }
 0x234   : > { %7765 = vmatprep.mubr.bf16.mxu1 %v3309_v58  ;;  %3198 = vst [vmem:[#allocation2 + $0x210] sm:$0xff] %v3120_v39  ;;  %v3118_v43 = vmax.f32 %v3086_v7, 0.0  ;;  %v3228_v51 = vld [vmem:[#allocation2 + $0x1cf] sm:$0xff]  ;;  %v9947_v27 = vpack.c.bf16 %v3755_v46, %v3754_v2 }
 0x235   : > { %v9923_v54 = vpack.c.bf16 %v3228_v51, %v3227_v18  ;;  %v3756_v9 = vld [vmem:[#allocation2 + $0xa9] sm:$0xff]  ;;  %v3763_v40 = vld [vmem:[#allocation2 + $0x111] sm:$0xff] }
 0x236   : > { %v3226_v56 = vld [vmem:[#allocation2 + $0x1af] sm:$0xff]  ;;  %3196 = vst [vmem:[#allocation2 + $0x1f0] sm:$0xff] %v3118_v43  ;;  %v9921_v55 = vpack.c.bf16 %v3118_v43, %v3117_v38  ;;  %v8280_v38 = vld [vmem:[%s10927_s6 + $0x100] sm:$0xff]   ;;  %v8288_v18 = vld [vmem:[%s10927_s6 + $0x1f8] sm:$0xff]  }
 0x237   : > { %v9919_v45 = vpack.c.bf16 %v3226_v56, %v3225_v63  ;;  %v3758_v26 = vld [vmem:[#allocation2 + $0xc9] sm:$0xff]  ;;  %v3765_v32 = vld [vmem:[#allocation2 + $0x131] sm:$0xff]  ;;  %v8282_v56 = vld [vmem:[%s10927_s6 + $0x140] sm:$0xff]  }
 0x238   : > { %v9968_v11 = vpack.c.bf16 %v3759_v23, %v3758_v26  ;;  %v8277_v58 = vld [vmem:[%s10927_s6 + $0x108] sm:$0xff]   ;;  %v8279_v30 = vld [vmem:[%s10927_s6 + $0x150] sm:$0xff]  }
 0x239   : > { %v3229_v41 = vld [vmem:[#allocation2 + $0x1e7] sm:$0xff]  ;;  %v3767_v43 = vld [vmem:[#allocation2 + $0x151] sm:$0xff] }
 0x23a   : > { %7810 = vmatmul.mubr.bf16.gmra.mxu0 %v9919_v45  ;;  %v3760_v20 = vld [vmem:[#allocation2 + $0xe9] sm:$0xff]  ;;  %v3771_v15 = vld [vmem:[#allocation2 + $0x191] sm:$0xff] }
 0x23b   : > { %7766 = vmatmul.mubr.bf16.gmra.mxu1 %v9921_v55  ;;  %7813 = vmatprep.mubr.bf16.mxu0 %v9923_v54  ;;  %v3762_v21 = vld [vmem:[#allocation2 + $0x109] sm:$0xff]  ;;  %v9986_v10 = vpack.c.bf16 %v3761_v33, %v3760_v20  ;;  %v3775_v53 = vld [vmem:[#allocation2 + $0x1d1] sm:$0xff] }
 0x23c   : > { %7833 = vmatprep.mubr.bf16.mxu1 %v3778_v44  ;;  %v8281_v0 = vld [vmem:[%s10927_s6 + $0x148] sm:$0xff]   ;;  %v3769_v44 = vld [vmem:[#allocation2 + $0x171] sm:$0xff] }
 0x23d   : > { %v3230_v16 = vld [vmem:[#allocation2 + $0x1ef] sm:$0xff] }
 0x23e   : > { %v9928_v48 = vpack.c.bf16 %v3230_v16, %v3229_v41  ;;  %v3764_v7 = vld [vmem:[#allocation2 + $0x129] sm:$0xff]  ;;  %v3773_v41 = vld [vmem:[#allocation2 + $0x1b1] sm:$0xff] }
 0x23f   : > { %v3766_v36 = vld [vmem:[#allocation2 + $0x149] sm:$0xff]  ;;  %v10006_v63 = vpack.c.bf16 %v3765_v32, %v3764_v7 }
 0x240   : > { %v3768_v51 = vld [vmem:[#allocation2 + $0x169] sm:$0xff] }
 0x241   : > { %v3770_v59 = vld [vmem:[#allocation2 + $0x189] sm:$0xff]  ;;  %v10020_v17 = vpack.c.bf16 %v3769_v44, %v3768_v51 }
 0x242   : > { %7814 = vmatmul.mubr.bf16.gmra.mxu0 %v9928_v48  ;;  %v3774_v16 = vld [vmem:[#allocation2 + $0x1c9] sm:$0xff] }
 0x243   : > { %7834 = vmatmul.mubr.bf16.vlgmr.msra.gmra.mxu1 %v9930_v31  ;;  %7881 = vmatprep.mubr.bf16.mxu0 %v9688_v62  ;;  %v8270_v62 = vld [vmem:[%s10927_s6 + $0x120] sm:$0xff]   ;;  %v10030_v35 = vpack.c.bf16 %v3775_v53, %v3774_v16  ;;  %v4359_v22 = vld [vmem:[#allocation2 + $0x30] sm:$0xff]  ;;  %v4358_v2 = vld [vmem:[#allocation2 + $0x28] sm:$0xff] }
 0x244   : > { %7837 = vmatprep.mubr.bf16.mxu1 %v9932_v19  ;;  %7914 = vmatpush3.bf16.msra.mxu1 %v9832_v1  ;;  %v8273_v1 = vld [vmem:[%s10927_s6 + $0x170] sm:$0xff]   ;;  %v4390_v46 = vpack.c.bf16 %v4359_v22, %v4358_v2  ;;  %v8285_v23 = vld [vmem:[%s10927_s6 + $0x1a8] sm:$0xff]   ;;  %v8299_v16 = vld [vmem:[%s10927_s6 + $0x238] sm:$0xff]  }
 0x245   : > { %7915 = vmatprep.subr.bf16.mxu1 %v8268_v24  ;;  %v4366_v20 = vld [vmem:[#allocation2 + $0xa8] sm:$0xff]  ;;  %v8290_v32 = vld [vmem:[%s10927_s6 + $0x190] sm:$0xff]  }
 0x246   : > { %v4372_v51 = vld [vmem:[#allocation2 + $0x108] sm:$0xff]  ;;  %v4381_v22 = vld [vmem:[#allocation2 + $0x190] sm:$0xff] }
 0x247   : > { %v4376_v53 = vld [vmem:[#allocation2 + $0x148] sm:$0xff]  ;;  %v8300_v61 = vld [vmem:[%s10927_s6 + $0x230] sm:$0xff]  }
 0x248   : > { %7916 = vmatpush3.bf16.msra.mxu1 %v8268_v24  ;;  %v4380_v2 = vld [vmem:[#allocation2 + $0x188] sm:$0xff] }
 0x249   : > { %7917 = vmatprep.subr.bf16.mxu1 %v8269_v28 }
 0x24a   : > { %7882 = vmatmul.mubr.bf16.vlgmr.msra.gmra.mxu0 %v9690_v3  ;;  %v8275_v3 = vld [vmem:[%s10927_s6 + $0x168] sm:$0xff]  }
 0x24b   : > { %7838 = vmatmul.mubr.bf16.gmra.mxu1 %v9945_v49  ;;  %7885 = vmatprep.mubr.bf16.mxu0 %v9740_v5  ;;  %v9966_v5 = vpack.c.bf16 %v3757_v47, %v3756_v9 }
 0x24c   : > { %7841 = vmatprep.mubr.bf16.mxu1 %v9947_v27  ;;  %7918 = vmatpush3.bf16.msra.mxu1 %v8269_v28 }
 0x24d   : > { %7962 = vmatpush3.bf16.msra.mxu0 %v9874_v14  ;;  %7919 = vmatprep.subr.bf16.mxu1 %v8270_v62  ;;  %v8274_v14 = vld [vmem:[%s10927_s6 + $0x110] sm:$0xff]  }
 0x24e   : > { %7963 = vmatprep.subr.bf16.mxu0 %v8273_v1 }
 0x250   : > { %7920 = vmatpush3.bf16.msra.mxu1 %v8270_v62  ;;  %v4361_v62 = vld [vmem:[#allocation2 + $0x50] sm:$0xff] }
 0x251   : > { %7964 = vmatpush3.bf16.msra.mxu0 %v8273_v1  ;;  %7921 = vmatprep.subr.bf16.mxu1 %v8271_v50  ;;  %v4363_v1 = vld [vmem:[#allocation2 + $0x70] sm:$0xff] }
 0x252   : > { %7965 = vmatprep.subr.bf16.mxu0 %v8275_v3  ;;  %7886 = vmatmul.mubr.bf16.gmra.mxu0 %v9742_v57  ;;  %v8278_v57 = vld [vmem:[%s10927_s6 + $0x158] sm:$0xff]  }
 0x253   : > { %7842 = vmatmul.mubr.bf16.gmra.mxu1 %v9966_v5  ;;  %7889 = vmatprep.mubr.bf16.mxu0 %v9792_v60  ;;  %v9988_v60 = vpack.c.bf16 %v3763_v40, %v3762_v21  ;;  %v4369_v21 = vld [vmem:[#allocation2 + $0xd0] sm:$0xff]  ;;  %v8287_v40 = vld [vmem:[%s10927_s6 + $0x198] sm:$0xff]  }
 0x254   : > { %7845 = vmatprep.mubr.bf16.mxu1 %v9968_v11  ;;  %7922 = vmatpush3.bf16.msra.mxu1 %v8271_v50  ;;  %v4360_v50 = vld [vmem:[#allocation2 + $0x48] sm:$0xff] }
 0x255   : > { %7966 = vmatpush3.bf16.msra.mxu0 %v8275_v3  ;;  %7923 = vmatprep.subr.bf16.mxu1 %v8274_v14  ;;  %v10043_v47 = vpack.c.bf16 %v4361_v62, %v4360_v50  ;;  %v4362_v3 = vld [vmem:[#allocation2 + $0x68] sm:$0xff] }
 0x256   : > { %7967 = vmatprep.subr.bf16.mxu0 %v8276_v34  ;;  %v10045_v26 = vpack.c.bf16 %v4363_v1, %v4362_v3  ;;  %v4976_v62 = vld [vmem:[#allocation2 + $0x8f] sm:$0xff]  ;;  %v4975_v50 = vld [vmem:[#allocation2 + $0x87] sm:$0xff] }
 0x257   : > { %v5005_v3 = vpack.c.bf16 %v4976_v62, %v4975_v50  ;;  %v4987_v62 = vld [vmem:[#allocation2 + $0x147] sm:$0xff] }
 0x258   : > { %7924 = vmatpush3.bf16.msra.mxu1 %v8274_v14  ;;  %v4367_v14 = vld [vmem:[#allocation2 + $0xb0] sm:$0xff]  ;;  %v8306_v50 = vld [vmem:[%s10927_s6 + $0x200] sm:$0xff]  }
 0x259   : > { %7968 = vmatpush3.bf16.msra.mxu0 %v8276_v34  ;;  %7925 = vmatprep.subr.bf16.mxu1 %v8277_v58  ;;  %v4364_v34 = vld [vmem:[#allocation2 + $0x88] sm:$0xff]  ;;  %v10059_v33 = vpack.c.bf16 %v4367_v14, %v4366_v20 }
 0x25a   : > { %7969 = vmatprep.subr.bf16.mxu0 %v8278_v57  ;;  %7890 = vmatmul.mubr.bf16.gmra.mxu0 %v9794_v29  ;;  %v8283_v29 = vld [vmem:[%s10927_s6 + $0x1b8] sm:$0xff]   ;;  %v4977_v14 = vld [vmem:[#allocation2 + $0xa7] sm:$0xff] }
 0x25b   : > { %7846 = vmatmul.mubr.bf16.gmra.mxu1 %v9986_v10  ;;  %7893 = vmatprep.mubr.bf16.mxu0 %v9844_v6  ;;  %v10008_v6 = vpack.c.bf16 %v3767_v43, %v3766_v36  ;;  %v4373_v36 = vld [vmem:[#allocation2 + $0x110] sm:$0xff]  ;;  %v8293_v43 = vld [vmem:[%s10927_s6 + $0x188] sm:$0xff]  }
 0x25c   : > { %7849 = vmatprep.mubr.bf16.mxu1 %v9988_v60  ;;  %7926 = vmatpush3.bf16.msra.mxu1 %v8277_v58  ;;  %v10097_v44 = vpack.c.bf16 %v4373_v36, %v4372_v51 }
 0x25d   : > { %7970 = vmatpush3.bf16.msra.mxu0 %v8278_v57  ;;  %7927 = vmatprep.subr.bf16.mxu1 %v8280_v38  ;;  %v8289_v57 = vld [vmem:[%s10927_s6 + $0x1f0] sm:$0xff]  }
 0x25e   : > { %7971 = vmatprep.subr.bf16.mxu0 %v8279_v30 }
 0x260   : > { %7928 = vmatpush3.bf16.msra.mxu1 %v8280_v38  ;;  %v4368_v38 = vld [vmem:[#allocation2 + $0xc8] sm:$0xff] }
 0x261   : > { %7972 = vmatpush3.bf16.msra.mxu0 %v8279_v30  ;;  %8009 = vmatprep.subr.bf16.mxu1 %v8283_v29  ;;  %v8291_v30 = vld [vmem:[%s10927_s6 + $0x1e8] sm:$0xff]  }
 0x262   : > { %7973 = vmatprep.subr.bf16.mxu0 %v8281_v0  ;;  %7894 = vmatmul.mubr.bf16.gmra.mxu0 %v9846_v37  ;;  %v10022_v37 = vpack.c.bf16 %v3771_v15, %v3770_v59  ;;  %v8295_v59 = vld [vmem:[%s10927_s6 + $0x1d0] sm:$0xff]   ;;  %v8296_v15 = vld [vmem:[%s10927_s6 + $0x180] sm:$0xff]  }
 0x263   : > { %7850 = vmatmul.mubr.bf16.gmra.mxu1 %v10006_v63  ;;  %7897 = vmatprep.mubr.bf16.mxu0 %v9882_v52  ;;  %v3772_v52 = vld [vmem:[#allocation2 + $0x1a9] sm:$0xff] }
 0x264   : > { %7853 = vmatprep.mubr.bf16.mxu1 %v10008_v6  ;;  %v10028_v24 = vpack.c.bf16 %v3773_v41, %v3772_v52  ;;  %v4377_v52 = vld [vmem:[#allocation2 + $0x150] sm:$0xff]  ;;  %v8297_v41 = vld [vmem:[%s10927_s6 + $0x1c8] sm:$0xff]  }
 0x265   : > { %7974 = vmatpush3.bf16.msra.mxu0 %v8281_v0  ;;  %v10077_v0 = vpack.c.bf16 %v4369_v21, %v4368_v38 }
 0x266   : > { %7975 = vmatprep.subr.bf16.mxu0 %v8282_v56 }
 0x269   : > { %7976 = vmatpush3.bf16.msra.mxu0 %v8282_v56  ;;  %v8294_v56 = vld [vmem:[%s10927_s6 + $0x1d8] sm:$0xff]  }
 0x26a   : > { %8057 = vmatprep.subr.bf16.mxu0 %v8288_v18  ;;  %7898 = vmatmul.mubr.bf16.gmra.mxu0 %v9884_v8  ;;  %v3776_v8 = vld [vmem:[#allocation2 + $0x1e9] sm:$0xff] }
 0x26b   : > { %7854 = vmatmul.mubr.bf16.gmra.mxu1 %v10020_v17  ;;  %7901 = vmatprep.mubr.bf16.mxu0 %v9902_v12  ;;  %v3777_v12 = vld [vmem:[#allocation2 + $0x1f1] sm:$0xff] }
 0x26c   : > { %7857 = vmatprep.mubr.bf16.mxu1 %v10022_v37  ;;  %v10036_v28 = vpack.c.bf16 %v3777_v12, %v3776_v8  ;;  %v10119_v8 = vpack.c.bf16 %v4377_v52, %v4376_v53  ;;  %v8298_v12 = vld [vmem:[%s10927_s6 + $0x1c0] sm:$0xff]  }
 0x272   : > { %7902 = vmatmul.mubr.bf16.gmra.mxu0 %v9910_v42  ;;  %v4083_v42 = vld [vmem:[#allocation2 + $0x20f] sm:$0xff] }
 0x273   : > { %7858 = vmatmul.mubr.bf16.gmra.mxu1 %v10028_v24  ;;  %7905 = vmatprep.mubr.bf16.mxu0 %v9919_v45  ;;  %v4082_v45 = vld [vmem:[#allocation2 + $0x207] sm:$0xff] }
 0x274   : > { %7861 = vmatprep.mubr.bf16.mxu1 %v10030_v35  ;;  %v10041_v9 = vpack.c.bf16 %v4083_v42, %v4082_v45 }
 0x27a   : > { %7906 = vmatmul.mubr.bf16.gmra.mxu0 %v9923_v54  ;;  %v8284_v54 = vld [vmem:[%s10927_s6 + $0x1b0] sm:$0xff]  }
 0x27b   : > { %7862 = vmatmul.mubr.bf16.gmra.mxu1 %v10036_v28  ;;  %7909 = vmatprep.mubr.bf16.mxu0 %v9928_v48  ;;  %v4365_v48 = vld [vmem:[#allocation2 + $0x90] sm:$0xff] }
 0x27c   : > { %7929 = vmatprep.mubr.bf16.mxu1 %v4390_v46  ;;  %v10057_v58 = vpack.c.bf16 %v4365_v48, %v4364_v34  ;;  %v10129_v46 = vpack.c.bf16 %v4381_v22, %v4380_v2 }
 0x282   : > { %7910 = vmatmul.mubr.bf16.gmra.mxu0 %v10041_v9 }
 0x283   : > { %7930 = vmatmul.mubr.bf16.vlgmr.msra.gmra.mxu1 %v10043_v47  ;;  %7977 = vmatprep.mubr.bf16.mxu0 %v9930_v31  ;;  %v8286_v31 = vld [vmem:[%s10927_s6 + $0x1a0] sm:$0xff]  }
 0x284   : > { %7933 = vmatprep.mubr.bf16.mxu1 %v10045_v26  ;;  %8010 = vmatpush3.bf16.msra.mxu1 %v8283_v29  ;;  %v8292_v29 = vld [vmem:[%s10927_s6 + $0x1e0] sm:$0xff]  }
 0x285   : > { %8011 = vmatprep.subr.bf16.mxu1 %v8284_v54 }
 0x288   : > { %8012 = vmatpush3.bf16.msra.mxu1 %v8284_v54  ;;  %v8301_v54 = vld [vmem:[%s10927_s6 + $0x228] sm:$0xff]  }
 0x289   : > { %8013 = vmatprep.subr.bf16.mxu1 %v8285_v23 }
 0x28a   : > { %7978 = vmatmul.mubr.bf16.vlgmr.msra.gmra.mxu0 %v9932_v19  ;;  %v4371_v19 = vld [vmem:[#allocation2 + $0xf0] sm:$0xff] }
 0x28b   : > { %7934 = vmatmul.mubr.bf16.gmra.mxu1 %v10057_v58  ;;  %7981 = vmatprep.mubr.bf16.mxu0 %v9945_v49  ;;  %v4370_v49 = vld [vmem:[#allocation2 + $0xe8] sm:$0xff] }
 0x28c   : > { %7937 = vmatprep.mubr.bf16.mxu1 %v10059_v33  ;;  %8014 = vmatpush3.bf16.msra.mxu1 %v8285_v23  ;;  %v10079_v7 = vpack.c.bf16 %v4371_v19, %v4370_v49  ;;  %v4980_v23 = vld [vmem:[#allocation2 + $0xcf] sm:$0xff] }
 0x28d   : > { %8058 = vmatpush3.bf16.msra.mxu0 %v8288_v18  ;;  %8015 = vmatprep.subr.bf16.mxu1 %v8286_v31 }
 0x28e   : > { %8059 = vmatprep.subr.bf16.mxu0 %v8289_v57 }
 0x290   : > { %8016 = vmatpush3.bf16.msra.mxu1 %v8286_v31  ;;  %v4979_v31 = vld [vmem:[#allocation2 + $0xc7] sm:$0xff] }
 0x291   : > { %8060 = vmatpush3.bf16.msra.mxu0 %v8289_v57  ;;  %8017 = vmatprep.subr.bf16.mxu1 %v8287_v40  ;;  %v5007_v57 = vpack.c.bf16 %v4980_v23, %v4979_v31 }
 0x292   : > { %8061 = vmatprep.subr.bf16.mxu0 %v8291_v30  ;;  %7982 = vmatmul.mubr.bf16.gmra.mxu0 %v9947_v27  ;;  %v4375_v27 = vld [vmem:[#allocation2 + $0x130] sm:$0xff] }
 0x293   : > { %7938 = vmatmul.mubr.bf16.gmra.mxu1 %v10077_v0  ;;  %7985 = vmatprep.mubr.bf16.mxu0 %v9966_v5  ;;  %v4374_v5 = vld [vmem:[#allocation2 + $0x128] sm:$0xff] }
 0x294   : > { %7941 = vmatprep.mubr.bf16.mxu1 %v10079_v7  ;;  %8018 = vmatpush3.bf16.msra.mxu1 %v8287_v40  ;;  %v10099_v18 = vpack.c.bf16 %v4375_v27, %v4374_v5  ;;  %v4981_v27 = vld [vmem:[#allocation2 + $0xe7] sm:$0xff] }
 0x295   : > { %8062 = vmatpush3.bf16.msra.mxu0 %v8291_v30  ;;  %8019 = vmatprep.subr.bf16.mxu1 %v8290_v32 }
 0x296   : > { %8063 = vmatprep.subr.bf16.mxu0 %v8292_v29 }
 0x298   : > { %8020 = vmatpush3.bf16.msra.mxu1 %v8290_v32  ;;  %v4982_v32 = vld [vmem:[#allocation2 + $0xef] sm:$0xff] }
 0x299   : > { %8064 = vmatpush3.bf16.msra.mxu0 %v8292_v29  ;;  %8021 = vmatprep.subr.bf16.mxu1 %v8293_v43  ;;  %v8303_v29 = vld [vmem:[%s10927_s6 + $0x218] sm:$0xff]   ;;  %v5008_v5 = vpack.c.bf16 %v4982_v32, %v4981_v27  ;;  %v4994_v27 = vld [vmem:[#allocation2 + $0x1af] sm:$0xff] }
 0x29a   : > { %8065 = vmatprep.subr.bf16.mxu0 %v8294_v56  ;;  %7986 = vmatmul.mubr.bf16.gmra.mxu0 %v9968_v11  ;;  %v10117_v11 = vld [vmem:[#allocation2 + $0x168] sm:$0xff] }
 0x29b   : > { %7942 = vmatmul.mubr.bf16.gmra.mxu1 %v10097_v44  ;;  %7989 = vmatprep.mubr.bf16.mxu0 %v9986_v10  ;;  %v4400_v10 = vpack.c.bf16 %v9867_v13, %v10117_v11  ;;  %v10135_v13 = vld [vmem:[#allocation2 + $0x1c8] sm:$0xff] }
 0x29c   : > { %7945 = vmatprep.mubr.bf16.mxu1 %v10099_v18  ;;  %8022 = vmatpush3.bf16.msra.mxu1 %v8293_v43  ;;  %v4984_v43 = vld [vmem:[#allocation2 + $0x10f] sm:$0xff] }
 0x29d   : > { %8066 = vmatpush3.bf16.msra.mxu0 %v8294_v56  ;;  %8023 = vmatprep.subr.bf16.mxu1 %v8296_v15 }
 0x29e   : > { %8067 = vmatprep.subr.bf16.mxu0 %v8295_v59 }
 0x2a0   : > { %8024 = vmatpush3.bf16.msra.mxu1 %v8296_v15 }
 0x2a1   : > { %8068 = vmatpush3.bf16.msra.mxu0 %v8295_v59  ;;  %8105 = vmatprep.subr.bf16.mxu1 %v8299_v16  ;;  %v4983_v59 = vld [vmem:[#allocation2 + $0x107] sm:$0xff] }
 0x2a2   : > { %8069 = vmatprep.subr.bf16.mxu0 %v8297_v41  ;;  %7990 = vmatmul.mubr.bf16.gmra.mxu0 %v9988_v60  ;;  %v4403_v60 = vpack.c.bf16 %v9891_v4, %v10135_v13  ;;  %v4694_v4 = vld [vmem:[#allocation2 + $0x209] sm:$0xff]  ;;  %v5009_v52 = vpack.c.bf16 %v4984_v43, %v4983_v59 }
 0x2a3   : > { %7946 = vmatmul.mubr.bf16.gmra.mxu1 %v10119_v8  ;;  %7993 = vmatprep.mubr.bf16.mxu0 %v10006_v63  ;;  %v10142_v63 = vld [vmem:[#allocation2 + $0x208] sm:$0xff]  ;;  %v5296_v43 = vld [vmem:[#allocation2 + $0x170] sm:$0xff] }
 0x2a4   : > { %7949 = vmatprep.mubr.bf16.mxu1 %v4400_v10 }
 0x2a5   : > { %8070 = vmatpush3.bf16.msra.mxu0 %v8297_v41  ;;  %v8304_v41 = vld [vmem:[%s10927_s6 + $0x210] sm:$0xff]  }
 0x2a6   : > { %8071 = vmatprep.subr.bf16.mxu0 %v8298_v12 }
 0x2a9   : > { %8072 = vmatpush3.bf16.msra.mxu0 %v8298_v12 }
 0x2aa   : > { %7994 = vmatmul.mubr.bf16.gmra.mxu0 %v10008_v6  ;;  %v4972_v6 = vld [vmem:[#allocation2 + $0x4f] sm:$0xff] }
 0x2ab   : > { %7950 = vmatmul.mubr.bf16.gmra.mxu1 %v10129_v46  ;;  %7997 = vmatprep.mubr.bf16.mxu0 %v10020_v17  ;;  %v4405_v17 = vpack.c.bf16 %v3120_v39, %v10142_v63 }
 0x2ac   : > { %7953 = vmatprep.mubr.bf16.mxu1 %v9904_v25  ;;  %v4971_v25 = vld [vmem:[#allocation2 + $0x47] sm:$0xff] }
 0x2ad   : > { %v5003_v42 = vpack.c.bf16 %v4972_v6, %v4971_v25  ;;  %v8305_v6 = vld [vmem:[%s10927_s6 + $0x208] sm:$0xff]  }
 0x2ae   : > { %v4988_v25 = vld [vmem:[#allocation2 + $0x14f] sm:$0xff] }
 0x2b2   : > { %7998 = vmatmul.mubr.bf16.gmra.mxu0 %v10022_v37  ;;  %v4695_v37 = vld [vmem:[#allocation2 + $0x211] sm:$0xff] }
 0x2b3   : > { %7954 = vmatmul.mubr.bf16.gmra.mxu1 %v4403_v60  ;;  %8001 = vmatprep.mubr.bf16.mxu0 %v10028_v24  ;;  %v4974_v24 = vld [vmem:[#allocation2 + $0x6f] sm:$0xff]  ;;  %v10149_v1 = vpack.c.bf16 %v4695_v37, %v4694_v4  ;;  %v4985_v4 = vld [vmem:[#allocation2 + $0x127] sm:$0xff] }
 0x2b4   : > { %7957 = vmatprep.mubr.bf16.mxu1 %v9921_v55  ;;  %v4973_v55 = vld [vmem:[#allocation2 + $0x67] sm:$0xff]  ;;  %v4986_v60 = vld [vmem:[#allocation2 + $0x12f] sm:$0xff] }
 0x2b5   : > { %v5004_v45 = vpack.c.bf16 %v4974_v24, %v4973_v55  ;;  %v5010_v24 = vpack.c.bf16 %v4986_v60, %v4985_v4 }
 0x2ba   : > { %8002 = vmatmul.mubr.bf16.gmra.mxu0 %v10030_v35 }
 0x2bb   : > { %7958 = vmatmul.mubr.bf16.gmra.mxu1 %v4405_v17  ;;  %8005 = vmatprep.mubr.bf16.mxu0 %v10036_v28  ;;  %v4978_v28 = vld [vmem:[#allocation2 + $0xaf] sm:$0xff] }
 0x2bc   : > { %8025 = vmatprep.mubr.bf16.mxu1 %v5003_v42  ;;  %v5006_v20 = vpack.c.bf16 %v4978_v28, %v4977_v14 }
 0x2c1   : > { %v7739_v39 = vpop.f32.mrf.mxu1 }
 0x2c2   : > { %8006 = vmatmul.mubr.bf16.gmra.mxu0 %v10149_v1 }
 0x2c3   : > { %8026 = vmatmul.mubr.bf16.vlgmr.msra.gmra.mxu1 %v5004_v45  ;;  %8073 = vmatprep.mubr.bf16.mxu0 %v10043_v47  ;;  %v3410_v35 = vpop.f32.mrf.mxu1  ;;  %v8302_v47 = vld [vmem:[%s10927_s6 + $0x220] sm:$0xff]   ;;  %v5011_v45 = vpack.c.bf16 %v4988_v25, %v4987_v62 }
 0x2c4   : > { %8029 = vmatprep.mubr.bf16.mxu1 %v5005_v3  ;;  %8106 = vmatpush3.bf16.msra.mxu1 %v8299_v16 }
 0x2c5   : > { %8107 = vmatprep.subr.bf16.mxu1 %v8300_v61  ;;  %v7740_v48 = vpop.f32.mrf.mxu1 }
 0x2c7   : > { %v3413_v34 = vpop.f32.mrf.mxu1 }
 0x2c8   : > { %8108 = vmatpush3.bf16.msra.mxu1 %v8300_v61 }
 0x2c9   : > { %8109 = vmatprep.subr.bf16.mxu1 %v8301_v54  ;;  %v7787_v21 = vpop.f32.mrf.mxu0  ;;  %v7743_v40 = vpop.f32.mrf.mxu1 }
 0x2ca   : > { %8074 = vmatmul.mubr.bf16.vlgmr.msra.gmra.mxu0 %v10045_v26  ;;  %v10163_v30 = vadd.f32 %v7787_v21, %v7739_v39  ;;  %v4991_v21 = vld [vmem:[#allocation2 + $0x187] sm:$0xff] }
 0x2cb   : > { %8030 = vmatmul.mubr.bf16.gmra.mxu1 %v5006_v20  ;;  %8077 = vmatprep.mubr.bf16.mxu0 %v10057_v58  ;;  %v3619_v19 = vpop.f32.mrf.mxu0  ;;  %v3426_v38 = vpop.f32.mrf.mxu1 }
 0x2cc   : > { %8033 = vmatprep.mubr.bf16.mxu1 %v5007_v57  ;;  %8110 = vmatpush3.bf16.msra.mxu1 %v8301_v54  ;;  %v10166_v49 = vadd.f32 %v3619_v19, %v3410_v35 }
 0x2cd   : > { %8111 = vmatprep.subr.bf16.mxu1 %v8302_v47  ;;  %v7788_v36 = vpop.f32.mrf.mxu0  ;;  %v7744_v26 = vpop.f32.mrf.mxu1 }
 0x2ce   : > { %v10171_v56 = vadd.f32 %v7788_v36, %v7740_v48  ;;  %v4990_v48 = vld [vmem:[#allocation2 + $0x16f] sm:$0xff] }
 0x2cf   : > { %v3622_v51 = vpop.f32.mrf.mxu0  ;;  %v3429_v58 = vpop.f32.mrf.mxu1 }
 0x2d0   : > { %8112 = vmatpush3.bf16.msra.mxu1 %v8302_v47  ;;  %v10173_v15 = vadd.f32 %v3622_v51, %v3413_v34  ;;  %v4992_v34 = vld [vmem:[#allocation2 + $0x18f] sm:$0xff] }
 0x2d1   : > { %8113 = vmatprep.subr.bf16.mxu1 %v8303_v29 }
 0x2d2   : > { %v7791_v16 = vpop.f32.mrf.mxu0  ;;  %8078 = vmatmul.mubr.bf16.gmra.mxu0 %v10059_v33  ;;  %v7747_v53 = vpop.f32.mrf.mxu1 }
 0x2d3   : > { %8034 = vmatmul.mubr.bf16.gmra.mxu1 %v5008_v5  ;;  %v10179_v10 = vadd.f32 %v7791_v16, %v7743_v40  ;;  %8081 = vmatprep.mubr.bf16.mxu0 %v10077_v0  ;;  %v5013_v40 = vpack.c.bf16 %v4992_v34, %v4991_v21  ;;  %v4996_v5 = vld [vmem:[#allocation2 + $0x1cf] sm:$0xff] }
 0x2d4   : > { %8037 = vmatprep.mubr.bf16.mxu1 %v5009_v52  ;;  %v3635_v12 = vpop.f32.mrf.mxu0  ;;  %v3442_v22 = vpop.f32.mrf.mxu1  ;;  %8114 = vmatpush3.bf16.msra.mxu1 %v8303_v29  ;;  %v4993_v52 = vld [vmem:[#allocation2 + $0x1a7] sm:$0xff] }
 0x2d5   : > { %v10182_v2 = vadd.f32 %v3635_v12, %v3426_v38  ;;  %8115 = vmatprep.subr.bf16.mxu1 %v8304_v41  ;;  %v4995_v12 = vld [vmem:[#allocation2 + $0x1c7] sm:$0xff] }
 0x2d6   : > { %v7792_v17 = vpop.f32.mrf.mxu0  ;;  %v7748_v33 = vpop.f32.mrf.mxu1 }
 0x2d7   : > { %v10187_v42 = vadd.f32 %v7792_v17, %v7744_v26 }
 0x2d8   : > { %v3638_v37 = vpop.f32.mrf.mxu0  ;;  %v3445_v0 = vpop.f32.mrf.mxu1  ;;  %8116 = vmatpush3.bf16.msra.mxu1 %v8304_v41  ;;  %v5318_v41 = vpack.c.bf16 %v5296_v43, %v10117_v11  ;;  %v5300_v11 = vld [vmem:[#allocation2 + $0x1b0] sm:$0xff] }
 0x2d9   : > { %v10189_v55 = vadd.f32 %v3638_v37, %v3429_v58  ;;  %8117 = vmatprep.subr.bf16.mxu1 %v8305_v6  ;;  %v4998_v37 = vld [vmem:[#allocation2 + $0x1ef] sm:$0xff] }
 0x2da   : > { %v7795_v3 = vpop.f32.mrf.mxu0  ;;  %8082 = vmatmul.mubr.bf16.gmra.mxu0 %v10079_v7  ;;  %v7751_v61 = vpop.f32.mrf.mxu1  ;;  %v4989_v7 = vld [vmem:[#allocation2 + $0x167] sm:$0xff] }
 0x2db   : > { %8038 = vmatmul.mubr.bf16.gmra.mxu1 %v5010_v24  ;;  %v10195_v39 = vadd.f32 %v7795_v3, %v7747_v53  ;;  %8085 = vmatprep.mubr.bf16.mxu0 %v10097_v44  ;;  %v5012_v47 = vpack.c.bf16 %v4990_v48, %v4989_v7  ;;  %v5014_v53 = vpack.c.bf16 %v4994_v27, %v4993_v52  ;;  %v5302_v24 = vld [vmem:[#allocation2 + $0x1d0] sm:$0xff]  ;;  %v4997_v3 = vld [vmem:[#allocation2 + $0x1e7] sm:$0xff] }
 0x2dc   : > { %8041 = vmatprep.mubr.bf16.mxu1 %v5011_v45  ;;  %v3651_v35 = vpop.f32.mrf.mxu0  ;;  %v3458_v28 = vpop.f32.mrf.mxu1  ;;  %8118 = vmatpush3.bf16.msra.mxu1 %v8305_v6  ;;  %v5016_v48 = vpack.c.bf16 %v4998_v37, %v4997_v3  ;;  %v5583_v43 = vld [vmem:[#allocation2 + $0x49] sm:$0xff]  ;;  %v5584_v27 = vld [vmem:[#allocation2 + $0x51] sm:$0xff] }
 0x2dd   : > { %v10198_v54 = vadd.f32 %v3651_v35, %v3442_v22  ;;  %8119 = vmatprep.subr.bf16.mxu1 %v8306_v50  ;;  %v5015_v22 = vpack.c.bf16 %v4996_v5, %v4995_v12 }
 0x2de   : > { %v7796_v23 = vpop.f32.mrf.mxu0  ;;  %v7752_v14 = vpop.f32.mrf.mxu1 }
 0x2df   : > { %v10200_v20 = vadd.f32 %v7796_v23, %v7748_v33 }
 0x2e0   : > { %v3654_v31 = vpop.f32.mrf.mxu0  ;;  %v3461_v57 = vpop.f32.mrf.mxu1  ;;  %8120 = vmatpush3.bf16.msra.mxu1 %v8306_v50  ;;  %v5299_v50 = vld [vmem:[#allocation2 + $0x1a8] sm:$0xff] }
 0x2e1   : > { %v10202_v44 = vadd.f32 %v3654_v31, %v3445_v0  ;;  %v5320_v35 = vpack.c.bf16 %v5300_v11, %v5299_v50  ;;  %v5001_v31 = vld [vmem:[#allocation2 + $0x227] sm:$0xff]  ;;  %v5586_v11 = vld [vmem:[#allocation2 + $0x71] sm:$0xff] }
 0x2e2   : > { %v7799_v19 = vpop.f32.mrf.mxu0  ;;  %8086 = vmatmul.mubr.bf16.gmra.mxu0 %v10099_v18  ;;  %v5588_v50 = vld [vmem:[#allocation2 + $0x91] sm:$0xff] }
 0x2e3   : > { %v7755_v38 = vpop.f32.mrf.mxu1  ;;  %8042 = vmatmul.mubr.bf16.gmra.mxu1 %v5012_v47  ;;  %v10205_v32 = vadd.f32 %v7799_v19, %v7751_v61  ;;  %8089 = vmatprep.mubr.bf16.mxu0 %v10119_v8  ;;  %v5304_v19 = vld [vmem:[#allocation2 + $0x1f0] sm:$0xff] }
 0x2e4   : > { %8045 = vmatprep.mubr.bf16.mxu1 %v5013_v40  ;;  %v3667_v29 = vpop.f32.mrf.mxu0 }
 0x2e5   : > { %v3474_v36 = vpop.f32.mrf.mxu1  ;;  %v10208_v26 = vadd.f32 %v3667_v29, %v3458_v28  ;;  %v5306_v29 = vld [vmem:[#allocation2 + $0x210] sm:$0xff] }
 0x2e6   : > { %v7800_v51 = vpop.f32.mrf.mxu0 }
 0x2e7   : > { %v7756_v58 = vpop.f32.mrf.mxu1  ;;  %v10210_v59 = vadd.f32 %v7800_v51, %v7752_v14 }
 0x2e8   : > { %v3670_v18 = vpop.f32.mrf.mxu0 }
 0x2e9   : > { %v3477_v16 = vpop.f32.mrf.mxu1  ;;  %v10213_v8 = vadd.f32 %v3670_v18, %v3461_v57  ;;  %v5002_v57 = vld [vmem:[#allocation2 + $0x22f] sm:$0xff] }
 0x2ea   : > { %v7803_v60 = vpop.f32.mrf.mxu0  ;;  %8090 = vmatmul.mubr.bf16.gmra.mxu0 %v5318_v41  ;;  %v5323_v41 = vpack.c.bf16 %v5306_v29, %v10142_v63  ;;  %v5587_v63 = vld [vmem:[#allocation2 + $0x89] sm:$0xff] }
 0x2eb   : > { %v7759_v6 = vpop.f32.mrf.mxu1  ;;  %8046 = vmatmul.mubr.bf16.gmra.mxu1 %v5014_v53  ;;  %v10215_v17 = vadd.f32 %v7803_v60, %v7755_v38  ;;  %8093 = vmatprep.mubr.bf16.mxu0 %v10129_v46  ;;  %v5321_v46 = vpack.c.bf16 %v5302_v24, %v10135_v13  ;;  %v5018_v13 = vpack.c.bf16 %v5002_v57, %v5001_v31  ;;  %v5589_v29 = vld [vmem:[#allocation2 + $0xa9] sm:$0xff] }
 0x2ec   : > { %8049 = vmatprep.mubr.bf16.mxu1 %v5015_v22  ;;  %v3683_v33 = vpop.f32.mrf.mxu0 }
 0x2ed   : > { %v3490_v25 = vpop.f32.mrf.mxu1  ;;  %v10218_v4 = vadd.f32 %v3683_v33, %v3474_v36 }
 0x2ee   : > { %v7804_v0 = vpop.f32.mrf.mxu0 }
 0x2ef   : > { %v7760_v62 = vpop.f32.mrf.mxu1  ;;  %v10220_v45 = vadd.f32 %v7804_v0, %v7756_v58  ;;  %v5303_v58 = vld [vmem:[#allocation2 + $0x1e8] sm:$0xff] }
 0x2f0   : > { %v3686_v61 = vpop.f32.mrf.mxu0  ;;  %v5322_v52 = vpack.c.bf16 %v5304_v19, %v5303_v58  ;;  %v8307_v0 = vld [vmem:[#allocation2 + $0x8] sm:$0xff]  ;;  %v5592_v58 = vld [vmem:[#allocation2 + $0xd1] sm:$0xff] }
 0x2f1   : > { %v3493_v28 = vpop.f32.mrf.mxu1  ;;  %v10222_v23 = vadd.f32 %v3686_v61, %v3477_v16  ;;  %v5615_v16 = vpack.c.bf16 %v5584_v27, %v5583_v43  ;;  %v5324_v24 = vpack.c.bf16 %v8307_v0, %v8307_v0  ;;  %v5591_v27 = vld [vmem:[#allocation2 + $0xc9] sm:$0xff] }
 0x2f2   : > { %v7807_v14 = vpop.f32.mrf.mxu0  ;;  %8094 = vmatmul.mubr.bf16.gmra.mxu0 %v5320_v35 }
 0x2f3   : > { %v7763_v34 = vpop.f32.mrf.mxu1  ;;  %8050 = vmatmul.mubr.bf16.gmra.mxu1 %v5016_v48  ;;  %v10225_v7 = vadd.f32 %v7807_v14, %v7759_v6  ;;  %8097 = vmatprep.mubr.bf16.mxu0 %v5321_v46  ;;  %v5617_v46 = vpack.c.bf16 %v5588_v50, %v5587_v63 }
 0x2f4   : > { %8053 = vmatprep.mubr.bf16.mxu1 %v10041_v9  ;;  %v3699_v47 = vpop.f32.mrf.mxu0 }
 0x2f5   : > { %v3506_v21 = vpop.f32.mrf.mxu1  ;;  %v10228_v40 = vadd.f32 %v3699_v47, %v3490_v25  ;;  %v5585_v25 = vld [vmem:[#allocation2 + $0x69] sm:$0xff] }
 0x2f6   : > { %v7808_v38 = vpop.f32.mrf.mxu0 }
 0x2f7   : > { %v7764_v36 = vpop.f32.mrf.mxu1  ;;  %v10230_v51 = vadd.f32 %v7808_v38, %v7760_v62 }
 0x2f8   : > { %v3702_v5 = vpop.f32.mrf.mxu0 }
 0x2f9   : > { %v3509_v18 = vpop.f32.mrf.mxu1  ;;  %v10232_v9 = vadd.f32 %v3702_v5, %v3493_v28  ;;  %v5616_v28 = vpack.c.bf16 %v5586_v11, %v5585_v25 }
 0x2fa   : > { %v7811_v53 = vpop.f32.mrf.mxu0  ;;  %8098 = vmatmul.mubr.bf16.gmra.mxu0 %v5322_v52 }
 0x2fb   : > { %v7767_v12 = vpop.f32.mrf.mxu1  ;;  %8054 = vmatmul.mubr.bf16.gmra.mxu1 %v5018_v13  ;;  %v10235_v22 = vadd.f32 %v7811_v53, %v7763_v34  ;;  %8101 = vmatprep.mubr.bf16.mxu0 %v5323_v41 }
 0x2fc   : > { %8121 = vmatprep.mubr.bf16.mxu1 %v5615_v16  ;;  %v3715_v60 = vpop.f32.mrf.mxu0 }
 0x2fd   : > { %v3522_v6 = vpop.f32.mrf.mxu1  ;;  %v10237_v33 = vadd.f32 %v3715_v60, %v3506_v21 }
 0x2fe   : > { %v7812_v37 = vpop.f32.mrf.mxu0 }
 0x2ff   : > { %v7768_v62 = vpop.f32.mrf.mxu1  ;;  %v10239_v3 = vadd.f32 %v7812_v37, %v7764_v36  ;;  %v5590_v36 = vld [vmem:[#allocation2 + $0xb1] sm:$0xff] }
 0x300   : > { %v3718_v61 = vpop.f32.mrf.mxu0 }
 0x301   : > { %v3525_v35 = vpop.f32.mrf.mxu1  ;;  %v10241_v48 = vadd.f32 %v3718_v61, %v3509_v18  ;;  %v5596_v61 = vld [vmem:[#allocation2 + $0x111] sm:$0xff] }
 0x302   : > { %v7815_v14 = vpop.f32.mrf.mxu0  ;;  %8102 = vmatmul.mubr.bf16.gmra.mxu0 %v5324_v24  ;;  %v5593_v24 = vld [vmem:[#allocation2 + $0xe9] sm:$0xff] }
 0x303   : > { %v7835_v34 = vpop.f32.mrf.mxu1  ;;  %8122 = vmatmul.mubr.bf16.vlgmr.msra.gmra.mxu1 %v5616_v28  ;;  %v10243_v31 = vadd.f32 %v7815_v14, %v7767_v12  ;;  %v5619_v12 = vpack.c.bf16 %v5592_v58, %v5591_v27  ;;  %v5597_v27 = vld [vmem:[#allocation2 + $0x129] sm:$0xff]  ;;  %v5598_v58 = vld [vmem:[#allocation2 + $0x131] sm:$0xff] }
 0x304   : > { %v4022_v57 = vadd.f32 %v7835_v34, %v10163_v30  ;;  %8125 = vmatprep.mubr.bf16.mxu1 %v5617_v46  ;;  %v3731_v47 = vpop.f32.mrf.mxu0  ;;  %v5618_v30 = vpack.c.bf16 %v5590_v36, %v5589_v29 }
 0x305   : > { %v3893_v21 = vpop.f32.mrf.mxu1  ;;  %v10246_v19 = vadd.f32 %v3731_v47, %v3522_v6 }
 0x306   : > { %v4020_v38 = vadd.f32 %v3893_v21, %v10166_v49  ;;  %v7816_v13 = vpop.f32.mrf.mxu0 }
 0x307   : > { %v7836_v43 = vpop.f32.mrf.mxu1  ;;  %v10249_v5 = vadd.f32 %v7816_v13, %v7768_v62  ;;  %v5594_v62 = vld [vmem:[#allocation2 + $0xf1] sm:$0xff] }
 0x308   : > { %v4023_v52 = vadd.f32 %v7836_v43, %v10171_v56  ;;  %v3734_v18 = vpop.f32.mrf.mxu0 }
 0x309   : > { %v3896_v41 = vpop.f32.mrf.mxu1  ;;  %v10252_v16 = vadd.f32 %v3734_v18, %v3525_v35 }
 0x30a   : > { %v4021_v53 = vadd.f32 %v3896_v41, %v10173_v15  ;;  %v7883_v60 = vpop.f32.mrf.mxu0  ;;  %v5595_v15 = vld [vmem:[#allocation2 + $0x109] sm:$0xff]  ;;  %v5600_v41 = vld [vmem:[#allocation2 + $0x151] sm:$0xff] }
 0x30b   : > { %v7839_v49 = vpop.f32.mrf.mxu1  ;;  %8126 = vmatmul.mubr.bf16.gmra.mxu1 %v5618_v30  ;;  %v10255_v6 = vadd.f32 %v7883_v60, %v4022_v57  ;;  %v5621_v47 = vpack.c.bf16 %v5596_v61, %v5595_v15  ;;  %v5601_v15 = vld [vmem:[#allocation2 + $0x169] sm:$0xff]  ;;  %v5602_v61 = vld [vmem:[#allocation2 + $0x171] sm:$0xff] }
 0x30c   : > { %v4026_v25 = vadd.f32 %v7839_v49, %v10179_v10  ;;  %8129 = vmatprep.mubr.bf16.mxu1 %v5619_v12  ;;  %v4199_v11 = vpop.f32.mrf.mxu0  ;;  %v5620_v10 = vpack.c.bf16 %v5594_v62, %v5593_v24 }
 0x30d   : > { %v3909_v37 = vpop.f32.mrf.mxu1  ;;  %v10258_v0 = vadd.f32 %v4199_v11, %v4020_v38 }
 0x30e   : > { %v4024_v56 = vadd.f32 %v3909_v37, %v10182_v2  ;;  %v7884_v63 = vpop.f32.mrf.mxu0 }
 0x30f   : > { %v7840_v50 = vpop.f32.mrf.mxu1  ;;  %v10261_v35 = vadd.f32 %v7884_v63, %v4023_v52 }
 0x310   : > { %v4027_v28 = vadd.f32 %v7840_v50, %v10187_v42  ;;  %v4202_v46 = vpop.f32.mrf.mxu0 }
 0x311   : > { %v3912_v14 = vpop.f32.mrf.mxu1  ;;  %v10264_v34 = vadd.f32 %v4202_v46, %v4021_v53 }
 0x312   : > { %v4025_v57 = vadd.f32 %v3912_v14, %v10189_v55  ;;  %v7887_v21 = vpop.f32.mrf.mxu0  ;;  %v5599_v55 = vld [vmem:[#allocation2 + $0x149] sm:$0xff]  ;;  %v5604_v14 = vld [vmem:[#allocation2 + $0x191] sm:$0xff] }
 0x313   : > { %v7843_v2 = vpop.f32.mrf.mxu1  ;;  %8130 = vmatmul.mubr.bf16.gmra.mxu1 %v5620_v10  ;;  %v10267_v38 = vadd.f32 %v7887_v21, %v4026_v25  ;;  %v5623_v11 = vpack.c.bf16 %v5600_v41, %v5599_v55  ;;  %v5605_v55 = vld [vmem:[#allocation2 + $0x1a9] sm:$0xff]  ;;  %v5606_v41 = vld [vmem:[#allocation2 + $0x1b1] sm:$0xff] }
 0x314   : > { %v4030_v29 = vadd.f32 %v7843_v2, %v10195_v39  ;;  %8133 = vmatprep.mubr.bf16.mxu1 %v5621_v47  ;;  %v4215_v36 = vpop.f32.mrf.mxu0  ;;  %v5622_v39 = vpack.c.bf16 %v5598_v58, %v5597_v27 }
 0x315   : > { %v3925_v13 = vpop.f32.mrf.mxu1  ;;  %v10270_v43 = vadd.f32 %v4215_v36, %v4024_v56 }
 0x316   : > { %v4028_v42 = vadd.f32 %v3925_v13, %v10198_v54  ;;  %v7888_v52 = vpop.f32.mrf.mxu0 }
 0x317   : > { %v7844_v18 = vpop.f32.mrf.mxu1  ;;  %v10273_v30 = vadd.f32 %v7888_v52, %v4027_v28 }
 0x318   : > { %v4031_v53 = vadd.f32 %v7844_v18, %v10200_v20  ;;  %v4218_v12 = vpop.f32.mrf.mxu0 }
 0x319   : > { %v3928_v60 = vpop.f32.mrf.mxu1  ;;  %v10276_v49 = vadd.f32 %v4218_v12, %v4025_v57 }
 0x31a   : > { %v4029_v25 = vadd.f32 %v3928_v60, %v10202_v44  ;;  %v7891_v37 = vpop.f32.mrf.mxu0  ;;  %v5603_v44 = vld [vmem:[#allocation2 + $0x189] sm:$0xff]  ;;  %v5608_v60 = vld [vmem:[#allocation2 + $0x1d1] sm:$0xff] }
 0x31b   : > { %v7847_v54 = vpop.f32.mrf.mxu1  ;;  %8134 = vmatmul.mubr.bf16.gmra.mxu1 %v5622_v39  ;;  %v10279_v56 = vadd.f32 %v7891_v37, %v4030_v29  ;;  %v5625_v36 = vpack.c.bf16 %v5604_v14, %v5603_v44  ;;  %v5609_v44 = vld [vmem:[#allocation2 + $0x1e9] sm:$0xff]  ;;  %v5610_v14 = vld [vmem:[#allocation2 + $0x1f1] sm:$0xff] }
 0x31c   : > { %v4034_v24 = vadd.f32 %v7847_v54, %v10205_v32  ;;  %8137 = vmatprep.mubr.bf16.mxu1 %v5623_v11  ;;  %v4231_v62 = vpop.f32.mrf.mxu0  ;;  %v5624_v32 = vpack.c.bf16 %v5602_v61, %v5601_v15 }
 0x31d   : > { %v3941_v63 = vpop.f32.mrf.mxu1  ;;  %v10282_v50 = vadd.f32 %v4231_v62, %v4028_v42 }
 0x31e   : > { %v4032_v20 = vadd.f32 %v3941_v63, %v10208_v26  ;;  %v7892_v28 = vpop.f32.mrf.mxu0 }
 0x31f   : > { %v7848_v46 = vpop.f32.mrf.mxu1  ;;  %v10285_v10 = vadd.f32 %v7892_v28, %v4031_v53 }
 0x320   : > { %v4035_v57 = vadd.f32 %v7848_v46, %v10210_v59  ;;  %v4234_v47 = vpop.f32.mrf.mxu0 }
 0x321   : > { %v3944_v21 = vpop.f32.mrf.mxu1  ;;  %v10288_v2 = vadd.f32 %v4234_v47, %v4029_v25 }
 0x322   : > { %v4033_v29 = vadd.f32 %v3944_v21, %v10213_v8  ;;  %v7895_v13 = vpop.f32.mrf.mxu0  ;;  %v5607_v8 = vld [vmem:[#allocation2 + $0x1c9] sm:$0xff] }
 0x323   : > { %v7851_v26 = vpop.f32.mrf.mxu1  ;;  %8138 = vmatmul.mubr.bf16.gmra.mxu1 %v5624_v32  ;;  %v10291_v42 = vadd.f32 %v7895_v13, %v4034_v24  ;;  %v5627_v62 = vpack.c.bf16 %v5608_v60, %v5607_v8 }
 0x324   : > { %v4038_v27 = vadd.f32 %v7851_v26, %v10215_v17  ;;  %8141 = vmatprep.mubr.bf16.mxu1 %v5625_v36  ;;  %v4247_v58 = vpop.f32.mrf.mxu0  ;;  %v5626_v17 = vpack.c.bf16 %v5606_v41, %v5605_v55  ;;  %v5628_v36 = vpack.c.bf16 %v5610_v14, %v5609_v44 }
 0x325   : > { %v3957_v52 = vpop.f32.mrf.mxu1  ;;  %v10294_v18 = vadd.f32 %v4247_v58, %v4032_v20 }
 0x326   : > { %v4036_v59 = vadd.f32 %v3957_v52, %v10218_v4  ;;  %v7896_v53 = vpop.f32.mrf.mxu0  ;;  %v5613_v52 = vld [vmem:[#allocation2 + $0x229] sm:$0xff] }
 0x327   : > { %v7852_v12 = vpop.f32.mrf.mxu1  ;;  %v10297_v39 = vadd.f32 %v7896_v53, %v4035_v57 }
 0x328   : > { %v4039_v25 = vadd.f32 %v7852_v12, %v10220_v45  ;;  %v4250_v11 = vpop.f32.mrf.mxu0 }
 0x329   : > { %v3960_v37 = vpop.f32.mrf.mxu1  ;;  %v10300_v54 = vadd.f32 %v4250_v11, %v4033_v29 }
 0x32a   : > { %v4037_v24 = vadd.f32 %v3960_v37, %v10222_v23  ;;  %v7899_v63 = vpop.f32.mrf.mxu0 }
 0x32b   : > { %v7855_v4 = vpop.f32.mrf.mxu1  ;;  %8142 = vmatmul.mubr.bf16.gmra.mxu1 %v5626_v17  ;;  %v10303_v20 = vadd.f32 %v7899_v63, %v4038_v27 }
 0x32c   : > { %v4042_v15 = vadd.f32 %v7855_v4, %v10225_v7  ;;  %8145 = vmatprep.mubr.bf16.mxu1 %v5627_v62  ;;  %v4263_v61 = vpop.f32.mrf.mxu0 }
 0x32d   : > { %v3973_v28 = vpop.f32.mrf.mxu1  ;;  %v10306_v46 = vadd.f32 %v4263_v61, %v4036_v59  ;;  %v5614_v59 = vld [vmem:[#allocation2 + $0x231] sm:$0xff] }
 0x32e   : > { %v4040_v45 = vadd.f32 %v3973_v28, %v10228_v40  ;;  %v7900_v57 = vpop.f32.mrf.mxu0 }
 0x32f   : > { %v7856_v47 = vpop.f32.mrf.mxu1  ;;  %v10309_v23 = vadd.f32 %v7900_v57, %v4039_v25 }
 0x330   : > { %v4043_v21 = vadd.f32 %v7856_v47, %v10230_v51  ;;  %v4266_v32 = vpop.f32.mrf.mxu0 }
 0x331   : > { %v3976_v29 = vpop.f32.mrf.mxu1  ;;  %v10312_v13 = vadd.f32 %v4266_v32, %v4037_v24 }
 0x332   : > { %v4041_v7 = vadd.f32 %v3976_v29, %v10232_v9  ;;  %v7903_v26 = vpop.f32.mrf.mxu0  ;;  %v5630_v9 = vpack.c.bf16 %v5614_v59, %v5613_v52 }
 0x333   : > { %v7859_v27 = vpop.f32.mrf.mxu1  ;;  %8146 = vmatmul.mubr.bf16.gmra.mxu1 %v5628_v36  ;;  %v10315_v58 = vadd.f32 %v7903_v26, %v4042_v15 }
 0x334   : > { %v4046_v40 = vadd.f32 %v7859_v27, %v10235_v22  ;;  %8149 = vmatprep.mubr.bf16.mxu1 %v10149_v1  ;;  %v4279_v55 = vpop.f32.mrf.mxu0 }
 0x335   : > { %v3989_v51 = vpop.f32.mrf.mxu1  ;;  %v10319_v41 = vadd.f32 %v4279_v55, %v4040_v45 }
 0x336   : > { %v4044_v53 = vadd.f32 %v3989_v51, %v10237_v33  ;;  %v7904_v12 = vpop.f32.mrf.mxu0 }
 0x337   : > { %v7860_v8 = vpop.f32.mrf.mxu1  ;;  %v10322_v60 = vadd.f32 %v7904_v12, %v4043_v21 }
 0x338   : > { %v4047_v25 = vadd.f32 %v7860_v8, %v10239_v3  ;;  %v4282_v11 = vpop.f32.mrf.mxu0 }
 0x339   : > { %v3992_v37 = vpop.f32.mrf.mxu1  ;;  %v10325_v22 = vadd.f32 %v4282_v11, %v4041_v7 }
 0x33a   : > { %v4045_v1 = vadd.f32 %v3992_v37, %v10241_v48  ;;  %v7907_v17 = vpop.f32.mrf.mxu0 }
 0x33b   : > { %v7863_v24 = vpop.f32.mrf.mxu1  ;;  %8150 = vmatmul.mubr.bf16.gmra.mxu1 %v5630_v9  ;;  %v10328_v62 = vadd.f32 %v7907_v17, %v4046_v40 }
 0x33c   : > { %v4050_v33 = vadd.f32 %v7863_v24, %v10243_v31  ;;  %v4295_v63 = vpop.f32.mrf.mxu0 }
 0x33d   : > { %v4005_v4 = vpop.f32.mrf.mxu1  ;;  %v10331_v15 = vadd.f32 %v4295_v63, %v4044_v53 }
 0x33e   : > { %v4048_v61 = vadd.f32 %v4005_v4, %v10246_v19  ;;  %v7908_v3 = vpop.f32.mrf.mxu0 }
 0x33f   : > { %v7864_v28 = vpop.f32.mrf.mxu1  ;;  %v10334_v45 = vadd.f32 %v7908_v3, %v4047_v25 }
 0x340   : > { %v4051_v44 = vadd.f32 %v7864_v28, %v10249_v5  ;;  %v4298_v48 = vpop.f32.mrf.mxu0 }
 0x341   : > { %v4008_v14 = vpop.f32.mrf.mxu1  ;;  %v10337_v57 = vadd.f32 %v4298_v48, %v4045_v1 }
 0x342   : > { %v4049_v47 = vadd.f32 %v4008_v14, %v10252_v16  ;;  %v7911_v21 = vpop.f32.mrf.mxu0 }
 0x343   : > { %v7931_v31 = vpop.f32.mrf.mxu1  ;;  %v10340_v32 = vadd.f32 %v7911_v21, %v4050_v33 }
 0x344   : > { %v10343_v29 = vadd.f32 %v7931_v31, %v10255_v6  ;;  %v4311_v19 = vpop.f32.mrf.mxu0 }
 0x345   : > { %v4505_v36 = vpop.f32.mrf.mxu1  ;;  %v10345_v7 = vadd.f32 %v4311_v19, %v4048_v61 }
 0x346   : > { %v10348_v26 = vadd.f32 %v4505_v36, %v10258_v0  ;;  %v7912_v5 = vpop.f32.mrf.mxu0 }
 0x347   : > { %v7932_v27 = vpop.f32.mrf.mxu1  ;;  %v10350_v40 = vadd.f32 %v7912_v5, %v4051_v44 }
 0x348   : > { %v10353_v16 = vadd.f32 %v7932_v27, %v10261_v35  ;;  %v4314_v52 = vpop.f32.mrf.mxu0 }
 0x349   : > { %v4508_v59 = vpop.f32.mrf.mxu1  ;;  %v10355_v55 = vadd.f32 %v4314_v52, %v4049_v47 }
 0x34a   : > { %v10358_v6 = vadd.f32 %v4508_v59, %v10264_v34  ;;  %v10360_v51 = vpop.f32.mrf.mxu0 }
 0x34b   : > { %v7935_v53 = vpop.f32.mrf.mxu1 }
 0x34c   : > { %v10363_v0 = vadd.f32 %v7935_v53, %v10267_v38  ;;  %v10365_v12 = vpop.f32.mrf.mxu0 }
 0x34d   : > { %v4521_v8 = vpop.f32.mrf.mxu1 }
 0x34e   : > { %v10368_v9 = vadd.f32 %v4521_v8, %v10270_v43  ;;  %v10370_v35 = vpop.f32.mrf.mxu0 }
 0x34f   : > { %v7936_v25 = vpop.f32.mrf.mxu1 }
 0x350   : > { %v10373_v11 = vadd.f32 %v7936_v25, %v10273_v30  ;;  %v10375_v34 = vpop.f32.mrf.mxu0 }
 0x351   : > { %v4524_v37 = vpop.f32.mrf.mxu1 }
 0x352   : > { %v10378_v1 = vadd.f32 %v4524_v37, %v10276_v49  ;;  %v10380_v38 = vpop.f32.mrf.mxu0 }
 0x353   : > { %v7939_v17 = vpop.f32.mrf.mxu1 }
 0x354   : > { %v10383_v24 = vadd.f32 %v7939_v17, %v10279_v56  ;;  %v10385_v43 = vpop.f32.mrf.mxu0 }
 0x355   : > { %v4537_v33 = vpop.f32.mrf.mxu1 }
 0x356   : > { %v10388_v63 = vadd.f32 %v4537_v33, %v10282_v50  ;;  %v10390_v30 = vpop.f32.mrf.mxu0 }
 0x357   : > { %v7940_v4 = vpop.f32.mrf.mxu1 }
 0x358   : > { %v10393_v61 = vadd.f32 %v7940_v4, %v10285_v10  ;;  %v10395_v49 = vpop.f32.mrf.mxu0 }
 0x359   : > { %v4540_v3 = vpop.f32.mrf.mxu1 }
 0x35a   : > { %v10398_v28 = vadd.f32 %v4540_v3, %v10288_v2  ;;  %v10400_v56 = vpop.f32.mrf.mxu0 }
 0x35b   : > { %v7943_v44 = vpop.f32.mrf.mxu1 }
 0x35c   : > { %v10403_v48 = vadd.f32 %v7943_v44, %v10291_v42  ;;  %v10405_v50 = vpop.f32.mrf.mxu0 }
 0x35d   : > { %v4553_v14 = vpop.f32.mrf.mxu1 }
 0x35e   : > { %v10408_v47 = vadd.f32 %v4553_v14, %v10294_v18  ;;  %v10410_v10 = vpop.f32.mrf.mxu0 }
 0x35f   : > { %v7944_v21 = vpop.f32.mrf.mxu1 }
 0x360   : > { %v10413_v31 = vadd.f32 %v7944_v21, %v10297_v39  ;;  %v10415_v2 = vpop.f32.mrf.mxu0 }
 0x361   : > { %v4556_v19 = vpop.f32.mrf.mxu1 }
 0x362   : > { %11086 = vst [vmem:[#allocation3_spill] sm:$0xff] %v10413_v31  ;;  %v10418_v36 = vadd.f32 %v4556_v19, %v10300_v54  ;;  %v10420_v42 = vpop.f32.mrf.mxu0 }
 0x363   : > { %v7947_v5 = vpop.f32.mrf.mxu1 }
 0x364   : > { %11087 = vst [vmem:[#allocation4_spill] sm:$0xff] %v10418_v36  ;;  %v10423_v27 = vadd.f32 %v7947_v5, %v10303_v20  ;;  %v10425_v18 = vpop.f32.mrf.mxu0 }
 0x365   : > { %v4569_v52 = vpop.f32.mrf.mxu1 }
 0x366   : > { %11088 = vst [vmem:[#allocation5_spill] sm:$0xff] %v10423_v27  ;;  %v10428_v59 = vadd.f32 %v4569_v52, %v10306_v46  ;;  %v10430_v39 = vpop.f32.mrf.mxu0 }
 0x367   : > { %11090 = vst [vmem:[#allocation7_spill] sm:$0xff] %v10430_v39  ;;  %v7948_v53 = vpop.f32.mrf.mxu1 }
 0x368   : > { %11089 = vst [vmem:[#allocation6_spill] sm:$0xff] %v10428_v59  ;;  %v10433_v8 = vadd.f32 %v7948_v53, %v10309_v23  ;;  %v10435_v54 = vpop.f32.mrf.mxu0 }
 0x369   : > { %11092 = vst [vmem:[#allocation9_spill] sm:$0xff] %v10435_v54  ;;  %v4572_v25 = vpop.f32.mrf.mxu1 }
 0x36a   : > { %11091 = vst [vmem:[#allocation8_spill] sm:$0xff] %v10433_v8  ;;  %v10438_v37 = vadd.f32 %v4572_v25, %v10312_v13  ;;  %v10440_v20 = vpop.f32.mrf.mxu0 }
 0x36b   : > { %11094 = vst [vmem:[#allocation11_spill] sm:$0xff] %v10440_v20  ;;  %v7951_v17 = vpop.f32.mrf.mxu1 }
 0x36c   : > { %11093 = vst [vmem:[#allocation10_spill] sm:$0xff] %v10438_v37  ;;  %v10443_v33 = vadd.f32 %v7951_v17, %v10315_v58  ;;  %v10445_v46 = vpop.f32.mrf.mxu0 }
 0x36d   : > { %11096 = vst [vmem:[#allocation13_spill] sm:$0xff] %v10445_v46  ;;  %v4585_v4 = vpop.f32.mrf.mxu1 }
 0x36e   : > { %11095 = vst [vmem:[#allocation12_spill] sm:$0xff] %v10443_v33  ;;  %v10448_v3 = vadd.f32 %v4585_v4, %v10319_v41  ;;  %v10450_v23 = vpop.f32.mrf.mxu0 }
 0x36f   : > { %11098 = vst [vmem:[#allocation15_spill] sm:$0xff] %v10450_v23  ;;  %v7952_v44 = vpop.f32.mrf.mxu1 }
 0x370   : > { %11097 = vst [vmem:[#allocation14_spill] sm:$0xff] %v10448_v3  ;;  %v10453_v14 = vadd.f32 %v7952_v44, %v10322_v60  ;;  %v10455_v13 = vpop.f32.mrf.mxu0 }
 0x371   : > { %11100 = vst [vmem:[#allocation17_spill] sm:$0xff] %v10455_v13  ;;  %v4588_v21 = vpop.f32.mrf.mxu1 }
 0x372   : > { %11099 = vst [vmem:[#allocation16_spill] sm:$0xff] %v10453_v14  ;;  %v10458_v19 = vadd.f32 %v4588_v21, %v10325_v22  ;;  %v10460_v58 = vpop.f32.mrf.mxu0 }
 0x373   : > { %11102 = vst [vmem:[#allocation20_spill] sm:$0xff] %v10460_v58  ;;  %v7955_v5 = vpop.f32.mrf.mxu1 }
 0x374   : > { %11101 = vst [vmem:[#allocation18_spill] sm:$0xff] %v10458_v19  ;;  %v10463_v52 = vadd.f32 %v7955_v5, %v10328_v62  ;;  %v10465_v41 = vpop.f32.mrf.mxu0 }
 0x375   : > { %11104 = vst [vmem:[#allocation51_spill] sm:$0xff] %v10465_v41  ;;  %v4601_v53 = vpop.f32.mrf.mxu1 }
 0x376   : > { %11103 = vst [vmem:[#allocation21_spill] sm:$0xff] %v10463_v52  ;;  %v10468_v25 = vadd.f32 %v4601_v53, %v10331_v15  ;;  %v10470_v60 = vpop.f32.mrf.mxu0 }
 0x377   : > { %11106 = vst [vmem:[#allocation22_spill] sm:$0xff] %v10470_v60  ;;  %v7956_v17 = vpop.f32.mrf.mxu1 }
 0x378   : > { %11105 = vst [vmem:[#allocation50_spill] sm:$0xff] %v10468_v25  ;;  %v10473_v4 = vadd.f32 %v7956_v17, %v10334_v45  ;;  %v10475_v22 = vpop.f32.mrf.mxu0 }
 0x379   : > { %11108 = vst [vmem:[#allocation24_spill] sm:$0xff] %v10475_v22  ;;  %v4604_v44 = vpop.f32.mrf.mxu1 }
 0x37a   : > { %11107 = vst [vmem:[#allocation23_spill] sm:$0xff] %v10473_v4  ;;  %v10478_v21 = vadd.f32 %v4604_v44, %v10337_v57  ;;  %v10480_v62 = vpop.f32.mrf.mxu0 }
 0x37b   : > { %11110 = vst [vmem:[#allocation52_spill] sm:$0xff] %v10480_v62  ;;  %v7959_v5 = vpop.f32.mrf.mxu1 }
 0x37c   : > { %11109 = vst [vmem:[#allocation54_spill] sm:$0xff] %v10478_v21  ;;  %v10483_v52 = vadd.f32 %v7959_v5, %v10340_v32  ;;  %v10485_v15 = vpop.f32.mrf.mxu0 }
 0x37d   : > { %11112 = vst [vmem:[#allocation26_spill] sm:$0xff] %v10485_v15  ;;  %v4617_v53 = vpop.f32.mrf.mxu1 }
 0x37e   : > { %11111 = vst [vmem:[#allocation25_spill] sm:$0xff] %v10483_v52  ;;  %v10488_v25 = vadd.f32 %v4617_v53, %v10345_v7  ;;  %v10490_v45 = vpop.f32.mrf.mxu0 }
 0x37f   : > { %11114 = vst [vmem:[#allocation57_spill] sm:$0xff] %v10490_v45  ;;  %v7960_v17 = vpop.f32.mrf.mxu1 }
 0x380   : > { %11113 = vst [vmem:[#allocation31_spill] sm:$0xff] %v10488_v25  ;;  %v10493_v4 = vadd.f32 %v7960_v17, %v10350_v40  ;;  %v10495_v57 = vpop.f32.mrf.mxu0 }
 0x381   : > { %11116 = vst [vmem:[#allocation27_spill] sm:$0xff] %v10495_v57  ;;  %v4620_v44 = vpop.f32.mrf.mxu1 }
 0x382   : > { %11115 = vst [vmem:[#allocation53_spill] sm:$0xff] %v10493_v4  ;;  %v10498_v21 = vadd.f32 %v4620_v44, %v10355_v55  ;;  %v10500_v32 = vpop.f32.mrf.mxu0 }
 0x383   : > { %11118 = vst [vmem:[#allocation29_spill] sm:$0xff] %v10500_v32  ;;  %v8027_v5 = vpop.f32.mrf.mxu1 }
 0x384   : > { %11117 = vst [vmem:[#allocation28_spill] sm:$0xff] %v10498_v21  ;;  %v10502_v52 = vpop.f32.mrf.mxu0 }
 0x385   : > { %11119 = vst [vmem:[#allocation30_spill] sm:$0xff] %v10502_v52  ;;  %v5118_v15 = vpop.f32.mrf.mxu1 }
 0x386   : > { %v10504_v7 = vpop.f32.mrf.mxu0 }
 0x387   : > { %11120 = vst [vmem:[#allocation60_spill] sm:$0xff] %v10504_v7  ;;  %v8028_v53 = vpop.f32.mrf.mxu1 }
 0x388   : > { %v10506_v25 = vpop.f32.mrf.mxu0 }
 0x389   : > { %11121 = vst [vmem:[#allocation55_spill] sm:$0xff] %v10506_v25  ;;  %v10508_v45 = vpop.f32.mrf.mxu1 }
 0x38a   : > { %v8075_v40 = vpop.f32.mrf.mxu0 }
 0x38b   : > { %v10510_v17 = vpop.f32.mrf.mxu1 }
 0x38c   : > { %v5424_v4 = vpop.f32.mrf.mxu0 }
 0x38d   : > { %v10512_v57 = vpop.f32.mrf.mxu1 }
 0x38e   : > { %v8076_v55 = vpop.f32.mrf.mxu0 }
 0x38f   : > { %v10514_v44 = vpop.f32.mrf.mxu1 }
 0x390   : > { %v10516_v21 = vpop.f32.mrf.mxu0 }
 0x391   : > { %v10518_v52 = vpop.f32.mrf.mxu1 }
 0x392   : > { %v10520_v32 = vpop.f32.mrf.mxu0 }
 0x393   : > { %v10522_v7 = vpop.f32.mrf.mxu1 }
 0x394   : > { %v10524_v25 = vpop.f32.mrf.mxu0 }
 0x395   : > { %v10526_v62 = vpop.f32.mrf.mxu1 }
 0x396   : > { %v10530_v19 = vpop.f32.mrf.mxu0 }
 0x397   : > { %v10528_v22 = vpop.f32.mrf.mxu1 }
 0x398   : > { %v10536_v41 = vpop.f32.mrf.mxu0 }
 0x399   : > { %v10532_v60 = vpop.f32.mrf.mxu1 }
 0x39a   : > { %v10542_v33 = vpop.f32.mrf.mxu0 }
 0x39b   : > { %v10534_v14 = vpop.f32.mrf.mxu1 }
 0x39c   : > { %v10548_v23 = vpop.f32.mrf.mxu0 }
 0x39d   : > { %v10538_v3 = vpop.f32.mrf.mxu1 }
 0x39e   : > { %11122 = vst [vmem:[#allocation32_spill] sm:$0xff] %v10538_v3  ;;  %v10554_v59 = vpop.f32.mrf.mxu0 }
 0x39f   : > { %v10540_v58 = vpop.f32.mrf.mxu1 }
 0x3a0   : > { %11123 = vst [vmem:[#allocation63_spill] sm:$0xff] %v10540_v58  ;;  %v10560_v3 = vpop.f32.mrf.mxu0 }
 0x3a1   : > { %v10544_v13 = vpop.f32.mrf.mxu1 }
 0x3a2   : > { %11124 = vst [vmem:[#allocation56_spill] sm:$0xff] %v10544_v13  ;;  %v10566_v13 = vpop.f32.mrf.mxu0 }
 0x3a3   : > { %v10546_v37 = vpop.f32.mrf.mxu1 }
 0x3a4   : > { %11125 = vst [vmem:[#allocation66_spill] sm:$0xff] %v10546_v37 }
 0x3a5   : > { %v10550_v8 = vpop.f32.mrf.mxu1 }
 0x3a6   : > { %11126 = vst [vmem:[#allocation58_spill] sm:$0xff] %v10550_v8  ;;  %v10572_v8 = vpop.f32.mrf.mxu0 }
 0x3a7   : > { %v10552_v46 = vpop.f32.mrf.mxu1  ;;  %11134 = vst [vmem:[#allocation19_spill] sm:$0xff] %v10572_v8 }
 0x3a8   : > { %11127 = vst [vmem:[#allocation59_spill] sm:$0xff] %v10552_v46 }
 0x3a9   : > { %v10556_v20 = vpop.f32.mrf.mxu1 }
 0x3aa   : > { %11128 = vst [vmem:[#allocation33_spill] sm:$0xff] %v10556_v20  ;;  %v10578_v20 = vpop.f32.mrf.mxu0 }
 0x3ab   : > { %v10558_v27 = vpop.f32.mrf.mxu1  ;;  %11137 = vst [vmem:[#allocation38_spill] sm:$0xff] %v10578_v20 }
 0x3ac   : > { %11129 = vst [vmem:[#allocation34_spill] sm:$0xff] %v10558_v27 }
 0x3ad   : > { %v10562_v58 = vpop.f32.mrf.mxu1 }
 0x3ae   : > { %11130 = vst [vmem:[#allocation35_spill] sm:$0xff] %v10562_v58  ;;  %v10584_v58 = vpop.f32.mrf.mxu0 }
 0x3af   : > { %v10564_v54 = vpop.f32.mrf.mxu1  ;;  %11140 = vst [vmem:[#allocation65_spill] sm:$0xff] %v10584_v58 }
 0x3b0   : > { %11131 = vst [vmem:[#allocation36_spill] sm:$0xff] %v10564_v54 }
 0x3b1   : > { %v10568_v37 = vpop.f32.mrf.mxu1 }
 0x3b2   : > { %11132 = vst [vmem:[#allocation69_spill] sm:$0xff] %v10568_v37  ;;  %v4940_v37 = vadd.f32 %v10360_v51, %v10343_v29  ;;  %v10603_v29 = vld [vmem:[%s10925_s4] ss:$0 sm:$0xff] }
 0x3b3   : > { %v10570_v36 = vpop.f32.mrf.mxu1 }
 0x3b4   : > { %11133 = vst [vmem:[#allocation61_spill] sm:$0xff] %v10570_v36  ;;  %v5247_v8 = vadd.f32 %v8027_v5, %v4940_v37  ;;  %v4939_v5 = vadd.f32 %v10375_v34, %v10358_v6  ;;  %v6823_v34 = vld [vmem:[%s8407_s10 + $0x48] sm:$0xff] }
 0x3b5   : > { %v10574_v46 = vpop.f32.mrf.mxu1 }
 0x3b6   : > { %11135 = vst [vmem:[#allocation39_spill] sm:$0xff] %v10574_v46  ;;  %v4938_v46 = vadd.f32 %v10365_v12, %v10348_v26  ;;  %v5246_v6 = vadd.f32 %v10508_v45, %v4939_v5 }
 0x3b7   : > { %v10576_v39 = vpop.f32.mrf.mxu1 }
 0x3b8   : > { %11136 = vst [vmem:[#allocation37_spill] sm:$0xff] %v10576_v39  ;;  %v10594_v39 = vpop.f32.mrf.mxu0  ;;  %v5245_v58 = vadd.f32 %v5118_v15, %v4938_v46 }
 0x3b9   : > { %v10580_v27 = vpop.f32.mrf.mxu1 }
 0x3ba   : > { %11138 = vst [vmem:[#allocation62_spill] sm:$0xff] %v10580_v27  ;;  %v5553_v27 = vadd.f32 %v8075_v40, %v5247_v8  ;;  %v5551_v51 = vadd.f32 %v5424_v4, %v5245_v58  ;;  %v10605_v12 = vpop.f32.mrf.mxu0  ;;  %v4944_v8 = vadd.f32 %v10380_v38, %v10363_v0  ;;  %v4945_v40 = vadd.f32 %v10390_v30, %v10373_v11 }
 0x3bb   : > { %v10582_v31 = vpop.f32.mrf.mxu1  ;;  %v4943_v11 = vadd.f32 %v10395_v49, %v10378_v1 }
 0x3bc   : > { %11139 = vst [vmem:[#allocation64_spill] sm:$0xff] %v10582_v31  ;;  %v4941_v31 = vadd.f32 %v10370_v35, %v10353_v16  ;;  %v10612_v16 = vld [vmem:[%s10926_s5] ss:$0 sm:$0xff]  ;;  %v5251_v4 = vadd.f32 %v10510_v17, %v4944_v8  ;;  %v10623_v15 = vpop.f32.mrf.mxu0 }
 0x3bd   : > { %v10586_v54 = vpop.f32.mrf.mxu1 }
 0x3be   : > { %11141 = vst [vmem:[#allocation40_spill] sm:$0xff] %v10586_v54  ;;  %v5248_v26 = vadd.f32 %v8028_v53, %v4941_v31  ;;  %v5557_v17 = vadd.f32 %v10520_v32, %v5251_v4 }
 0x3bf   : > { %v10590_v36 = vpop.f32.mrf.mxu1 }
 0x3c0   : > { %v5554_v46 = vadd.f32 %v8076_v55, %v5248_v26  ;;  %v5552_v55 = vadd.f32 %v10516_v21, %v5246_v6  ;;  %v5252_v21 = vadd.f32 %v10514_v44, %v4945_v40  ;;  %v4948_v44 = vadd.f32 %v10400_v56, %v10383_v24 }
 0x3c1   : > { %v10596_v20 = vpop.f32.mrf.mxu1  ;;  %v4946_v24 = vadd.f32 %v10405_v50, %v10388_v63  ;;  %v4949_v56 = vadd.f32 %v10410_v10, %v10393_v61  ;;  %v4947_v61 = vadd.f32 %v10415_v2, %v10398_v28 }
 0x3c2   : > { %v5255_v10 = vadd.f32 %v10522_v7, %v4948_v44  ;;  %v6828_v7 = vld [vmem:[%s8407_s10 + $0x90] sm:$0xff] }
 0x3c3   : > { %v8123_v54 = vpop.f32.mrf.mxu1  ;;  %v5256_v2 = vadd.f32 %v10528_v22, %v4949_v56 }
 0x3c4   : > { %v5859_v37 = vadd.f32 %v8123_v54, %v5553_v27  ;;  %v4942_v27 = vadd.f32 %v10385_v43, %v10368_v9  ;;  %v6821_v43 = vld [vmem:[%s8407_s10 + $0x28] sm:$0xff] }
 0x3c5   : > { %v5730_v35 = vpop.f32.mrf.mxu1  ;;  %v5562_v22 = vadd.f32 %v10554_v59, %v5256_v2 }
 0x3c6   : > { %v5898_v31 = vmul.f32 %v10603_v29, %v5859_v37  ;;  %v5857_v58 = vadd.f32 %v5730_v35, %v5551_v51  ;;  %v5249_v9 = vadd.f32 %v10512_v57, %v4942_v27  ;;  %v6824_v57 = vld [vmem:[%s8407_s10 + $0x50] sm:$0xff]  ;;  %v10650_v35 = vpop.f32.mrf.mxu0 }
 0x3c7   : > { %v8124_v54 = vpop.f32.mrf.mxu1 }
 0x3c8   : > { %v5937_v53 = vadd.f32 %v10612_v16, %v5898_v31  ;;  %v5896_v0 = vmul.f32 %v10603_v29, %v5857_v58  ;;  %v5860_v38 = vadd.f32 %v8124_v54, %v5554_v46  ;;  %v5555_v30 = vadd.f32 %v10524_v25, %v5249_v9  ;;  %v6822_v54 = vld [vmem:[%s8407_s10 + $0x30] sm:$0xff]  ;;  %v10670_v40 = vpop.f32.mrf.mxu0 }
 0x3c9   : > { %v5733_v45 = vpop.f32.mrf.mxu1  ;;  %v5558_v46 = vadd.f32 %v10530_v19, %v5252_v21  ;;  %v5250_v31 = vadd.f32 %v10518_v52, %v4943_v11 }
 0x3ca   : > { %v6001_v51 = vadd.f32 %v6823_v34, %v5937_v53  ;;  %v5935_v26 = vadd.f32 %v10612_v16, %v5896_v0  ;;  %v5899_v37 = vmul.f32 %v10603_v29, %v5860_v38  ;;  %v5858_v32 = vadd.f32 %v5733_v45, %v5552_v55  ;;  %v6827_v0 = vld [vmem:[%s8407_s10 + $0x88] sm:$0xff] }
 0x3cb   : > { %v8127_v5 = vpop.f32.mrf.mxu1  ;;  %v5556_v19 = vadd.f32 %v10536_v41, %v5250_v31  ;;  %v5253_v41 = vadd.f32 %v10526_v62, %v4946_v24  ;;  %v6825_v45 = vld [vmem:[%s8407_s10 + $0x68] sm:$0xff] }
 0x3cc   : > { %6033 = vst [vmem:[%s10634_s23 + $0x10] sm:$0xff] %v6001_v51  ;;  %v6065_v8 = vmax.f32 %v6001_v51, 0.0  ;;  %v5999_v1 = vadd.f32 %v6821_v43, %v5935_v26  ;;  %v5938_v49 = vadd.f32 %v10612_v16, %v5899_v37  ;;  %v5863_v25 = vadd.f32 %v8127_v5, %v5557_v17 }
 0x3cd   : > { %v5897_v58 = vmul.f32 %v10603_v29, %v5858_v32  ;;  %v5746_v27 = vpop.f32.mrf.mxu1  ;;  %v5559_v28 = vadd.f32 %v10548_v23, %v5253_v41  ;;  %v4952_v23 = vadd.f32 %v10420_v42, %v10403_v48  ;;  %v4950_v48 = vadd.f32 %v10425_v18, %v10408_v47  ;;  %v11142_v18 = vld [vmem:[#allocation3_spill] sm:$0xff]  ;;  %v11146_v41 = vld [vmem:[#allocation5_spill] sm:$0xff] }
 0x3ce   : > { %6097 = vst [vmem:[%s10647_s26 + $0x10] sm:$0xff] %v6065_v8  ;;  %6031 = vst [vmem:[%s10634_s23] sm:$0xff] %v5999_v1  ;;  %v6063_v6 = vmax.f32 %v5999_v1, 0.0  ;;  %v6002_v34 = vadd.f32 %v6824_v57, %v5938_v49  ;;  %v5902_v4 = vmul.f32 %v10603_v29, %v5863_v25  ;;  %v5861_v53 = vadd.f32 %v5746_v27, %v5555_v30  ;;  %v10689_v57 = vpop.f32.mrf.mxu0  ;;  %v6826_v49 = vld [vmem:[%s8407_s10 + $0x70] sm:$0xff] }
 0x3cf   : > { %v5936_v52 = vadd.f32 %v10612_v16, %v5897_v58  ;;  %v8128_v38 = vpop.f32.mrf.mxu1  ;;  %v5561_v30 = vadd.f32 %v10542_v33, %v5255_v10  ;;  %v5254_v1 = vadd.f32 %v10532_v60, %v4947_v61  ;;  %v5259_v59 = vadd.f32 %v10534_v14, %v4952_v23  ;;  %v11145_v14 = vld [vmem:[#allocation9_spill] sm:$0xff]  ;;  %v11152_v23 = vld [vmem:[#allocation56_spill] sm:$0xff] }
 0x3d0   : > { %6095 = vst [vmem:[%s10647_s26] sm:$0xff] %v6063_v6  ;;  %6034 = vst [vmem:[%s10634_s23 + $0x18] sm:$0xff] %v6002_v34  ;;  %v6066_v55 = vmax.f32 %v6002_v34, 0.0  ;;  %v5941_v9 = vadd.f32 %v10612_v16, %v5902_v4  ;;  %v5900_v63 = vmul.f32 %v10603_v29, %v5861_v53  ;;  %v5864_v50 = vadd.f32 %v8128_v38, %v5558_v46  ;;  %v10708_v34 = vpop.f32.mrf.mxu0  ;;  %v6831_v53 = vld [vmem:[%s8407_s10 + $0xc8] sm:$0xff] }
 0x3d1   : > { %v6000_v43 = vadd.f32 %v6822_v54, %v5936_v52  ;;  %v5749_v17 = vpop.f32.mrf.mxu1  ;;  %v5560_v42 = vadd.f32 %v10560_v3, %v5254_v1  ;;  %v11143_v3 = vld [vmem:[#allocation7_spill] sm:$0xff] }
 0x3d2   : > { %6098 = vst [vmem:[%s10647_s26 + $0x18] sm:$0xff] %v6066_v55  ;;  %v6005_v51 = vadd.f32 %v6827_v0, %v5941_v9  ;;  %v5939_v26 = vadd.f32 %v10612_v16, %v5900_v63  ;;  %v5903_v37 = vmul.f32 %v10603_v29, %v5864_v50  ;;  %v5862_v11 = vadd.f32 %v5749_v17, %v5556_v19  ;;  %v11144_v19 = vld [vmem:[#allocation4_spill] sm:$0xff] }
 0x3d3   : > { %6032 = vst [vmem:[%s10634_s23 + $0x8] sm:$0xff] %v6000_v43  ;;  %v6064_v62 = vmax.f32 %v6000_v43, 0.0  ;;  %v8131_v21 = vpop.f32.mrf.mxu1  ;;  %v4953_v56 = vadd.f32 %v11143_v3, %v11142_v18  ;;  %v4951_v52 = vadd.f32 %v11145_v14, %v11144_v19  ;;  %v5565_v0 = vadd.f32 %v10566_v13, %v5259_v59  ;;  %v6829_v55 = vld [vmem:[%s8407_s10 + $0xa8] sm:$0xff]  ;;  %v11147_v43 = vld [vmem:[#allocation11_spill] sm:$0xff]  ;;  %v11155_v59 = vld [vmem:[#allocation65_spill] sm:$0xff] }
 0x3d4   : > { %6037 = vst [vmem:[%s10634_s23 + $0x30] sm:$0xff] %v6005_v51  ;;  %v6069_v32 = vmax.f32 %v6005_v51, 0.0  ;;  %v6003_v5 = vadd.f32 %v6825_v45, %v5939_v26  ;;  %v5942_v8 = vadd.f32 %v10612_v16, %v5903_v37  ;;  %v5901_v33 = vmul.f32 %v10603_v29, %v5862_v11  ;;  %v11148_v17 = vld [vmem:[#allocation32_spill] sm:$0xff]  ;;  %v11149_v13 = vld [vmem:[#allocation63_spill] sm:$0xff]  ;;  %v6832_v11 = vld [vmem:[%s8407_s10 + $0xd0] sm:$0xff] }
 0x3d5   : > { %6096 = vst [vmem:[%s10647_s26 + $0x8] sm:$0xff] %v6064_v62  ;;  %v5867_v25 = vadd.f32 %v8131_v21, %v5561_v30  ;;  %v5762_v44 = vpop.f32.mrf.mxu1  ;;  %v4956_v45 = vadd.f32 %v11147_v43, %v11146_v41  ;;  %v5257_v51 = vadd.f32 %v11148_v17, %v4950_v48  ;;  %v5260_v26 = vadd.f32 %v11149_v13, %v4953_v56  ;;  %v11154_v48 = vld [vmem:[#allocation13_spill] sm:$0xff]  ;;  %v11157_v14 = vld [vmem:[#allocation8_spill] sm:$0xff]  ;;  %v11160_v17 = vld [vmem:[#allocation10_spill] sm:$0xff] }
 0x3d6   : > { %6101 = vst [vmem:[%s10647_s26 + $0x30] sm:$0xff] %v6069_v32  ;;  %6035 = vst [vmem:[%s10634_s23 + $0x20] sm:$0xff] %v6003_v5  ;;  %v6067_v46 = vmax.f32 %v6003_v5, 0.0  ;;  %v6006_v31 = vadd.f32 %v6828_v7, %v5942_v8  ;;  %v5940_v58 = vadd.f32 %v10612_v16, %v5901_v33  ;;  %v5865_v27 = vadd.f32 %v5762_v44, %v5559_v28  ;;  %v10730_v28 = vpop.f32.mrf.mxu0  ;;  %v11150_v32 = vld [vmem:[#allocation19_spill] sm:$0xff]  ;;  %v11151_v8 = vld [vmem:[#allocation38_spill] sm:$0xff] }
 0x3d7   : > { %v5906_v60 = vmul.f32 %v10603_v29, %v5867_v25  ;;  %v8132_v6 = vpop.f32.mrf.mxu1  ;;  %v5563_v5 = vadd.f32 %v11150_v32, %v5257_v51  ;;  %v5566_v33 = vadd.f32 %v11151_v8, %v5260_v26  ;;  %v6833_v41 = vld [vmem:[%s8407_s10 + $0xe8] sm:$0xff]  ;;  %v11161_v51 = vld [vmem:[#allocation17_spill] sm:$0xff] }
 0x3d8   : > { %6099 = vst [vmem:[%s10647_s26 + $0x20] sm:$0xff] %v6067_v46  ;;  %6038 = vst [vmem:[%s10634_s23 + $0x38] sm:$0xff] %v6006_v31  ;;  %v6070_v54 = vmax.f32 %v6006_v31, 0.0  ;;  %v6004_v4 = vadd.f32 %v6826_v49, %v5940_v58  ;;  %v5904_v24 = vmul.f32 %v10603_v29, %v5865_v27  ;;  %v5868_v47 = vadd.f32 %v8132_v6, %v5562_v22  ;;  %v6830_v49 = vld [vmem:[%s8407_s10 + $0xb0] sm:$0xff]  ;;  %v11153_v27 = vld [vmem:[#allocation6_spill] sm:$0xff] }
 0x3d9   : > { %v5945_v38 = vadd.f32 %v10612_v16, %v5906_v60  ;;  %v5765_v9 = vpop.f32.mrf.mxu1  ;;  %v5258_v22 = vadd.f32 %v11152_v23, %v4951_v52  ;;  %v11156_v6 = vld [vmem:[#allocation66_spill] sm:$0xff]  ;;  %v11158_v52 = vld [vmem:[#allocation15_spill] sm:$0xff]  ;;  %v4955_v13 = vadd.f32 %v11161_v51, %v11160_v17  ;;  %v11162_v26 = vld [vmem:[#allocation12_spill] sm:$0xff] }
 0x3da   : > { %6102 = vst [vmem:[%s10647_s26 + $0x38] sm:$0xff] %v6070_v54  ;;  %6036 = vst [vmem:[%s10634_s23 + $0x28] sm:$0xff] %v6004_v4  ;;  %v6068_v63 = vmax.f32 %v6004_v4, 0.0  ;;  %v5943_v50 = vadd.f32 %v10612_v16, %v5904_v24  ;;  %v5907_v61 = vmul.f32 %v10603_v29, %v5868_v47  ;;  %v5866_v10 = vadd.f32 %v5765_v9, %v5560_v42  ;;  %v6835_v4 = vld [vmem:[%s8407_s10 + $0x108] sm:$0xff]  ;;  %v10749_v47 = vpop.f32.mrf.mxu0  ;;  %v11165_v23 = vld [vmem:[#allocation51_spill] sm:$0xff] }
 0x3db   : > { %v6009_v37 = vadd.f32 %v6831_v53, %v5945_v38  ;;  %v8135_v30 = vpop.f32.mrf.mxu1  ;;  %v4954_v42 = vadd.f32 %v11154_v48, %v11153_v27  ;;  %v5564_v60 = vadd.f32 %v11155_v59, %v5258_v22  ;;  %v5263_v54 = vadd.f32 %v11156_v6, %v4956_v45  ;;  %v11168_v6 = vld [vmem:[#allocation34_spill] sm:$0xff]  ;;  %v11173_v17 = vld [vmem:[#allocation24_spill] sm:$0xff] }
 0x3dc   : > { %6100 = vst [vmem:[%s10647_s26 + $0x28] sm:$0xff] %v6068_v63  ;;  %v6007_v2 = vadd.f32 %v6829_v55, %v5943_v50  ;;  %v5946_v62 = vadd.f32 %v10612_v16, %v5907_v61  ;;  %v5905_v7 = vmul.f32 %v10603_v29, %v5866_v10  ;;  %v5871_v21 = vadd.f32 %v8135_v30, %v5565_v0  ;;  %v11159_v55 = vld [vmem:[#allocation58_spill] sm:$0xff] }
 0x3dd   : > { %6041 = vst [vmem:[%s10634_s23 + $0x50] sm:$0xff] %v6009_v37  ;;  %v6073_v1 = vmax.f32 %v6009_v37, 0.0  ;;  %v5778_v25 = vpop.f32.mrf.mxu1  ;;  %v4957_v0 = vadd.f32 %v11158_v52, %v11157_v14  ;;  %v5569_v38 = vadd.f32 %v10594_v39, %v5263_v54  ;;  %v5261_v9 = vadd.f32 %v11159_v55, %v4954_v42  ;;  %v11163_v39 = vld [vmem:[#allocation20_spill] sm:$0xff] }
 0x3de   : > { %6039 = vst [vmem:[%s10634_s23 + $0x40] sm:$0xff] %v6007_v2  ;;  %v6071_v44 = vmax.f32 %v6007_v2, 0.0  ;;  %v6010_v46 = vadd.f32 %v6832_v11, %v5946_v62  ;;  %v5944_v31 = vadd.f32 %v10612_v16, %v5905_v7  ;;  %v5910_v58 = vmul.f32 %v10603_v29, %v5871_v21  ;;  %v6836_v2 = vld [vmem:[%s8407_s10 + $0x110] sm:$0xff]  ;;  %v10770_v7 = vpop.f32.mrf.mxu0  ;;  %v11169_v14 = vld [vmem:[#allocation16_spill] sm:$0xff] }
 0x3df   : > { %6105 = vst [vmem:[%s10647_s26 + $0x50] sm:$0xff] %v6073_v1  ;;  %v5869_v53 = vadd.f32 %v5778_v25, %v5563_v5  ;;  %v8136_v24 = vpop.f32.mrf.mxu1  ;;  %v4960_v37 = vadd.f32 %v11163_v39, %v11162_v26  ;;  %v5567_v11 = vadd.f32 %v10605_v12, %v5261_v9  ;;  %v11166_v12 = vld [vmem:[#allocation59_spill] sm:$0xff]  ;;  %v6837_v9 = vld [vmem:[%s8407_s10 + $0x128] sm:$0xff] }
 0x3e0   : > { %6103 = vst [vmem:[%s10647_s26 + $0x40] sm:$0xff] %v6071_v44  ;;  %6042 = vst [vmem:[%s10634_s23 + $0x58] sm:$0xff] %v6010_v46  ;;  %v6074_v18 = vmax.f32 %v6010_v46, 0.0  ;;  %v6008_v3 = vadd.f32 %v6830_v49, %v5944_v31  ;;  %v5949_v56 = vadd.f32 %v10612_v16, %v5910_v58  ;;  %v5872_v19 = vadd.f32 %v8136_v24, %v5566_v33  ;;  %v11164_v33 = vld [vmem:[#allocation14_spill] sm:$0xff]  ;;  %v11167_v49 = vld [vmem:[#allocation33_spill] sm:$0xff] }
 0x3e1   : > { %v5908_v63 = vmul.f32 %v10603_v29, %v5869_v53  ;;  %v5781_v50 = vpop.f32.mrf.mxu1  ;;  %v4958_v22 = vadd.f32 %v11165_v23, %v11164_v33  ;;  %v5264_v1 = vadd.f32 %v11166_v12, %v4957_v0  ;;  %v5262_v25 = vadd.f32 %v11167_v49, %v4955_v13  ;;  %v6834_v46 = vld [vmem:[%s8407_s10 + $0xf0] sm:$0xff]  ;;  %v6839_v53 = vld [vmem:[%s8407_s10 + $0x148] sm:$0xff]  ;;  %v11177_v33 = vld [vmem:[#allocation50_spill] sm:$0xff] }
 0x3e2   : > { %6106 = vst [vmem:[%s10647_s26 + $0x58] sm:$0xff] %v6074_v18  ;;  %6040 = vst [vmem:[%s10634_s23 + $0x48] sm:$0xff] %v6008_v3  ;;  %v6072_v61 = vmax.f32 %v6008_v3, 0.0  ;;  %v6013_v10 = vadd.f32 %v6835_v4, %v5949_v56  ;;  %v5911_v43 = vmul.f32 %v10603_v29, %v5872_v19  ;;  %v5870_v45 = vadd.f32 %v5781_v50, %v5564_v60  ;;  %v10789_v18 = vpop.f32.mrf.mxu0  ;;  %v11174_v13 = vld [vmem:[#allocation36_spill] sm:$0xff]  ;;  %v11178_v23 = vld [vmem:[#allocation26_spill] sm:$0xff] }
 0x3e3   : > { %v5947_v30 = vadd.f32 %v10612_v16, %v5908_v63  ;;  %v8139_v62 = vpop.f32.mrf.mxu1  ;;  %v5570_v59 = vadd.f32 %v10623_v15, %v5264_v1  ;;  %v5568_v60 = vadd.f32 %v10650_v35, %v5262_v25  ;;  %v5267_v54 = vadd.f32 %v11168_v6, %v4960_v37  ;;  %v11170_v35 = vld [vmem:[#allocation22_spill] sm:$0xff]  ;;  %v6838_v49 = vld [vmem:[%s8407_s10 + $0x130] sm:$0xff] }
 0x3e4   : > { %6104 = vst [vmem:[%s10647_s26 + $0x48] sm:$0xff] %v6072_v61  ;;  %6045 = vst [vmem:[%s10634_s23 + $0x70] sm:$0xff] %v6013_v10  ;;  %v6077_v21 = vmax.f32 %v6013_v10, 0.0  ;;  %v5950_v32 = vadd.f32 %v10612_v16, %v5911_v43  ;;  %v5909_v5 = vmul.f32 %v10603_v29, %v5870_v45  ;;  %v5875_v8 = vadd.f32 %v8139_v62, %v5569_v38  ;;  %v11171_v38 = vld [vmem:[#allocation35_spill] sm:$0xff]  ;;  %v11172_v45 = vld [vmem:[#allocation18_spill] sm:$0xff] }
 0x3e5   : > { %v6011_v44 = vadd.f32 %v6833_v41, %v5947_v30  ;;  %v5794_v31 = vpop.f32.mrf.mxu1  ;;  %v4961_v52 = vadd.f32 %v11170_v35, %v11169_v14  ;;  %v5573_v0 = vadd.f32 %v10670_v40, %v5267_v54  ;;  %v5265_v55 = vadd.f32 %v11171_v38, %v4958_v22  ;;  %v6840_v62 = vld [vmem:[%s8407_s10 + $0x150] sm:$0xff] }
 0x3e6   : > { %6109 = vst [vmem:[%s10647_s26 + $0x70] sm:$0xff] %v6077_v21  ;;  %v6014_v58 = vadd.f32 %v6836_v2, %v5950_v32  ;;  %v5948_v27 = vadd.f32 %v10612_v16, %v5909_v5  ;;  %v5914_v48 = vmul.f32 %v10603_v29, %v5875_v8  ;;  %v5873_v42 = vadd.f32 %v5794_v31, %v5567_v11  ;;  %v10808_v11 = vpop.f32.mrf.mxu0  ;;  %v11175_v5 = vld [vmem:[#allocation21_spill] sm:$0xff] }
 0x3e7   : > { %6043 = vst [vmem:[%s10634_s23 + $0x60] sm:$0xff] %v6011_v44  ;;  %v6075_v4 = vmax.f32 %v6011_v44, 0.0  ;;  %v8140_v24 = vpop.f32.mrf.mxu1  ;;  %v4959_v51 = vadd.f32 %v11173_v17, %v11172_v45  ;;  %v5571_v40 = vadd.f32 %v10689_v57, %v5265_v55  ;;  %v5268_v26 = vadd.f32 %v11174_v13, %v4961_v52  ;;  %v11176_v57 = vld [vmem:[#allocation52_spill] sm:$0xff]  ;;  %v11183_v52 = vld [vmem:[#allocation39_spill] sm:$0xff]  ;;  %v11186_v45 = vld [vmem:[#allocation37_spill] sm:$0xff] }
 0x3e8   : > { %6046 = vst [vmem:[%s10634_s23 + $0x78] sm:$0xff] %v6014_v58  ;;  %v6078_v3 = vmax.f32 %v6014_v58, 0.0  ;;  %v6012_v56 = vadd.f32 %v6834_v46, %v5948_v27  ;;  %v5953_v19 = vadd.f32 %v10612_v16, %v5914_v48  ;;  %v5912_v15 = vmul.f32 %v10603_v29, %v5873_v42  ;;  %v11179_v27 = vld [vmem:[#allocation23_spill] sm:$0xff]  ;;  %v11180_v48 = vld [vmem:[#allocation57_spill] sm:$0xff]  ;;  %v6841_v55 = vld [vmem:[%s8407_s10 + $0x168] sm:$0xff] }
 0x3e9   : > { %6107 = vst [vmem:[%s10647_s26 + $0x60] sm:$0xff] %v6075_v4  ;;  %v5876_v63 = vadd.f32 %v8140_v24, %v5570_v59  ;;  %v5797_v50 = vpop.f32.mrf.mxu1  ;;  %v4964_v8 = vadd.f32 %v11176_v57, %v11175_v5  ;;  %v4962_v22 = vadd.f32 %v11178_v23, %v11177_v33  ;;  %v5574_v12 = vadd.f32 %v10708_v34, %v5268_v26  ;;  %v11181_v59 = vld [vmem:[#allocation69_spill] sm:$0xff]  ;;  %v6843_v4 = vld [vmem:[%s8407_s10 + $0x188] sm:$0xff]  ;;  %v10830_v24 = vpop.f32.mrf.mxu0  ;;  %v11189_v5 = vld [vmem:[#allocation62_spill] sm:$0xff] }
 0x3ea   : > { %6110 = vst [vmem:[%s10647_s26 + $0x78] sm:$0xff] %v6078_v3  ;;  %6044 = vst [vmem:[%s10634_s23 + $0x68] sm:$0xff] %v6012_v56  ;;  %v6076_v61 = vmax.f32 %v6012_v56, 0.0  ;;  %v6017_v10 = vadd.f32 %v6839_v53, %v5953_v19  ;;  %v5951_v41 = vadd.f32 %v10612_v16, %v5912_v15  ;;  %v5874_v43 = vadd.f32 %v5797_v50, %v5568_v60  ;;  %v11182_v34 = vld [vmem:[#allocation61_spill] sm:$0xff] }
 0x3eb   : > { %v5915_v39 = vmul.f32 %v10603_v29, %v5876_v63  ;;  %v8143_v37 = vpop.f32.mrf.mxu1  ;;  %v4965_v42 = vadd.f32 %v11180_v48, %v11179_v27  ;;  %v5266_v60 = vadd.f32 %v11181_v59, %v4959_v51  ;;  %v5271_v6 = vadd.f32 %v11182_v34, %v4964_v8  ;;  %v6844_v51 = vld [vmem:[%s8407_s10 + $0x190] sm:$0xff]  ;;  %v5536_v26 = vpop.f32.mrf.mxu0 }
 0x3ec   : > { %6108 = vst [vmem:[%s10647_s26 + $0x68] sm:$0xff] %v6076_v61  ;;  %6049 = vst [vmem:[%s10634_s23 + $0x90] sm:$0xff] %v6017_v10  ;;  %v6081_v30 = vmax.f32 %v6017_v10, 0.0  ;;  %v6015_v2 = vadd.f32 %v6837_v9, %v5951_v41  ;;  %v5913_v21 = vmul.f32 %v10603_v29, %v5874_v43  ;;  %v5879_v32 = vadd.f32 %v8143_v37, %v5573_v0  ;;  %v11184_v41 = vld [vmem:[#allocation54_spill] sm:$0xff] }
 0x3ed   : > { %v5954_v1 = vadd.f32 %v10612_v16, %v5915_v39  ;;  %v5810_v25 = vpop.f32.mrf.mxu1  ;;  %v5572_v14 = vadd.f32 %v10730_v28, %v5266_v60  ;;  %v5577_v35 = vadd.f32 %v10749_v47, %v5271_v6  ;;  %v5269_v0 = vadd.f32 %v11183_v52, %v4962_v22  ;;  %v11185_v28 = vld [vmem:[#allocation27_spill] sm:$0xff]  ;;  %v8104_v60 = vpop.f32.mrf.mxu0  ;;  %v6845_v52 = vld [vmem:[%s8407_s10 + $0x1a8] sm:$0xff] }
 0x3ee   : > { %6113 = vst [vmem:[%s10647_s26 + $0x90] sm:$0xff] %v6081_v30  ;;  %6047 = vst [vmem:[%s10634_s23 + $0x80] sm:$0xff] %v6015_v2  ;;  %v6079_v44 = vmax.f32 %v6015_v2, 0.0  ;;  %v5952_v46 = vadd.f32 %v10612_v16, %v5913_v21  ;;  %v5918_v31 = vmul.f32 %v10603_v29, %v5879_v32  ;;  %v5877_v58 = vadd.f32 %v5810_v25, %v5571_v40  ;;  %v11188_v21 = vld [vmem:[#allocation29_spill] sm:$0xff]  ;;  %v11190_v25 = vld [vmem:[#allocation31_spill] sm:$0xff] }
 0x3ef   : > { %v6018_v54 = vadd.f32 %v6840_v62, %v5954_v1  ;;  %v8144_v53 = vpop.f32.mrf.mxu1  ;;  %v4963_v43 = vadd.f32 %v11185_v28, %v11184_v41  ;;  %v5575_v47 = vadd.f32 %v10770_v7, %v5269_v0  ;;  %v5272_v17 = vadd.f32 %v11186_v45, %v4965_v42  ;;  %v11187_v62 = vld [vmem:[#allocation25_spill] sm:$0xff]  ;;  %v6847_v42 = vld [vmem:[%s8407_s10 + $0x1c8] sm:$0xff] }
 0x3f0   : > { %6111 = vst [vmem:[%s10647_s26 + $0x80] sm:$0xff] %v6079_v44  ;;  %v6016_v3 = vadd.f32 %v6838_v49, %v5952_v46  ;;  %v5957_v56 = vadd.f32 %v10612_v16, %v5918_v31  ;;  %v5916_v19 = vmul.f32 %v10603_v29, %v5877_v58  ;;  %v5880_v15 = vadd.f32 %v8144_v53, %v5574_v12  ;;  %v6842_v12 = vld [vmem:[%s8407_s10 + $0x170] sm:$0xff]  ;;  %v11191_v44 = vld [vmem:[#allocation30_spill] sm:$0xff]  ;;  %v11194_v53 = vld [vmem:[#allocation28_spill] sm:$0xff] }
 0x3f1   : > { %6050 = vst [vmem:[%s10634_s23 + $0x98] sm:$0xff] %v6018_v54  ;;  %v6082_v38 = vmax.f32 %v6018_v54, 0.0  ;;  %v5813_v9 = vpop.f32.mrf.mxu1  ;;  %v4968_v7 = vadd.f32 %v11188_v21, %v11187_v62  ;;  %v5578_v32 = vadd.f32 %v10789_v18, %v5272_v17  ;;  %v5270_v57 = vadd.f32 %v11189_v5, %v4963_v43  ;;  %v11192_v31 = vld [vmem:[#allocation53_spill] sm:$0xff]  ;;  %v11193_v18 = vld [vmem:[#allocation60_spill] sm:$0xff] }
 0x3f2   : > { %6048 = vst [vmem:[%s10634_s23 + $0x88] sm:$0xff] %v6016_v3  ;;  %v6080_v63 = vmax.f32 %v6016_v3, 0.0  ;;  %v6021_v50 = vadd.f32 %v6843_v4, %v5957_v56  ;;  %v5955_v61 = vadd.f32 %v10612_v16, %v5916_v19  ;;  %v5919_v10 = vmul.f32 %v10603_v29, %v5880_v15  ;;  %v11195_v3 = vld [vmem:[#allocation55_spill] sm:$0xff]  ;;  %v11196_v19 = vld [vmem:[#allocation64_spill] sm:$0xff]  ;;  %v6848_v28 = vld [vmem:[%s8407_s10 + $0x1d0] sm:$0xff] }
 0x3f3   : > { %6114 = vst [vmem:[%s10647_s26 + $0x98] sm:$0xff] %v6082_v38  ;;  %v5878_v40 = vadd.f32 %v5813_v9, %v5572_v14  ;;  %v8147_v13 = vpop.f32.mrf.mxu1  ;;  %v4966_v46 = vadd.f32 %v11191_v44, %v11190_v25  ;;  %v4969_v58 = vadd.f32 %v11193_v18, %v11192_v31  ;;  %v5576_v27 = vadd.f32 %v10808_v11, %v5270_v57  ;;  %v11197_v15 = vld [vmem:[#allocation40_spill] sm:$0xff]  ;;  %v6852_v31 = vld [vmem:[%s8407_s10 + $0x210] sm:$0xff] }
 0x3f4   : > { %6112 = vst [vmem:[%s10647_s26 + $0x88] sm:$0xff] %v6080_v63  ;;  %6053 = vst [vmem:[%s10634_s23 + $0xb0] sm:$0xff] %v6021_v50  ;;  %v6085_v39 = vmax.f32 %v6021_v50, 0.0  ;;  %v6019_v37 = vadd.f32 %v6841_v55, %v5955_v61  ;;  %v5958_v30 = vadd.f32 %v10612_v16, %v5919_v10  ;;  %v5883_v2 = vadd.f32 %v8147_v13, %v5577_v35  ;;  %v6846_v13 = vld [vmem:[%s8407_s10 + $0x1b0] sm:$0xff]  ;;  %v6851_v57 = vld [vmem:[%s8407_s10 + $0x208] sm:$0xff] }
 0x3f5   : > { %v5917_v8 = vmul.f32 %v10603_v29, %v5878_v40  ;;  %v5826_v33 = vpop.f32.mrf.mxu1  ;;  %v4967_v56 = vadd.f32 %v11195_v3, %v11194_v53  ;;  %v5275_v11 = vadd.f32 %v11196_v19, %v4968_v7  ;;  %v5273_v14 = vadd.f32 %v11197_v15, %v4966_v46 }
 0x3f6   : > { %6117 = vst [vmem:[%s10647_s26 + $0xb0] sm:$0xff] %v6085_v39  ;;  %6051 = vst [vmem:[%s10634_s23 + $0xa0] sm:$0xff] %v6019_v37  ;;  %v6083_v23 = vmax.f32 %v6019_v37, 0.0  ;;  %v6022_v22 = vadd.f32 %v6844_v51, %v5958_v30  ;;  %v5922_v1 = vmul.f32 %v10603_v29, %v5883_v2  ;;  %v5881_v49 = vadd.f32 %v5826_v33, %v5575_v47  ;;  %v5539_v47 = vpop.f32.mrf.mxu0 }
 0x3f7   : > { %v5956_v48 = vadd.f32 %v10612_v16, %v5917_v8  ;;  %v8148_v59 = vpop.f32.mrf.mxu1  ;;  %v5581_v50 = vadd.f32 %v10830_v24, %v5275_v11  ;;  %v5276_v61 = vadd.f32 %v10590_v36, %v4969_v58  ;;  %v5579_v10 = vadd.f32 %v5536_v26, %v5273_v14 }
 0x3f8   : > { %6115 = vst [vmem:[%s10647_s26 + $0xa0] sm:$0xff] %v6083_v23  ;;  %6054 = vst [vmem:[%s10634_s23 + $0xb8] sm:$0xff] %v6022_v22  ;;  %v6086_v34 = vmax.f32 %v6022_v22, 0.0  ;;  %v5961_v6 = vadd.f32 %v10612_v16, %v5922_v1  ;;  %v5920_v54 = vmul.f32 %v10603_v29, %v5881_v49  ;;  %v5884_v4 = vadd.f32 %v8148_v59, %v5578_v32  ;;  %v6849_v22 = vld [vmem:[%s8407_s10 + $0x1e8] sm:$0xff] }
 0x3f9   : > { %v6020_v35 = vadd.f32 %v6842_v12, %v5956_v48  ;;  %v5829_v0 = vpop.f32.mrf.mxu1  ;;  %v5274_v24 = vadd.f32 %v10596_v20, %v4967_v56  ;;  %v5582_v36 = vadd.f32 %v8104_v60, %v5276_v61 }
 0x3fa   : > { %6118 = vst [vmem:[%s10647_s26 + $0xb8] sm:$0xff] %v6086_v34  ;;  %v6025_v38 = vadd.f32 %v6847_v42, %v5961_v6  ;;  %v5959_v55 = vadd.f32 %v10612_v16, %v5920_v54  ;;  %v5923_v9 = vmul.f32 %v10603_v29, %v5884_v4  ;;  %v5882_v63 = vadd.f32 %v5829_v0, %v5576_v27  ;;  %v6850_v42 = vld [vmem:[%s8407_s10 + $0x1f0] sm:$0xff] }
 0x3fb   : > { %6052 = vst [vmem:[%s10634_s23 + $0xa8] sm:$0xff] %v6020_v35  ;;  %v6084_v41 = vmax.f32 %v6020_v35, 0.0  ;;  %v8151_v43 = vpop.f32.mrf.mxu1  ;;  %v5580_v21 = vadd.f32 %v5539_v47, %v5274_v24 }
 0x3fc   : > { %6057 = vst [vmem:[%s10634_s23 + $0xd0] sm:$0xff] %v6025_v38  ;;  %v6089_v45 = vmax.f32 %v6025_v38, 0.0  ;;  %v6023_v17 = vadd.f32 %v6845_v52, %v5959_v55  ;;  %v5962_v51 = vadd.f32 %v10612_v16, %v5923_v9  ;;  %v5921_v40 = vmul.f32 %v10603_v29, %v5882_v63 }
 0x3fd   : > { %6116 = vst [vmem:[%s10647_s26 + $0xa8] sm:$0xff] %v6084_v41  ;;  %v5887_v26 = vadd.f32 %v8151_v43, %v5581_v50  ;;  %v5842_v39 = vpop.f32.mrf.mxu1 }
 0x3fe   : > { %6121 = vst [vmem:[%s10647_s26 + $0xd0] sm:$0xff] %v6089_v45  ;;  %6055 = vst [vmem:[%s10634_s23 + $0xc0] sm:$0xff] %v6023_v17  ;;  %v6087_v37 = vmax.f32 %v6023_v17, 0.0  ;;  %v6026_v30 = vadd.f32 %v6848_v28, %v5962_v51  ;;  %v5960_v2 = vadd.f32 %v10612_v16, %v5921_v40  ;;  %v5885_v62 = vadd.f32 %v5842_v39, %v5579_v10 }
 0x3ff   : > { %v5926_v20 = vmul.f32 %v10603_v29, %v5887_v26  ;;  %v8152_v7 = vpop.f32.mrf.mxu1 }
 0x400   : > { %6119 = vst [vmem:[%s10647_s26 + $0xc0] sm:$0xff] %v6087_v37  ;;  %6058 = vst [vmem:[%s10634_s23 + $0xd8] sm:$0xff] %v6026_v30  ;;  %v6090_v32 = vmax.f32 %v6026_v30, 0.0  ;;  %v6024_v5 = vadd.f32 %v6846_v13, %v5960_v2  ;;  %v5924_v8 = vmul.f32 %v10603_v29, %v5885_v62  ;;  %v5888_v33 = vadd.f32 %v8152_v7, %v5582_v36 }
 0x401   : > { %v5965_v23 = vadd.f32 %v10612_v16, %v5926_v20  ;;  %v5845_v12 = vpop.f32.mrf.mxu1 }
 0x402   : > { %6122 = vst [vmem:[%s10647_s26 + $0xd8] sm:$0xff] %v6090_v32  ;;  %6056 = vst [vmem:[%s10634_s23 + $0xc8] sm:$0xff] %v6024_v5  ;;  %v6088_v1 = vmax.f32 %v6024_v5, 0.0  ;;  %v5963_v49 = vadd.f32 %v10612_v16, %v5924_v8  ;;  %v5927_v25 = vmul.f32 %v10603_v29, %v5888_v33  ;;  %v5886_v44 = vadd.f32 %v5845_v12, %v5580_v21 }
 0x403   : > { %v6029_v46 = vadd.f32 %v6851_v57, %v5965_v23 }
 0x404   : > { %6120 = vst [vmem:[%s10647_s26 + $0xc8] sm:$0xff] %v6088_v1  ;;  %v6027_v18 = vadd.f32 %v6849_v22, %v5963_v49  ;;  %v5966_v58 = vadd.f32 %v10612_v16, %v5927_v25  ;;  %v5925_v27 = vmul.f32 %v10603_v29, %v5886_v44 }
 0x405   : > { %6061 = vst [vmem:[%s10634_s23 + $0xf0] sm:$0xff] %v6029_v46  ;;  %v6093_v48 = vmax.f32 %v6029_v46, 0.0 }
 0x406   : > { %6059 = vst [vmem:[%s10634_s23 + $0xe0] sm:$0xff] %v6027_v18  ;;  %v6091_v59 = vmax.f32 %v6027_v18, 0.0  ;;  %v6030_v60 = vadd.f32 %v6852_v31, %v5966_v58  ;;  %v5964_v34 = vadd.f32 %v10612_v16, %v5925_v27 }
 0x407   : > { %6125 = vst [vmem:[%s10647_s26 + $0xf0] sm:$0xff] %v6093_v48 }
 0x408   : > { %6123 = vst [vmem:[%s10647_s26 + $0xe0] sm:$0xff] %v6091_v59  ;;  %6062 = vst [vmem:[%s10634_s23 + $0xf8] sm:$0xff] %v6030_v60  ;;  %v6094_v6 = vmax.f32 %v6030_v60, 0.0  ;;  %v6028_v54 = vadd.f32 %v6850_v42, %v5964_v34 }
 0x40a   : > { %6126 = vst [vmem:[%s10647_s26 + $0xf8] sm:$0xff] %v6094_v6  ;;  %6060 = vst [vmem:[%s10634_s23 + $0xe8] sm:$0xff] %v6028_v54  ;;  %v6092_v4 = vmax.f32 %v6028_v54, 0.0 }
 0x40c   : > { %6124 = vst [vmem:[%s10647_s26 + $0xe8] sm:$0xff] %v6092_v4 }
 0x40d PF: > { %s19_s27 = sadd.s32 1, %s8314_s27  }
 0x40e   : > { %p16_p4 = scmp.ge.s32.totalorder %s19_s27, 4  }
 0x410   :  { %18 = sbr.rel (!%p16_p4) target bundleno = 1 (0x1), region = 111 }

</bundles_post_ra>
